<compile_context>
chip_gen: v6e
topology: v6e:2x2x1
jax: 0.10.0
libtpu: 0.0.40
codegen_flags: <defaults>
</compile_context>

<pallas_src>
import jax
import jax.numpy as jnp
from jax.experimental import pallas as pl
from jax.experimental.pallas import tpu as pltpu

# --- module hyperparameters (scaled-down, consistent with the PyTorch file) ---
BLOCK_SIZE = 32                    # max T supported by the causal mask
N_EMBD = 64
NUM_HEADS = 4
HEAD_SIZE = N_EMBD // NUM_HEADS    # 16


def mha_kernel(x_ref, wqkv_ref, wp_ref, bp_ref, o_ref):
    """One grid step: `Bt` batch elements of causal multi-head attention + projection."""
    Bt, T, C = x_ref.shape
    cdt = x_ref.dtype                       # MXU compute dtype (bf16 fast path, f32 exact path)

    x = x_ref[...]                          # (Bt, T, C)
    xf = x.reshape(Bt * T, C)               # flatten (Bt, T) -> M for the MXU

    # ---- fused QKV projection: one (M, 64) @ (64, 192) matmul, f32 accumulate.
    #      The C**-0.5 scale is pre-folded into the Q columns of wqkv (host side). ----
    qkv = jnp.dot(xf, wqkv_ref[...].astype(cdt),
                  preferred_element_type=jnp.float32)            # (M, 3C) f32
    qkv = qkv.reshape(Bt, T, 3 * C)

    # ---- causal mask, built once per grid step (2-D iota required on TPU) ----
    row = jax.lax.broadcasted_iota(jnp.int32, (T, T), 0)
    col = jax.lax.broadcasted_iota(jnp.int32, (T, T), 1)
    causal = (col <= row)[None, :, :]                            # (1, T, T)

    # Projection weight loaded once; sliced per head (rows are 16-aligned -> clean tiles).
    wp_all = wp_ref[...].astype(cdt)                              # (C, C)

    # f32 output accumulator, seeded with the projection bias ((1, C) broadcasts on the
    # first accumulation) -> no cat scratch, no lane-masked stores, one bias add total.
    y = bp_ref[...].astype(jnp.float32)                           # (1, C)

    # ---- per-head attention (static unroll over 4 heads, batched over Bt) ----
    for h in range(NUM_HEADS):
        lo = h * HEAD_SIZE
        q = qkv[:, :, lo:lo + HEAD_SIZE]                          # (Bt, T, hs) f32, pre-scaled
        k = qkv[:, :, C + lo:C + lo + HEAD_SIZE]
        v = qkv[:, :, 2 * C + lo:2 * C + lo + HEAD_SIZE]

        s = jnp.einsum('bqd,bkd->bqk', q.astype(cdt), k.astype(cdt),
                       preferred_element_type=jnp.float32)        # (Bt, T, T) f32
        # every causal row has >= 1 unmasked entry (the diagonal), so -inf is safe here
        s = jnp.where(causal, s, -jnp.inf)

        # softmax statistics in f32 (VPU/EUP); normalization is deferred past the PV matmul
        m = jnp.max(s, axis=-1, keepdims=True)
        p = jnp.exp(s - m)                                        # unnormalized probabilities
        l = jnp.sum(p, axis=-1, keepdims=True)                    # (Bt, T, 1), l >= 1

        ho = jnp.einsum('bqk,bkd->bqd', p.astype(cdt), v.astype(cdt),
                        preferred_element_type=jnp.float32)       # (Bt, T, hs) f32
        # deferred normalization: touches T*hs elements instead of T*T.
        # pl.reciprocal(l, approx=True) is the EUP option if tolerance allows.
        ho = ho * (1.0 / l)

        # per-head output projection accumulation: (M, 16) @ (16, 64), f32 accumulate.
        y = y + jnp.dot(ho.reshape(Bt * T, HEAD_SIZE).astype(cdt),
                        wp_all[lo:lo + HEAD_SIZE, :],
                        preferred_element_type=jnp.float32)       # (M, C) f32

    o_ref[...] = y.reshape(Bt, T, C).astype(o_ref.dtype)


def _default_batch_block(B):
    """Largest divisor of B that is <= 128 and (when B >= 2) leaves >= 2 grid steps
    so both v7x TensorCores receive work under dimension_semantics=("parallel",)."""
    cap = 128
    if B >= 2:
        cap = min(cap, B // 2)
    best = 1
    for d in range(1, min(cap, B) + 1):
        if B % d == 0:
            best = d
    return best


def multi_head_attention(x, wqkv, wp, bp, *, batch_block=None, vmem_limit_bytes=None):
    """x: (B, T, C); wqkv: (C, 3C) fused [Q|K|V] weight (Q columns pre-scaled by C**-0.5);
    wp: (C, C); bp: (C,).  Returns (B, T, n_embd) in x.dtype.

    Pass bf16 x/weights for the v6e/v7x MXU fast path (softmax / accumulation remain f32
    inside the kernel).  Per-generation tuning:
      * v6e: batch_block 256-512 with vmem_limit_bytes ~64-96 MiB amortizes grid-step
        overhead further (128 MiB physical VMEM).
      * v5e: keep batch_block <= 128 unless vmem_limit_bytes is raised (16 MiB scoped default).
      * v7x: keep batch_block <= ~256, prefer bf16 I/O, and keep >= 2 grid steps
        (64 MiB physical VMEM, 2 TensorCores).
    """
    B, T, C = x.shape
    assert C == N_EMBD and T <= BLOCK_SIZE

    if batch_block is None:
        batch_block = _default_batch_block(B)
    bt = batch_block
    assert B % bt == 0, "batch must be divisible by batch_block"

    bp2 = bp.reshape(1, N_EMBD)

    cp_kwargs = dict(dimension_semantics=("parallel",))
    if vmem_limit_bytes is not None:
        cp_kwargs["vmem_limit_bytes"] = vmem_limit_bytes

    return pl.pallas_call(
        mha_kernel,
        out_shape=jax.ShapeDtypeStruct((B, T, N_EMBD), x.dtype),
        grid_spec=pltpu.PrefetchScalarGridSpec(
            num_scalar_prefetch=0,
            grid=(B // bt,),
            in_specs=[
                pl.BlockSpec((bt, T, C), lambda b: (b, 0, 0)),        # x (batch-blocked)
                pl.BlockSpec((C, 3 * C), lambda b: (0, 0)),           # fused Wqkv (resident)
                pl.BlockSpec((C, C), lambda b: (0, 0)),               # Wp (resident)
                pl.BlockSpec((1, C), lambda b: (0, 0)),               # bp (resident)
            ],
            out_specs=pl.BlockSpec((bt, T, N_EMBD), lambda b: (b, 0, 0)),
            # no scratch_shapes: the concat buffer was removed (per-head proj accumulation)
        ),
        compiler_params=pltpu.CompilerParams(**cp_kwargs),
    )(x, wqkv, wp, bp2)


def fuse_qkv(wq, wk, wv):
    """Pack per-head (H, C, hs) weights into one (C, 3C) matrix with column layout
    [q_h0..q_h3 | k_h0..k_h3 | v_h0..v_h3] matching the kernel's static slices.
    The attention scale C**-0.5 (n_embd, as in the PyTorch source) is folded into Q."""
    scale = N_EMBD ** (-0.5)
    q = jnp.transpose(wq, (1, 0, 2)).reshape(N_EMBD, N_EMBD) * scale
    k = jnp.transpose(wk, (1, 0, 2)).reshape(N_EMBD, N_EMBD)
    v = jnp.transpose(wv, (1, 0, 2)).reshape(N_EMBD, N_EMBD)
    return jnp.concatenate([q, k, v], axis=1)


def reference(x, wq, wk, wv, wp, bp):
    """Pure-JAX reference mirroring the PyTorch forward (dropout=0)."""
    B, T, C = x.shape
    scale = C ** (-0.5)
    tril = jnp.tril(jnp.ones((T, T), dtype=bool))
    outs = []
    for h in range(NUM_HEADS):
        q = x @ wq[h]
        k = x @ wk[h]
        v = x @ wv[h]
        wei = (q @ jnp.swapaxes(k, -2, -1)) * scale
        wei = jnp.where(tril, wei, -jnp.inf)
        wei = jax.nn.softmax(wei, axis=-1)
        outs.append(wei @ v)
    cat = jnp.concatenate(outs, axis=-1)
    return cat @ wp + bp


if __name__ == "__main__":
    key = jax.random.PRNGKey(0)
    kx, kq, kk, kv, kp, kb = jax.random.split(key, 6)

    B, T = 8, 32   # small demo shapes; default batch_block -> 4 -> grid of 2 (feeds v7x's 2 TCs)

    x = jax.random.normal(kx, (B, T, N_EMBD), dtype=jnp.float32)
    # PyTorch Linear weight is (out, in); stored pre-transposed as (in, out) so kernel does x @ W.
    wq = 0.05 * jax.random.normal(kq, (NUM_HEADS, N_EMBD, HEAD_SIZE), dtype=jnp.float32)
    wk = 0.05 * jax.random.normal(kk, (NUM_HEADS, N_EMBD, HEAD_SIZE), dtype=jnp.float32)
    wv = 0.05 * jax.random.normal(kv, (NUM_HEADS, N_EMBD, HEAD_SIZE), dtype=jnp.float32)
    wp = 0.05 * jax.random.normal(kp, (N_EMBD, N_EMBD), dtype=jnp.float32)
    bp = 0.05 * jax.random.normal(kb, (N_EMBD,), dtype=jnp.float32)

    wqkv = fuse_qkv(wq, wk, wv)   # scale folded into Q columns

    # ---- f32 path: tight correctness check against the pure-JAX reference ----
    out = multi_head_attention(x, wqkv, wp, bp)
    out = jax.block_until_ready(out)
    ref = reference(x, wq, wk, wv, wp, bp)
    assert out.shape == (B, T, N_EMBD)
    assert jnp.allclose(out, ref, atol=1e-5, rtol=1e-5), "f32 mismatch vs reference"

    # ---- bf16 MXU-input fast path (v6e/v7x): loose check vs bf16-rounded reference ----
    # (scale is folded into the bf16 weights, so rounding order differs slightly from
    #  PyTorch's post-matmul scaling — within the stated tolerance.)
    bf = lambda a: a.astype(jnp.bfloat16)
    rnd = lambda a: a.astype(jnp.bfloat16).astype(jnp.float32)
    out_bf = multi_head_attention(bf(x), bf(wqkv), bf(wp), bf(bp))
    out_bf = jax.block_until_ready(out_bf)
    ref_bf = reference(rnd(x), rnd(wq), rnd(wk), rnd(wv), rnd(wp), rnd(bp))
    assert jnp.allclose(out_bf.astype(jnp.float32), ref_bf, atol=3e-2, rtol=3e-2), \
        "bf16 mismatch vs reference"

    print("KERNEL_OK")
</pallas_src>

<mosaic_0001>
module attributes {stable_mosaic.version = 11 : i64} {
  func.func @mha_kernel(%arg0: i32, %arg1: memref<4x32x64xf32, #tpu.memory_space<vmem>>, %arg2: memref<64x192xf32, #tpu.memory_space<vmem>>, %arg3: memref<64x64xf32, #tpu.memory_space<vmem>>, %arg4: memref<1x64xf32, #tpu.memory_space<vmem>>, %arg5: memref<4x32x64xf32, #tpu.memory_space<vmem>>) attributes {dimension_semantics = [#tpu.dimension_semantics<parallel>], iteration_bounds = array<i64: 2>, scalar_prefetch = 0 : i64, scratch_operands = 0 : i64, tpu.core_type = #tpu.core_type<tc>, window_params = [{transform_indices = @transform_0, window_bounds = array<i64: 4, 32, 64>}, {pipeline_mode = #tpu.pipeline_mode<synchronous>, transform_indices = @transform_1, window_bounds = array<i64: 64, 192>}, {pipeline_mode = #tpu.pipeline_mode<synchronous>, transform_indices = @transform_2, window_bounds = array<i64: 64, 64>}, {pipeline_mode = #tpu.pipeline_mode<synchronous>, transform_indices = @transform_3, window_bounds = array<i64: 1, 64>}, {transform_indices = @transform_4, window_bounds = array<i64: 4, 32, 64>}]} {
    %c0 = arith.constant 0 : index
    %c0_0 = arith.constant 0 : index
    %c0_1 = arith.constant 0 : index
    %0 = vector.load %arg1[%c0, %c0_0, %c0_1] : memref<4x32x64xf32, #tpu.memory_space<vmem>>, vector<4x32x64xf32>
    %1 = vector.shape_cast %0 : vector<4x32x64xf32> to vector<128x64xf32>
    %c0_2 = arith.constant 0 : index
    %c0_3 = arith.constant 0 : index
    %2 = vector.load %arg2[%c0_2, %c0_3] : memref<64x192xf32, #tpu.memory_space<vmem>>, vector<64x192xf32>
    %cst = arith.constant dense<0.000000e+00> : vector<128x192xf32>
    %3 = tpu.matmul %1, %2, %cst {dimension_numbers = #tpu.dot_dimension_numbers<[1], [0], [0], [1], [0, 0, 1, 1], [], []>} : vector<128x64xf32>, vector<64x192xf32>, vector<128x192xf32> -> vector<128x192xf32>
    %4 = vector.shape_cast %3 : vector<128x192xf32> to vector<4x32x192xf32>
    %5 = tpu.iota {dimensions = array<i32: 0>} : vector<32x32xi32>
    %6 = tpu.iota {dimensions = array<i32: 1>} : vector<32x32xi32>
    %7 = arith.cmpi sle, %6, %5 : vector<32x32xi32>
    %8 = vector.shape_cast %7 : vector<32x32xi1> to vector<1x32x32xi1>
    %c0_4 = arith.constant 0 : index
    %c0_5 = arith.constant 0 : index
    %9 = vector.load %arg3[%c0_4, %c0_5] : memref<64x64xf32, #tpu.memory_space<vmem>>, vector<64x64xf32>
    %c0_6 = arith.constant 0 : index
    %c0_7 = arith.constant 0 : index
    %10 = vector.load %arg4[%c0_6, %c0_7] : memref<1x64xf32, #tpu.memory_space<vmem>>, vector<1x64xf32>
    %11 = vector.extract_strided_slice %4 {offsets = [0, 0, 0], sizes = [4, 32, 16], strides = [1, 1, 1]} : vector<4x32x192xf32> to vector<4x32x16xf32>
    %12 = vector.extract_strided_slice %4 {offsets = [0, 0, 64], sizes = [4, 32, 16], strides = [1, 1, 1]} : vector<4x32x192xf32> to vector<4x32x16xf32>
    %13 = vector.extract_strided_slice %4 {offsets = [0, 0, 128], sizes = [4, 32, 16], strides = [1, 1, 1]} : vector<4x32x192xf32> to vector<4x32x16xf32>
    "tpu.trace_start"() <{level = 10 : i32, message = "bqd,bkd->bqk"}> : () -> ()
    %cst_8 = arith.constant dense<0.000000e+00> : vector<4x32x32xf32>
    %14 = tpu.matmul %11, %12, %cst_8 {dimension_numbers = #tpu.dot_dimension_numbers<[2], [2], [1], [1], [0, 0, 0, 1, 1, 1], [0], [0]>} : vector<4x32x16xf32>, vector<4x32x16xf32>, vector<4x32x32xf32> -> vector<4x32x32xf32>
    %cst_9 = arith.constant 0xFF800000 : f32
    "tpu.trace_stop"() : () -> ()
    %15 = vector.shape_cast %8 : vector<1x32x32xi1> to vector<1x32x32xi1>
    %16 = vector.broadcast %15 : vector<1x32x32xi1> to vector<4x32x32xi1>
    %17 = vector.broadcast %cst_9 : f32 to vector<4x32x32xf32>
    %18 = arith.select %16, %14, %17 : vector<4x32x32xi1>, vector<4x32x32xf32>
    %cst_10 = arith.constant dense<0xFF800000> : vector<4x32xf32>
    %19 = vector.multi_reduction <maximumf>, %18, %cst_10 [2] : vector<4x32x32xf32> to vector<4x32xf32>
    %20 = vector.shape_cast %19 : vector<4x32xf32> to vector<4x32x1xf32>
    %21 = vector.broadcast %20 : vector<4x32x1xf32> to vector<4x32x32xf32>
    %22 = arith.subf %18, %21 : vector<4x32x32xf32>
    %23 = math.exp %22 : vector<4x32x32xf32>
    %cst_11 = arith.constant dense<0.000000e+00> : vector<4x32xf32>
    %24 = vector.multi_reduction <add>, %23, %cst_11 [2] : vector<4x32x32xf32> to vector<4x32xf32>
    %25 = vector.shape_cast %24 : vector<4x32xf32> to vector<4x32x1xf32>
    "tpu.trace_start"() <{level = 10 : i32, message = "bqk,bkd->bqd"}> : () -> ()
    %cst_12 = arith.constant dense<0.000000e+00> : vector<4x32x16xf32>
    %26 = tpu.matmul %23, %13, %cst_12 {dimension_numbers = #tpu.dot_dimension_numbers<[2], [1], [1], [2], [0, 0, 0, 1, 1, 2], [0], [0]>} : vector<4x32x32xf32>, vector<4x32x16xf32>, vector<4x32x16xf32> -> vector<4x32x16xf32>
    "tpu.trace_stop"() : () -> ()
    %cst_13 = arith.constant 1.000000e+00 : f32
    %27 = vector.broadcast %cst_13 : f32 to vector<4x32x1xf32>
    %28 = arith.divf %27, %25 : vector<4x32x1xf32>
    %29 = vector.broadcast %28 : vector<4x32x1xf32> to vector<4x32x16xf32>
    %30 = arith.mulf %26, %29 : vector<4x32x16xf32>
    %31 = vector.shape_cast %30 : vector<4x32x16xf32> to vector<128x16xf32>
    %32 = vector.extract_strided_slice %9 {offsets = [0, 0], sizes = [16, 64], strides = [1, 1]} : vector<64x64xf32> to vector<16x64xf32>
    %cst_14 = arith.constant dense<0.000000e+00> : vector<128x64xf32>
    %33 = tpu.matmul %31, %32, %cst_14 {dimension_numbers = #tpu.dot_dimension_numbers<[1], [0], [0], [1], [0, 0, 1, 1], [], []>} : vector<128x16xf32>, vector<16x64xf32>, vector<128x64xf32> -> vector<128x64xf32>
    %34 = vector.broadcast %10 : vector<1x64xf32> to vector<128x64xf32>
    %35 = arith.addf %34, %33 : vector<128x64xf32>
    %36 = vector.extract_strided_slice %4 {offsets = [0, 0, 16], sizes = [4, 32, 16], strides = [1, 1, 1]} : vector<4x32x192xf32> to vector<4x32x16xf32>
    %37 = vector.extract_strided_slice %4 {offsets = [0, 0, 80], sizes = [4, 32, 16], strides = [1, 1, 1]} : vector<4x32x192xf32> to vector<4x32x16xf32>
    %38 = vector.extract_strided_slice %4 {offsets = [0, 0, 144], sizes = [4, 32, 16], strides = [1, 1, 1]} : vector<4x32x192xf32> to vector<4x32x16xf32>
    "tpu.trace_start"() <{level = 10 : i32, message = "bqd,bkd->bqk"}> : () -> ()
    %cst_15 = arith.constant dense<0.000000e+00> : vector<4x32x32xf32>
    %39 = tpu.matmul %36, %37, %cst_15 {dimension_numbers = #tpu.dot_dimension_numbers<[2], [2], [1], [1], [0, 0, 0, 1, 1, 1], [0], [0]>} : vector<4x32x16xf32>, vector<4x32x16xf32>, vector<4x32x32xf32> -> vector<4x32x32xf32>
    %cst_16 = arith.constant 0xFF800000 : f32
    "tpu.trace_stop"() : () -> ()
    %40 = vector.shape_cast %8 : vector<1x32x32xi1> to vector<1x32x32xi1>
    %41 = vector.broadcast %40 : vector<1x32x32xi1> to vector<4x32x32xi1>
    %42 = vector.broadcast %cst_16 : f32 to vector<4x32x32xf32>
    %43 = arith.select %41, %39, %42 : vector<4x32x32xi1>, vector<4x32x32xf32>
    %cst_17 = arith.constant dense<0xFF800000> : vector<4x32xf32>
    %44 = vector.multi_reduction <maximumf>, %43, %cst_17 [2] : vector<4x32x32xf32> to vector<4x32xf32>
    %45 = vector.shape_cast %44 : vector<4x32xf32> to vector<4x32x1xf32>
    %46 = vector.broadcast %45 : vector<4x32x1xf32> to vector<4x32x32xf32>
    %47 = arith.subf %43, %46 : vector<4x32x32xf32>
    %48 = math.exp %47 : vector<4x32x32xf32>
    %cst_18 = arith.constant dense<0.000000e+00> : vector<4x32xf32>
    %49 = vector.multi_reduction <add>, %48, %cst_18 [2] : vector<4x32x32xf32> to vector<4x32xf32>
    %50 = vector.shape_cast %49 : vector<4x32xf32> to vector<4x32x1xf32>
    "tpu.trace_start"() <{level = 10 : i32, message = "bqk,bkd->bqd"}> : () -> ()
    %cst_19 = arith.constant dense<0.000000e+00> : vector<4x32x16xf32>
    %51 = tpu.matmul %48, %38, %cst_19 {dimension_numbers = #tpu.dot_dimension_numbers<[2], [1], [1], [2], [0, 0, 0, 1, 1, 2], [0], [0]>} : vector<4x32x32xf32>, vector<4x32x16xf32>, vector<4x32x16xf32> -> vector<4x32x16xf32>
    "tpu.trace_stop"() : () -> ()
    %cst_20 = arith.constant 1.000000e+00 : f32
    %52 = vector.broadcast %cst_20 : f32 to vector<4x32x1xf32>
    %53 = arith.divf %52, %50 : vector<4x32x1xf32>
    %54 = vector.broadcast %53 : vector<4x32x1xf32> to vector<4x32x16xf32>
    %55 = arith.mulf %51, %54 : vector<4x32x16xf32>
    %56 = vector.shape_cast %55 : vector<4x32x16xf32> to vector<128x16xf32>
    %57 = vector.extract_strided_slice %9 {offsets = [16, 0], sizes = [16, 64], strides = [1, 1]} : vector<64x64xf32> to vector<16x64xf32>
    %cst_21 = arith.constant dense<0.000000e+00> : vector<128x64xf32>
    %58 = tpu.matmul %56, %57, %cst_21 {dimension_numbers = #tpu.dot_dimension_numbers<[1], [0], [0], [1], [0, 0, 1, 1], [], []>} : vector<128x16xf32>, vector<16x64xf32>, vector<128x64xf32> -> vector<128x64xf32>
    %59 = arith.addf %35, %58 : vector<128x64xf32>
    %60 = vector.extract_strided_slice %4 {offsets = [0, 0, 32], sizes = [4, 32, 16], strides = [1, 1, 1]} : vector<4x32x192xf32> to vector<4x32x16xf32>
    %61 = vector.extract_strided_slice %4 {offsets = [0, 0, 96], sizes = [4, 32, 16], strides = [1, 1, 1]} : vector<4x32x192xf32> to vector<4x32x16xf32>
    %62 = vector.extract_strided_slice %4 {offsets = [0, 0, 160], sizes = [4, 32, 16], strides = [1, 1, 1]} : vector<4x32x192xf32> to vector<4x32x16xf32>
    "tpu.trace_start"() <{level = 10 : i32, message = "bqd,bkd->bqk"}> : () -> ()
    %cst_22 = arith.constant dense<0.000000e+00> : vector<4x32x32xf32>
    %63 = tpu.matmul %60, %61, %cst_22 {dimension_numbers = #tpu.dot_dimension_numbers<[2], [2], [1], [1], [0, 0, 0, 1, 1, 1], [0], [0]>} : vector<4x32x16xf32>, vector<4x32x16xf32>, vector<4x32x32xf32> -> vector<4x32x32xf32>
    %cst_23 = arith.constant 0xFF800000 : f32
    "tpu.trace_stop"() : () -> ()
    %64 = vector.shape_cast %8 : vector<1x32x32xi1> to vector<1x32x32xi1>
    %65 = vector.broadcast %64 : vector<1x32x32xi1> to vector<4x32x32xi1>
    %66 = vector.broadcast %cst_23 : f32 to vector<4x32x32xf32>
    %67 = arith.select %65, %63, %66 : vector<4x32x32xi1>, vector<4x32x32xf32>
    %cst_24 = arith.constant dense<0xFF800000> : vector<4x32xf32>
    %68 = vector.multi_reduction <maximumf>, %67, %cst_24 [2] : vector<4x32x32xf32> to vector<4x32xf32>
    %69 = vector.shape_cast %68 : vector<4x32xf32> to vector<4x32x1xf32>
    %70 = vector.broadcast %69 : vector<4x32x1xf32> to vector<4x32x32xf32>
    %71 = arith.subf %67, %70 : vector<4x32x32xf32>
    %72 = math.exp %71 : vector<4x32x32xf32>
    %cst_25 = arith.constant dense<0.000000e+00> : vector<4x32xf32>
    %73 = vector.multi_reduction <add>, %72, %cst_25 [2] : vector<4x32x32xf32> to vector<4x32xf32>
    %74 = vector.shape_cast %73 : vector<4x32xf32> to vector<4x32x1xf32>
    "tpu.trace_start"() <{level = 10 : i32, message = "bqk,bkd->bqd"}> : () -> ()
    %cst_26 = arith.constant dense<0.000000e+00> : vector<4x32x16xf32>
    %75 = tpu.matmul %72, %62, %cst_26 {dimension_numbers = #tpu.dot_dimension_numbers<[2], [1], [1], [2], [0, 0, 0, 1, 1, 2], [0], [0]>} : vector<4x32x32xf32>, vector<4x32x16xf32>, vector<4x32x16xf32> -> vector<4x32x16xf32>
    "tpu.trace_stop"() : () -> ()
    %cst_27 = arith.constant 1.000000e+00 : f32
    %76 = vector.broadcast %cst_27 : f32 to vector<4x32x1xf32>
    %77 = arith.divf %76, %74 : vector<4x32x1xf32>
    %78 = vector.broadcast %77 : vector<4x32x1xf32> to vector<4x32x16xf32>
    %79 = arith.mulf %75, %78 : vector<4x32x16xf32>
    %80 = vector.shape_cast %79 : vector<4x32x16xf32> to vector<128x16xf32>
    %81 = vector.extract_strided_slice %9 {offsets = [32, 0], sizes = [16, 64], strides = [1, 1]} : vector<64x64xf32> to vector<16x64xf32>
    %cst_28 = arith.constant dense<0.000000e+00> : vector<128x64xf32>
    %82 = tpu.matmul %80, %81, %cst_28 {dimension_numbers = #tpu.dot_dimension_numbers<[1], [0], [0], [1], [0, 0, 1, 1], [], []>} : vector<128x16xf32>, vector<16x64xf32>, vector<128x64xf32> -> vector<128x64xf32>
    %83 = arith.addf %59, %82 : vector<128x64xf32>
    %84 = vector.extract_strided_slice %4 {offsets = [0, 0, 48], sizes = [4, 32, 16], strides = [1, 1, 1]} : vector<4x32x192xf32> to vector<4x32x16xf32>
    %85 = vector.extract_strided_slice %4 {offsets = [0, 0, 112], sizes = [4, 32, 16], strides = [1, 1, 1]} : vector<4x32x192xf32> to vector<4x32x16xf32>
    %86 = vector.extract_strided_slice %4 {offsets = [0, 0, 176], sizes = [4, 32, 16], strides = [1, 1, 1]} : vector<4x32x192xf32> to vector<4x32x16xf32>
    "tpu.trace_start"() <{level = 10 : i32, message = "bqd,bkd->bqk"}> : () -> ()
    %cst_29 = arith.constant dense<0.000000e+00> : vector<4x32x32xf32>
    %87 = tpu.matmul %84, %85, %cst_29 {dimension_numbers = #tpu.dot_dimension_numbers<[2], [2], [1], [1], [0, 0, 0, 1, 1, 1], [0], [0]>} : vector<4x32x16xf32>, vector<4x32x16xf32>, vector<4x32x32xf32> -> vector<4x32x32xf32>
    %cst_30 = arith.constant 0xFF800000 : f32
    "tpu.trace_stop"() : () -> ()
    %88 = vector.shape_cast %8 : vector<1x32x32xi1> to vector<1x32x32xi1>
    %89 = vector.broadcast %88 : vector<1x32x32xi1> to vector<4x32x32xi1>
    %90 = vector.broadcast %cst_30 : f32 to vector<4x32x32xf32>
    %91 = arith.select %89, %87, %90 : vector<4x32x32xi1>, vector<4x32x32xf32>
    %cst_31 = arith.constant dense<0xFF800000> : vector<4x32xf32>
    %92 = vector.multi_reduction <maximumf>, %91, %cst_31 [2] : vector<4x32x32xf32> to vector<4x32xf32>
    %93 = vector.shape_cast %92 : vector<4x32xf32> to vector<4x32x1xf32>
    %94 = vector.broadcast %93 : vector<4x32x1xf32> to vector<4x32x32xf32>
    %95 = arith.subf %91, %94 : vector<4x32x32xf32>
    %96 = math.exp %95 : vector<4x32x32xf32>
    %cst_32 = arith.constant dense<0.000000e+00> : vector<4x32xf32>
    %97 = vector.multi_reduction <add>, %96, %cst_32 [2] : vector<4x32x32xf32> to vector<4x32xf32>
    %98 = vector.shape_cast %97 : vector<4x32xf32> to vector<4x32x1xf32>
    "tpu.trace_start"() <{level = 10 : i32, message = "bqk,bkd->bqd"}> : () -> ()
    %cst_33 = arith.constant dense<0.000000e+00> : vector<4x32x16xf32>
    %99 = tpu.matmul %96, %86, %cst_33 {dimension_numbers = #tpu.dot_dimension_numbers<[2], [1], [1], [2], [0, 0, 0, 1, 1, 2], [0], [0]>} : vector<4x32x32xf32>, vector<4x32x16xf32>, vector<4x32x16xf32> -> vector<4x32x16xf32>
    "tpu.trace_stop"() : () -> ()
    %cst_34 = arith.constant 1.000000e+00 : f32
    %100 = vector.broadcast %cst_34 : f32 to vector<4x32x1xf32>
    %101 = arith.divf %100, %98 : vector<4x32x1xf32>
    %102 = vector.broadcast %101 : vector<4x32x1xf32> to vector<4x32x16xf32>
    %103 = arith.mulf %99, %102 : vector<4x32x16xf32>
    %104 = vector.shape_cast %103 : vector<4x32x16xf32> to vector<128x16xf32>
    %105 = vector.extract_strided_slice %9 {offsets = [48, 0], sizes = [16, 64], strides = [1, 1]} : vector<64x64xf32> to vector<16x64xf32>
    %cst_35 = arith.constant dense<0.000000e+00> : vector<128x64xf32>
    %106 = tpu.matmul %104, %105, %cst_35 {dimension_numbers = #tpu.dot_dimension_numbers<[1], [0], [0], [1], [0, 0, 1, 1], [], []>} : vector<128x16xf32>, vector<16x64xf32>, vector<128x64xf32> -> vector<128x64xf32>
    %107 = arith.addf %83, %106 : vector<128x64xf32>
    %108 = vector.shape_cast %107 : vector<128x64xf32> to vector<4x32x64xf32>
    %c0_36 = arith.constant 0 : index
    %c0_37 = arith.constant 0 : index
    %c0_38 = arith.constant 0 : index
    %109 = vector.load %arg5[%c0_36, %c0_37, %c0_38] : memref<4x32x64xf32, #tpu.memory_space<vmem>>, vector<4x32x64xf32>
    tpu.vector_store %arg5[%c0_36, %c0_37, %c0_38], %108 {strides = array<i32>} : memref<4x32x64xf32, #tpu.memory_space<vmem>>, vector<4x32x64xf32>,
    return
  }
  func.func @transform_0(%arg0: i32) -> (i32, i32, i32) {
    %c0_i32 = arith.constant 0 : i32
    %c0_i32_0 = arith.constant 0 : i32
    %c0_i32_1 = arith.constant 0 : i32
    return %arg0, %c0_i32, %c0_i32_0 : i32, i32, i32
  }
  func.func @transform_1(%arg0: i32) -> (i32, i32) {
    %c0_i32 = arith.constant 0 : i32
    %c0_i32_0 = arith.constant 0 : i32
    %c0_i32_1 = arith.constant 0 : i32
    return %c0_i32, %c0_i32_0 : i32, i32
  }
  func.func @transform_2(%arg0: i32) -> (i32, i32) {
    %c0_i32 = arith.constant 0 : i32
    %c0_i32_0 = arith.constant 0 : i32
    %c0_i32_1 = arith.constant 0 : i32
    return %c0_i32, %c0_i32_0 : i32, i32
  }
  func.func @transform_3(%arg0: i32) -> (i32, i32) {
    %c0_i32 = arith.constant 0 : i32
    %c0_i32_0 = arith.constant 0 : i32
    %c0_i32_1 = arith.constant 0 : i32
    return %c0_i32, %c0_i32_0 : i32, i32
  }
  func.func @transform_4(%arg0: i32) -> (i32, i32, i32) {
    %c0_i32 = arith.constant 0 : i32
    %c0_i32_0 = arith.constant 0 : i32
    %c0_i32_1 = arith.constant 0 : i32
    return %arg0, %c0_i32, %c0_i32_0 : i32, i32, i32
  }
}

</mosaic_0001>

<bundles_post_ra>
// kernel: tpu_custom_call.1
= control target key start
LH: loop header
LB: loop body
LE: loop exit
PB: predicated region body
PF: predicated region fallthrough
CT: control target
= control target key end

     0   :  { %9 = vsyncpa [#allocation3], 0  ;;  %s9456_s0 = inlined_call_operand.hbm [shape: f32[8,32,64], index: 0, kind: input, shape index: {}]   ;;  %s9457_s1 = inlined_call_operand.hbm [shape: f32[64,192], index: 1, kind: input, shape index: {}]   ;;  %s9458_s2 = inlined_call_operand.hbm [shape: f32[64,64], index: 2, kind: input, shape index: {}]   ;;  %s9459_s3 = inlined_call_operand.vmem [shape: f32[1,64], index: 3, kind: input, shape index: {}]   ;;  %s9460_s4 = inlined_call_operand.hbm [shape: f32[8,32,64], index: 4, kind: output, shape index: {}]  }
   0x1   :  { %11 = vsyncpa [#allocation3 + $0x1], 0 }
   0x2   :  { %12 = vsyncpa [#allocation6], 0 }
   0x3   :  { %13 = vsyncpa [#allocation4], 0 }
   0x4   :  { %15 = vsyncpa [#allocation4 + $0x1], 0  ;;  %s7617_s15 = smov 0   ;;  %s7619_s16 = smov 0  }
   0x5   :  { %s7621_s17 = smov 0   ;;  %s7623_s18 = smov 0  }
   0x6 LB: > { %s7638_s19 = sadd.s32 4294967295, %s7572_s18   ;;  %s5885_s20 = sadd.s32 4294967294, %s7572_s18   ;;  %s7572_s18 = sphi %s7623_s18, %s9589_s18   ;;  %s7568_s17 = sphi %s7621_s17, %s9588_s17   ;;  %s7564_s16 = sphi %s7619_s16, %s9587_s16   ;;  %s7560_s15 = sphi %s7617_s15, %s9586_s15  }
   0x7   : > { %p41_p0 = scmp.ne.s32.totalorder %s7564_s16, %s7560_s15  ;;  %p9461_p1 = scmp.eq.s32.totalorder %s7638_s19, 0 }
   0x8   : > { %p134_p3 = scmp.eq.s32.totalorder %s5885_s20, 1  ;;  %p5886_p5 = scmp.ge.s32.totalorder %s7572_s18, 1 }
   0x9   : > { %p7647_p4 = por %p9461_p1, %p41_p0  ;;  %p141_p7 = scmp.lt.s32.totalorder %s7572_s18, 3 }
   0xa   : > { %p7652_p6 = por %p134_p3, %p41_p0  ;;  %s7574_s24 = smov [#allocation5]  }
   0xb   : > { %s9488_s21 = scalar_select %p7647_p4, 1, 0 }
   0xc   : > { %s9489_s22 = scalar_select %p7652_p6, 1, 0 }
   0xd   : > { %p7657_p8 = pnand %p5886_p5, %p141_p7  ;;  %s153_s25 = sshll.u32 %s7574_s24, 4  ;;  %s154_s25 = int_to_ptr.vmem [resolvable:$true] %s153_s25 }
   0xe   : > { %s7575_s27 = smov [#allocation7]   ;;  %s7435_s29 = scalar_lea.vmem %s154_s25, 2048 }
   0xf   : > { %s9490_s23 = scalar_select %p7657_p8, 1, 0 }
  0x10   : > { %p7098_p9 = pneg %p7657_p8  ;;  %s166_s28 = sshll.u32 %s7575_s27, 4  ;;  %s167_s28 = int_to_ptr.vmem [resolvable:$true] %s166_s28 }
  0x11   : > { %p7436_p13 = scmp.ne.s32.totalorder %s154_s25, %s7435_s29  ;;  %p7443_p5 = scmp.lt.s32.totalorder %s154_s25, %s154_s25 }
  0x12   : > { %p7666_p11 = pnand %p7098_p9, %p9461_p1  ;;  %p7444_p7 = scmp.lt.s32.totalorder %s7435_s29, %s7435_s29 }
  0x14   : > { %p7426_p12 = pneg %p7666_p11  ;;  %p7445_p10 = por %p7444_p7, %p7443_p5 }
  0x16   : > { %p7438_p0 = pnand %p7436_p13, %p7426_p12 }
  0x18   : > { %p7439_p3 = pneg %p7438_p0 }
  0x1a   : > { %p7446_p9 = pnand %p7445_p10, %p7439_p3 }
  0x1c   : > { %7449 = shalt.err (!%p7446_p9)
}
  0x1d   : > { %s7576_s30 = smov 256   ;;  %s7577_s5 = smov 16  }
  0x1e   : > { %7101 = dma.hbm_to_vmem [thread:$0]  (!%p7666_p11), %s9457_s1, 2048, %s154_s25, [#allocation6], %s7576_s30, %s7576_s30, %s7577_s5  }
  0x1f   : > { %s7461_s8 = scalar_lea.vmem %s167_s28, 1024  ;;  %p7469_p2 = scmp.lt.s32.totalorder %s167_s28, %s167_s28 }
  0x20   : > { %p7462_p1 = scmp.ne.s32.totalorder %s167_s28, %s7461_s8  ;;  %p7470_p6 = scmp.lt.s32.totalorder %s7461_s8, %s7461_s8 }
  0x22   : > { %p7464_p13 = pnand %p7462_p1, %p7426_p12  ;;  %p7471_p5 = por %p7470_p6, %p7469_p2 }
  0x24   : > { %p7465_p0 = pneg %p7464_p13 }
  0x26   : > { %p7472_p10 = pnand %p7471_p5, %p7465_p0 }
  0x28   : > { %7475 = shalt.err (!%p7472_p10)
}
  0x29   : > { %s7578_s9 = smov 128   ;;  %s7579_s10 = smov 8  }
  0x2a   : > { %7104 = dma.hbm_to_vmem [thread:$0]  (!%p7666_p11), %s9458_s2, 1024, %s167_s28, [#allocation6], %s7578_s9, %s7578_s9, %s7579_s10  }
  0x2b   : > { %s7692_s13 = sadd.s32 1, %s7572_s18   ;;  %s28_s20 = sadd.s32 1, %s7568_s17 }
  0x2c   : > { %s25_s14 = ssub.s32 %s7572_s18, %s7692_s13  ;;  %p35_p2 = scmp.ne.s32.totalorder %s7568_s17, %s7564_s16 }
  0x2d   : > { %p26_p1 = scmp.eq.s32.totalorder %s25_s14, 0  ;;  %p36_p6 = scmp.eq.s32.totalorder %s7572_s18, 0 }
  0x2e   : > { %p9492_p3 = scmp.eq.s32.totalorder %s7638_s19, 1  ;;  %p7115_p9 = scmp.lt.s32.totalorder %s7572_s18, 2 }
  0x2f   : > { %s7701_s24 = scalar_select %p26_p1, %s7568_s17, %s28_s20  }
  0x30   : > { %p37_p12 = por %p36_p6, %p35_p2  ;;  %p7705_p7 = por %p9492_p3, %p35_p2 }
  0x31   : > { %s183_s26 = sand.u32 1, %s7568_s17   ;;  %s6179_s28 = sshll.u32 %s7572_s18, 11 }
  0x32   : > { %s9493_s25 = scalar_select %p7705_p7, 1, 0 }
  0x33   : > { %s5890_s27 = sshll.u32 %s183_s26, 7  ;;  %s7715_s5 = scalar_lea.hbm %s9456_s0, %s6179_s28 }
  0x34   : > { %s187_s6 = scalar_lea.vmem [#allocation2], %s5890_s27  ;;  %p7719_p11 = pnand %p7115_p9, %p37_p12 }
  0x35   : > { %s195_s7 = sshll.u32 %s187_s6, 4  ;;  %s7723_s11 = scalar_lea.sflag [#allocation3], %s183_s26  ;;  %s7717_s7 = int_to_ptr.vmem [resolvable:$true] %s195_s7 }
  0x36   : > { %s7476_s12 = scalar_lea.hbm %s7715_s5, 2048  ;;  %p7478_p0 = pneg %p7719_p11 }
  0x37   : > { %p7477_p13 = scmp.ne.s32.totalorder %s7715_s5, %s7476_s12  ;;  %s7481_s27 = scalar_lea.hbm %s9456_s0, 4096 }
  0x38   : > { %p7482_p1 = scmp.lt.s32.totalorder %s7715_s5, %s9456_s0  ;;  %p7483_p2 = scmp.lt.s32.totalorder %s7481_s27, %s7476_s12 }
  0x39   : > { %p7479_p5 = pnand %p7478_p0, %p7477_p13 }
  0x3a   : > { %p7484_p6 = por %p7483_p2, %p7482_p1 }
  0x3b   : > { %p7480_p10 = pneg %p7479_p5 }
  0x3d   : > { %p7485_p12 = pnand %p7484_p6, %p7480_p10 }
  0x3f   : > { %7488 = shalt.err (!%p7485_p12)
}
  0x40   : > { %s7489_s26 = scalar_lea.vmem %s7717_s7, 2048  ;;  %s7580_s30 = smov [#allocation2]  }
  0x41   : > { %p7490_p3 = scmp.ne.s32.totalorder %s7717_s7, %s7489_s26  ;;  %s7494_s6 = sshll.u32 %s7580_s30, 4  ;;  %s7495_s6 = int_to_ptr.vmem [resolvable:$false] %s7494_s6 }
  0x42   : > { %s7496_s14 = scalar_lea.vmem %s7495_s6, 4096  ;;  %p7497_p5 = scmp.lt.s32.totalorder %s7717_s7, %s7495_s6 }
  0x43   : > { %p7492_p9 = pnand %p7490_p3, %p7478_p0  ;;  %p7498_p7 = scmp.lt.s32.totalorder %s7496_s14, %s7489_s26 }
  0x45   : > { %p7493_p13 = pneg %p7492_p9  ;;  %p7499_p4 = por %p7498_p7, %p7497_p5 }
  0x47   : > { %p7500_p8 = pnand %p7499_p4, %p7493_p13 }
  0x49   : > { %7503 = shalt.err (!%p7500_p8)
}
  0x4a   : > { %7108 = dma.hbm_to_vmem [thread:$0]  (!%p7719_p11), %s7715_s5, 2048, %s7717_s7, %s7723_s11, %s7578_s9, %s7578_s9, %s7579_s10  }
  0x4b   : > { %p9495_p0 = scmp.ne.s32.totalorder %s9490_s23, 0 }
  0x4d   : > { %207 = sbr.rel (%p9495_p0) target bundleno = 3253 (0xcb5), region = 36 }
  0x52   : > { %s7750_s12 = sand.u32 1, %s7564_s16   ;;  %p9496_p4 = scmp.ne.s32.totalorder %s9488_s21, 0 }
  0x53   : > { %s5895_s20 = sshll.u32 %s7750_s12, 7  ;;  %s210_s27 = scalar_lea.sflag [#allocation3], %s7750_s12 }
  0x54   : > { %s7756_s8 = scalar_lea.vmem [#allocation2], %s5895_s20 }
  0x55   : > { %7547 = dma.done.wait (%p9496_p4), %s210_s27, 2048  }
  0x56   : > { %7549 = vsyncadd (%p9496_p4), %s210_s27, 4294965248  ;;  %p9497_p8 = scmp.eq.s32.totalorder %s7638_s19, 0 }
  0x58   : > { %7551 = dma.done.wait (%p9497_p8), [#allocation6], 3072   ;;  %p9498_p7 = pmov %p9497_p8 }
  0x59   : > { %v7581_v0 = vmov 0.0   ;;  %v279_v1 = vld [vmem:[#allocation5 + $0x78] sm:$0xff]  ;;  %v278_v2 = vld [vmem:[#allocation5 + $0x70] sm:$0xff]  ;;  %v277_v3 = vld [vmem:[#allocation5 + $0x68] sm:$0xff]  ;;  %vm280_vm0 = vcmask 523264   ;;  %vm522_vm1 = vcmask 130048  }
  0x5a   : > { %7553 = vsyncadd (%p9498_p7), [#allocation6], 4294964224  ;;  %393 = vmatprep.mubr.f32.mxu0 %v7581_v0  ;;  %465 = vmatprep.mubr.f32.mxu1 %v7581_v0  ;;  %v276_v4 = vld [vmem:[#allocation5 + $0x60] sm:$0xff]  ;;  %v275_v5 = vld [vmem:[#allocation5 + $0x58] sm:$0xff]  ;;  %s7582_s21 = smov 64   ;;  %vm987_vm3 = vcmask 261120  }
  0x5b   : > { %345 = vmatprep.subr.mxu0 %v279_v1  ;;  %7070 = vmatprep.subr.mxu1 %v279_v1  ;;  %v274_v6 = vld [vmem:[#allocation5 + $0x50] sm:$0xff]  ;;  %v273_v7 = vld [vmem:[#allocation5 + $0x48] sm:$0xff]  ;;  %v272_v8 = vld [vmem:[#allocation5 + $0x40] sm:$0xff]  ;;  %s7583_s23 = smov 48   ;;  %s7584_s9 = smov 112  }
  0x5c   : > { %346 = vmatpush1.msra.mxu0 %v278_v2  ;;  %7078 = vmatpush1.msra.mxu1 %v278_v2  ;;  %v271_v9 = vld [vmem:[#allocation5 + $0x38] sm:$0xff]  ;;  %v270_v10 = vld [vmem:[#allocation5 + $0x30] sm:$0xff]  ;;  %v269_v11 = vld [vmem:[#allocation5 + $0x28] sm:$0xff]  ;;  %s7585_s7 = smov 32   ;;  %s7586_s11 = smov 96  }
  0x5d   : > { %347 = vmatprep.subr.mxu0 %v277_v3  ;;  %7071 = vmatprep.subr.mxu1 %v277_v3  ;;  %v268_v12 = vld [vmem:[#allocation5 + $0x20] sm:$0xff]  ;;  %v267_v13 = vld [vmem:[#allocation5 + $0x18] sm:$0xff]  ;;  %v266_v14 = vld [vmem:[#allocation5 + $0x10] sm:$0xff]  ;;  %s7587_s28 = smov 16   ;;  %s7588_s29 = smov 80  }
  0x5e   : > { %348 = vmatpush1.msra.mxu0 %v276_v4  ;;  %7079 = vmatpush1.msra.mxu1 %v276_v4  ;;  %v265_v15 = vld [vmem:[#allocation5 + $0x8] sm:$0xff]  ;;  %v264_v16 = vld [vmem:[#allocation5] sm:$0xff]  ;;  %v250_v21 = vld [vmem:[%s7756_s8 + $0x10] sm:$0xff]  ;;  %s9352_s26 = scalar_lea.vmem [#allocation8], %s5895_s20  ;;  %s6181_s14 = sshll.u32 %s7638_s19, 11 }
  0x5f   : > { %349 = vmatprep.subr.mxu0 %v275_v5  ;;  %7072 = vmatprep.subr.mxu1 %v275_v5  ;;  %v248_v17 = vld [vmem:[%s7756_s8] sm:$0xff]  ;;  %v249_v19 = vld [vmem:[%s7756_s8 + $0x8] sm:$0xff]  ;;  %v262_v22 = vld [vmem:[%s7756_s8 + $0x70] sm:$0xff]  ;;  %s5793_s20 = sshll.u32 %s9352_s26, 4  ;;  %s5779_s19 = scalar_lea.sflag [#allocation4], %s7750_s12  ;;  %s9408_s20 = int_to_ptr.vmem [resolvable:$true] %s5793_s20 }
  0x60   : > { %350 = vmatpush1.msra.mxu0 %v274_v6  ;;  %7080 = vmatpush1.msra.mxu1 %v274_v6  ;;  %v260_v18 = vld [vmem:[%s7756_s8 + $0x60] sm:$0xff]  ;;  %v261_v20 = vld [vmem:[%s7756_s8 + $0x68] sm:$0xff]  ;;  %v251_v23 = vld [vmem:[%s7756_s8 + $0x18] sm:$0xff]  ;;  %p9583_p10 = scmp.ne.s32.totalorder %s9493_s25, 0 }
  0x61   : > { %351 = vmatprep.subr.mxu0 %v273_v7  ;;  %7073 = vmatprep.subr.mxu1 %v273_v7  ;;  %v263_v24 = vld [vmem:[%s7756_s8 + $0x78] sm:$0xff]  ;;  %v252_v25 = vld [vmem:[%s7756_s8 + $0x20] sm:$0xff]  ;;  %v253_v26 = vld [vmem:[%s7756_s8 + $0x28] sm:$0xff] }
  0x62   : > { %352 = vmatpush1.msra.mxu0 %v272_v8  ;;  %7081 = vmatpush1.msra.mxu1 %v272_v8  ;;  %v254_v27 = vld [vmem:[%s7756_s8 + $0x30] sm:$0xff]  ;;  %v255_v28 = vld [vmem:[%s7756_s8 + $0x38] sm:$0xff]  ;;  %v256_v29 = vld [vmem:[%s7756_s8 + $0x40] sm:$0xff] }
  0x63   : > { %353 = vmatprep.subr.mxu0 %v271_v9  ;;  %7074 = vmatprep.subr.mxu1 %v271_v9  ;;  %v257_v30 = vld [vmem:[%s7756_s8 + $0x48] sm:$0xff]  ;;  %v258_v31 = vld [vmem:[%s7756_s8 + $0x50] sm:$0xff]  ;;  %v259_v32 = vld [vmem:[%s7756_s8 + $0x58] sm:$0xff] }
  0x64   : > { %354 = vmatpush1.msra.mxu0 %v270_v10  ;;  %7082 = vmatpush1.msra.mxu1 %v270_v10 }
  0x65   : > { %355 = vmatprep.subr.mxu0 %v269_v11  ;;  %7075 = vmatprep.subr.mxu1 %v269_v11 }
  0x66   : > { %356 = vmatpush1.msra.mxu0 %v268_v12  ;;  %7083 = vmatpush1.msra.mxu1 %v268_v12 }
  0x67   : > { %357 = vmatprep.subr.mxu0 %v267_v13  ;;  %7076 = vmatprep.subr.mxu1 %v267_v13 }
  0x68   : > { %358 = vmatpush1.msra.mxu0 %v266_v14  ;;  %7084 = vmatpush1.msra.mxu1 %v266_v14 }
  0x69   : > { %359 = vmatprep.subr.mxu0 %v265_v15  ;;  %7077 = vmatprep.subr.mxu1 %v265_v15 }
  0x6a   : > { %360 = vmatpush1.msra.mxu0 %v264_v16  ;;  %7085 = vmatpush1.msra.mxu1 %v264_v16 }
  0x6b   : > { %5899 = vmatmul.mubr.msk.f32.vlgmr.msra.gmra.mxu0 %vm280_vm0, %v248_v17  ;;  %5911 = vmatmul.mubr.msk.f32.vlgmr.msra.gmra.mxu1 %vm280_vm0, %v260_v18  ;;  %v490_v17 = vlaneseq }
  0x6c   : > { %399 = vmatprep.mubr.f32.mxu0 %v7581_v0  ;;  %471 = vmatprep.mubr.f32.mxu1 %v7581_v0 }
  0x6d   : > { %v491_v18 = vshrl.u32 %v490_v17, 7 }
  0x6f   : > { %5900 = vmatmul.mubr.msk.f32.gmra.mxu0 %vm280_vm0, %v249_v19  ;;  %5912 = vmatmul.mubr.msk.f32.gmra.mxu1 %vm280_vm0, %v261_v20  ;;  %v492_v19 = vadd.s32 8, %v491_v18  ;;  %v496_v20 = vand.u32 127, %v490_v17 }
  0x70   : > { %405 = vmatprep.mubr.f32.mxu0 %v7581_v0  ;;  %477 = vmatprep.mubr.f32.mxu1 %v7581_v0 }
  0x71   : > { %vm7992_vm2 = vcmp.le.s32.totalorder %v496_v20, %v492_v19  ;;  %vm7996_vm4 = vcmp.le.s32.totalorder %v496_v20, %v491_v18 }
  0x73   : > { %5901 = vmatmul.mubr.msk.f32.gmra.mxu0 %vm280_vm0, %v250_v21  ;;  %5913 = vmatmul.mubr.msk.f32.gmra.mxu1 %vm280_vm0, %v262_v22 }
  0x74   : > { %411 = vmatprep.mubr.f32.mxu0 %v7581_v0  ;;  %483 = vmatprep.mubr.f32.mxu1 %v7581_v0 }
  0x77   : > { %5902 = vmatmul.mubr.msk.f32.gmra.mxu0 %vm280_vm0, %v251_v23  ;;  %5914 = vmatmul.mubr.msk.f32.gmra.mxu1 %vm280_vm0, %v263_v24  ;;  %v493_v24 = vadd.s32 16, %v491_v18 }
  0x78   : > { %417 = vmatprep.mubr.f32.mxu0 %v7581_v0 }
  0x79   : > { %vm8012_vm5 = vcmp.le.s32.totalorder %v496_v20, %v493_v24 }
  0x7b   : > { %5903 = vmatmul.mubr.msk.f32.gmra.mxu0 %vm280_vm0, %v252_v25 }
  0x7c   : > { %423 = vmatprep.mubr.f32.mxu0 %v7581_v0 }
  0x7f   : > { %5904 = vmatmul.mubr.msk.f32.gmra.mxu0 %vm280_vm0, %v253_v26 }
  0x80   : > { %429 = vmatprep.mubr.f32.mxu0 %v7581_v0 }
  0x83   : > { %5905 = vmatmul.mubr.msk.f32.gmra.mxu0 %vm280_vm0, %v254_v27 }
  0x84   : > { %435 = vmatprep.mubr.f32.mxu0 %v7581_v0 }
  0x87   : > { %5906 = vmatmul.mubr.msk.f32.gmra.mxu0 %vm280_vm0, %v255_v28  ;;  %v494_v28 = vadd.s32 24, %v491_v18 }
  0x88   : > { %441 = vmatprep.mubr.f32.mxu0 %v7581_v0 }
  0x89   : > { %vm8016_vm6 = vcmp.le.s32.totalorder %v496_v20, %v494_v28 }
  0x8b   : > { %5907 = vmatmul.mubr.msk.f32.gmra.mxu0 %vm280_vm0, %v256_v29 }
  0x8c   : > { %447 = vmatprep.mubr.f32.mxu0 %v7581_v0 }
  0x8f   : > { %5908 = vmatmul.mubr.msk.f32.gmra.mxu0 %vm280_vm0, %v257_v30 }
  0x90   : > { %453 = vmatprep.mubr.f32.mxu0 %v7581_v0 }
  0x93   : > { %5909 = vmatmul.mubr.msk.f32.gmra.mxu0 %vm280_vm0, %v258_v31 }
  0x94   : > { %459 = vmatprep.mubr.f32.mxu0 %v7581_v0 }
  0x97   : > { %5910 = vmatmul.mubr.msk.f32.gmra.mxu0 %vm280_vm0, %v259_v32  ;;  %v9520_v32 = vmov 0 }
  0x98   : > { %v9521_v32 = vsel %vm8012_vm5, 4294967295, %v9520_v32 }
  0x99   : > { %9522 = vst [vmem:[#allocation29_spill] sm:$0xff] %v9521_v32 }
 0x12b   : > { %v7814_v33 = vpop.f32.mrf.mxu0  ;;  %v7832_v39 = vpop.f32.mrf.mxu1 }
 0x12c   : > { %6518 = vmatprep.mubr.msk.f32.mxu1 %vm522_vm1, %v7814_v33 }
 0x12d   : > { %v7818_v34 = vpop.f32.mrf.mxu0  ;;  %v7840_v42 = vpop.f32.mrf.mxu1 }
 0x12e   : > { %9499 = vst [vmem:[#allocation12_spill] sm:$0xff] %v7818_v34  ;;  %9502 = vst [vmem:[#allocation15_spill] sm:$0xff] %v7840_v42 }
 0x12f   : > { %v7820_v35 = vpop.f32.mrf.mxu0  ;;  %v7848_v45 = vpop.f32.mrf.mxu1 }
 0x130   : > { %516 = vrot.lane.b32.xlu1 %v7820_v35, %s7582_s21 }
 0x131   : > { %v7824_v36 = vpop.f32.mrf.mxu0  ;;  %v7854_v48 = vpop.f32.mrf.mxu1 }
 0x132   : > { %9500 = vst [vmem:[#allocation13_spill] sm:$0xff] %v7824_v36  ;;  %9507 = vst [vmem:[#allocation20_spill] sm:$0xff] %v7854_v48 }
 0x133   : > { %v7826_v37 = vpop.f32.mrf.mxu0  ;;  %v7862_v51 = vpop.f32.mrf.mxu1 }
 0x134   : > { %514 = vrot.lane.b32.xlu1 %v7814_v33, %s7582_s21 }
 0x135   : > { %v7830_v38 = vpop.f32.mrf.mxu0  ;;  %v7872_v54 = vpop.f32.mrf.mxu1 }
 0x136   : > { %9501 = vst [vmem:[#allocation14_spill] sm:$0xff] %v7830_v38  ;;  %9510 = vst [vmem:[#allocation23_spill] sm:$0xff] %v7872_v54 }
 0x137   : > { %v7834_v40 = vpop.f32.mrf.mxu0  ;;  %v7884_v57 = vpop.f32.mrf.mxu1 }
 0x138   : > { %520 = vrot.lane.b32.xlu0 %v7834_v40, %s7582_s21 }
 0x139   : > { %v7838_v41 = vpop.f32.mrf.mxu0  ;;  %v7890_v59 = vpop.f32.mrf.mxu1 }
 0x13a   : > { %9512 = vst [vmem:[#allocation25_spill] sm:$0xff] %v7890_v59 }
 0x13b   : > { %v7842_v43 = vpop.f32.mrf.mxu0 }
 0x13c   : > { %9503 = vst [vmem:[#allocation16_spill] sm:$0xff] %v7842_v43  ;;  %518 = vrot.lane.b32.xlu0 %v7826_v37, %s7582_s21 }
 0x13d   : > { %v7846_v44 = vpop.f32.mrf.mxu0 }
 0x13e   : > { %9504 = vst [vmem:[#allocation17_spill] sm:$0xff] %v7846_v44 }
 0x13f   : > { %v7850_v46 = vpop.f32.mrf.mxu0 }
 0x140   : > { %9505 = vst [vmem:[#allocation18_spill] sm:$0xff] %v7850_v46 }
 0x141   : > { %v7852_v47 = vpop.f32.mrf.mxu0 }
 0x142   : > { %9506 = vst [vmem:[#allocation19_spill] sm:$0xff] %v7852_v47 }
 0x143   : > { %v7856_v49 = vpop.f32.mrf.mxu0 }
 0x144   : > { %632 = vrot.lane.b32.xlu1 %v7856_v49, %s7582_s21 }
 0x145   : > { %v7860_v50 = vpop.f32.mrf.mxu0 }
 0x146   : > { %9508 = vst [vmem:[#allocation21_spill] sm:$0xff] %v7860_v50 }
 0x147   : > { %v7864_v52 = vpop.f32.mrf.mxu0 }
 0x148   : > { %628 = vrot.lane.b32.xlu1 %v7842_v43, %s7582_s21  ;;  %634 = vrot.lane.b32.xlu0 %v7864_v52, %s7582_s21 }
 0x149   : > { %v7870_v53 = vpop.f32.mrf.mxu0 }
 0x14a   : > { %9509 = vst [vmem:[#allocation22_spill] sm:$0xff] %v7870_v53  ;;  %6580 = vmatprep.subr.mxu0 %v7870_v53 }
 0x14b   : > { %v7875_v55 = vpop.f32.mrf.mxu0  ;;  %6581 = vmatpush3.msra.mxu0 %v7870_v53 }
 0x14c   : > { %630 = vrot.lane.b32.xlu0 %v7850_v46, %s7582_s21  ;;  %6582 = vmatprep.subr.mxu0 %v7860_v50 }
 0x14d   : > { %v7881_v56 = vpop.f32.mrf.mxu0  ;;  %6583 = vmatpush3.msra.mxu0 %v7860_v50 }
 0x14e   : > { %9511 = vst [vmem:[#allocation24_spill] sm:$0xff] %v7881_v56  ;;  %6584 = vmatprep.subr.mxu0 %v7852_v47 }
 0x14f   : > { %v7887_v58 = vpop.f32.mrf.mxu0  ;;  %6585 = vmatpush3.msra.mxu0 %v7852_v47 }
 0x150   : > { %6586 = vmatprep.subr.mxu0 %v7846_v44 }
 0x151   : > { %v7893_v60 = vpop.f32.mrf.mxu0  ;;  %6587 = vmatpush3.msra.mxu0 %v7846_v44 }
 0x152   : > { %9513 = vst [vmem:[#allocation26_spill] sm:$0xff] %v7893_v60  ;;  %6608 = vmatprep.subr.mxu0 %v7890_v59 }
 0x153   : > { %v7897_v61 = vpop.f32.mrf.mxu0 }
 0x154   : > { %745 = vrot.lane.b32.xlu1 %v7897_v61, %s7582_s21 }
 0x155   : > { %v7901_v62 = vpop.f32.mrf.mxu0 }
 0x156   : > { %9514 = vst [vmem:[#allocation27_spill] sm:$0xff] %v7901_v62 }
 0x157   : > { %v7903_v63 = vpop.f32.mrf.mxu0 }
 0x158   : > { %741 = vrot.lane.b32.xlu1 %v7875_v55, %s7582_s21  ;;  %747 = vrot.lane.b32.xlu0 %v7903_v63, %s7582_s21 }
 0x159   : > { %v7988_v16 = vpop.f32.mrf.mxu0 }
 0x15a   : > { %9515 = vst [vmem:[#allocation28_spill] sm:$0xff] %v7988_v16 }
 0x15c   : > { %858 = vrot.lane.b32.xlu1 %v7862_v51, %s7582_s21  ;;  %743 = vrot.lane.b32.xlu0 %v7887_v58, %s7582_s21 }
 0x160   : > { %854 = vrot.lane.b32.xlu1 %v7832_v39, %s7582_s21  ;;  %860 = vrot.lane.b32.xlu0 %v7884_v57, %s7582_s21 }
 0x164   : > { %856 = vrot.lane.b32.xlu0 %v7848_v45, %s7582_s21  ;;  %s9406_s21 = scalar_lea.hbm %s9460_s4, %s6181_s14 }
 0x1a2   : > { %v517_v1 = vpop.permute.xlu1 %516 }
 0x1a6   : > { %v515_v3 = vpop.permute.xlu1 %514 }
 0x1aa   : > { %v521_v0 = vpop.permute.xlu0 %520 }
 0x1ab   : > { %6510 = vmatprep.subr.msk.mxu1 %vm522_vm1, %v521_v0 }
 0x1ac   : > { %6511 = vmatpush3.xpose.msk.msra.mxu1 %vm522_vm1, %v521_v0 }
 0x1ae   : > { %v519_v2 = vpop.permute.xlu0 %518 }
 0x1af   : > { %6512 = vmatprep.subr.msk.mxu1 %vm522_vm1, %v519_v2 }
 0x1b0   : > { %6513 = vmatpush3.xpose.msk.msra.mxu1 %vm522_vm1, %v519_v2 }
 0x1b1   : > { %6514 = vmatprep.subr.msk.mxu1 %vm522_vm1, %v517_v1 }
 0x1b4   : > { %6515 = vmatpush3.xpose.msk.msra.mxu1 %vm522_vm1, %v517_v1 }
 0x1b5   : > { %6516 = vmatprep.subr.msk.mxu1 %vm522_vm1, %v515_v3 }
 0x1b6   : > { %v633_v5 = vpop.permute.xlu1 %632 }
 0x1b8   : > { %6517 = vmatpush3.xpose.msk.msra.mxu1 %vm522_vm1, %v515_v3 }
 0x1ba   : > { %v635_v4 = vpop.permute.xlu0 %634  ;;  %v629_v7 = vpop.permute.xlu1 %628 }
 0x1bb   : > { %6519 = vmatmul.mubr.msk.f32.vlgmr.msra.gmra.mxu1 %vm522_vm1, %v7820_v35  ;;  %6524 = vmatprep.subr.msk.mxu1 %vm522_vm1, %v635_v4 }
 0x1bc   : > { %6521 = vmatprep.mubr.msk.f32.mxu1 %vm522_vm1, %v7826_v37  ;;  %6525 = vmatpush3.xpose.msk.msra.mxu1 %vm522_vm1, %v635_v4 }
 0x1bd   : > { %6526 = vmatprep.subr.msk.mxu1 %vm522_vm1, %v633_v5 }
 0x1be   : > { %v631_v6 = vpop.permute.xlu0 %630 }
 0x1bf   : > { %6522 = vmatmul.mubr.msk.f32.gmra.mxu1 %vm522_vm1, %v7834_v40 }
 0x1c0   : > { %6527 = vmatpush3.xpose.msk.msra.mxu1 %vm522_vm1, %v633_v5  ;;  %6532 = vmatprep.mubr.msk.f32.mxu1 %vm522_vm1, %v7842_v43 }
 0x1c1   : > { %6528 = vmatprep.subr.msk.mxu1 %vm522_vm1, %v631_v6 }
 0x1c4   : > { %6529 = vmatpush3.xpose.msk.msra.mxu1 %vm522_vm1, %v631_v6 }
 0x1c5   : > { %6530 = vmatprep.subr.msk.mxu1 %vm522_vm1, %v629_v7 }
 0x1c6   : > { %v746_v9 = vpop.permute.xlu1 %745 }
 0x1c8   : > { %6531 = vmatpush3.xpose.msk.msra.mxu1 %vm522_vm1, %v629_v7 }
 0x1ca   : > { %v748_v8 = vpop.permute.xlu0 %747  ;;  %v742_v11 = vpop.permute.xlu1 %741 }
 0x1cb   : > { %6533 = vmatmul.mubr.msk.f32.vlgmr.msra.gmra.mxu1 %vm522_vm1, %v7850_v46  ;;  %6538 = vmatprep.subr.msk.mxu1 %vm522_vm1, %v748_v8 }
 0x1cc   : > { %6535 = vmatprep.mubr.msk.f32.mxu1 %vm522_vm1, %v7856_v49  ;;  %6539 = vmatpush3.xpose.msk.msra.mxu1 %vm522_vm1, %v748_v8 }
 0x1cd   : > { %6540 = vmatprep.subr.msk.mxu1 %vm522_vm1, %v746_v9 }
 0x1ce   : > { %v744_v10 = vpop.permute.xlu0 %743  ;;  %v859_v13 = vpop.permute.xlu1 %858 }
 0x1cf   : > { %6536 = vmatmul.mubr.msk.f32.gmra.mxu1 %vm522_vm1, %v7864_v52 }
 0x1d0   : > { %6541 = vmatpush3.xpose.msk.msra.mxu1 %vm522_vm1, %v746_v9  ;;  %6546 = vmatprep.mubr.msk.f32.mxu1 %vm522_vm1, %v7875_v55 }
 0x1d1   : > { %6542 = vmatprep.subr.msk.mxu1 %vm522_vm1, %v744_v10 }
 0x1d2   : > { %v861_v12 = vpop.permute.xlu0 %860  ;;  %v855_v15 = vpop.permute.xlu1 %854 }
 0x1d4   : > { %6543 = vmatpush3.xpose.msk.msra.mxu1 %vm522_vm1, %v744_v10 }
 0x1d5   : > { %6544 = vmatprep.subr.msk.mxu1 %vm522_vm1, %v742_v11 }
 0x1d6   : > { %v857_v14 = vpop.permute.xlu0 %856 }
 0x1d8   : > { %6545 = vmatpush3.xpose.msk.msra.mxu1 %vm522_vm1, %v742_v11 }
 0x1d9   : > { %6552 = vmatprep.subr.msk.mxu1 %vm522_vm1, %v861_v12 }
 0x1db   : > { %6547 = vmatmul.mubr.msk.f32.vlgmr.msra.gmra.mxu1 %vm522_vm1, %v7887_v58 }
 0x1dc   : > { %6549 = vmatprep.mubr.msk.f32.mxu1 %vm522_vm1, %v7897_v61  ;;  %6553 = vmatpush3.xpose.msk.msra.mxu1 %vm522_vm1, %v861_v12 }
 0x1dd   : > { %6554 = vmatprep.subr.msk.mxu1 %vm522_vm1, %v859_v13 }
 0x1df   : > { %6550 = vmatmul.mubr.msk.f32.gmra.mxu1 %vm522_vm1, %v7903_v63 }
 0x1e0   : > { %6555 = vmatpush3.xpose.msk.msra.mxu1 %vm522_vm1, %v859_v13  ;;  %6560 = vmatprep.mubr.msk.f32.mxu1 %vm522_vm1, %v7832_v39 }
 0x1e1   : > { %6556 = vmatprep.subr.msk.mxu1 %vm522_vm1, %v857_v14 }
 0x1e4   : > { %6557 = vmatpush3.xpose.msk.msra.mxu1 %vm522_vm1, %v857_v14 }
 0x1e5   : > { %6558 = vmatprep.subr.msk.mxu1 %vm522_vm1, %v855_v15 }
 0x1e8   : > { %6559 = vmatpush3.xpose.msk.msra.mxu1 %vm522_vm1, %v855_v15 }
 0x1e9   : > { %6566 = vmatprep.subr.mxu1 %v7838_v41 }
 0x1eb   : > { %6561 = vmatmul.mubr.msk.f32.vlgmr.msra.gmra.mxu1 %vm522_vm1, %v7848_v45 }
 0x1ec   : > { %6563 = vmatprep.mubr.msk.f32.mxu1 %vm522_vm1, %v7862_v51  ;;  %6567 = vmatpush3.msra.mxu1 %v7838_v41 }
 0x1ed   : > { %6568 = vmatprep.subr.mxu1 %v7830_v38 }
 0x1ee   : > { %6569 = vmatpush3.msra.mxu1 %v7830_v38 }
 0x1ef   : > { %6564 = vmatmul.mubr.msk.f32.gmra.mxu1 %vm522_vm1, %v7884_v57  ;;  %6570 = vmatprep.subr.mxu1 %v7824_v36 }
 0x1f0   : > { %6571 = vmatpush3.msra.mxu1 %v7824_v36 }
 0x1f1   : > { %6572 = vmatprep.subr.mxu1 %v7818_v34 }
 0x1f2   : > { %6573 = vmatpush3.msra.mxu1 %v7818_v34 }
 0x1f3   : > { %6594 = vmatprep.subr.mxu1 %v7988_v16 }
 0x27b   : > { %v6520_v22 = vpop.f32.mrf.mxu1 }
 0x27c   : > { %v8002_v25 = vsel %vm7992_vm2, %v6520_v22, -inf }
 0x27d   : > { %v605_v26 = vpop.f32.mrf.mxu1  ;;  %v991_v27 = vsel %vm987_vm3, %v8002_v25, -inf }
 0x27e   : > { %v8008_v29 = vsel %vm7996_vm4, %v605_v26, -inf  ;;  %992 = vmax.xlane.f32.xlu1 %v991_v27 }
 0x27f   : > { %v6523_v30 = vpop.f32.mrf.mxu1  ;;  %v988_v31 = vsel %vm987_vm3, %v8008_v29, -inf }
 0x280   : > { %989 = vmax.xlane.f32.xlu0 %v988_v31  ;;  %v8028_v4 = vsel %vm8016_vm6, %v6523_v30, -inf }
 0x281   : > { %v615_v1 = vpop.f32.mrf.mxu1  ;;  %v997_v5 = vsel %vm987_vm3, %v8028_v4, -inf }
 0x282   : > { %v8022_v2 = vsel %vm8012_vm5, %v615_v1, -inf }
 0x283   : > { %v994_v3 = vsel %vm987_vm3, %v8022_v2, -inf }
 0x284   : > { %995 = vmax.xlane.f32.xlu0 %v994_v3 }
 0x288   : > { %998 = vmax.xlane.f32.xlu0 %v997_v5 }
 0x28b   : > { %v6534_v6 = vpop.f32.mrf.mxu1 }
 0x28c   : > { %v8034_v7 = vsel %vm7992_vm2, %v6534_v6, -inf }
 0x28d   : > { %v718_v8 = vpop.f32.mrf.mxu1  ;;  %v1003_v9 = vsel %vm987_vm3, %v8034_v7, -inf }
 0x28e   : > { %v8040_v10 = vsel %vm7996_vm4, %v718_v8, -inf  ;;  %1004 = vmax.xlane.f32.xlu0 %v1003_v9 }
 0x28f   : > { %v6537_v11 = vpop.f32.mrf.mxu1  ;;  %v1000_v12 = vsel %vm987_vm3, %v8040_v10, -inf }
 0x290   : > { %v8046_v13 = vsel %vm8016_vm6, %v6537_v11, -inf  ;;  %1001 = vmax.xlane.f32.xlu1 %v1000_v12 }
 0x291   : > { %v728_v14 = vpop.f32.mrf.mxu1  ;;  %v1009_v15 = vsel %vm987_vm3, %v8046_v13, -inf }
 0x292   : > { %v8052_v17 = vsel %vm8012_vm5, %v728_v14, -inf  ;;  %1010 = vmax.xlane.f32.xlu0 %v1009_v15 }
 0x293   : > { %v1006_v18 = vsel %vm987_vm3, %v8052_v17, -inf }
 0x294   : > { %1007 = vmax.xlane.f32.xlu1 %v1006_v18 }
 0x29b   : > { %v6548_v19 = vpop.f32.mrf.mxu1 }
 0x29c   : > { %v8058_v20 = vsel %vm7992_vm2, %v6548_v19, -inf }
 0x29d   : > { %v831_v22 = vpop.f32.mrf.mxu1  ;;  %v1015_v24 = vsel %vm987_vm3, %v8058_v20, -inf }
 0x29e   : > { %v8064_v26 = vsel %vm7996_vm4, %v831_v22, -inf  ;;  %1016 = vmax.xlane.f32.xlu0 %v1015_v24 }
 0x29f   : > { %v6551_v27 = vpop.f32.mrf.mxu1  ;;  %v1012_v28 = vsel %vm987_vm3, %v8064_v26, -inf }
 0x2a0   : > { %v8070_v30 = vsel %vm8016_vm6, %v6551_v27, -inf  ;;  %1013 = vmax.xlane.f32.xlu1 %v1012_v28 }
 0x2a1   : > { %v841_v31 = vpop.f32.mrf.mxu1  ;;  %v1021_v1 = vsel %vm987_vm3, %v8070_v30, -inf }
 0x2a2   : > { %v8076_v3 = vsel %vm8012_vm5, %v841_v31, -inf  ;;  %1022 = vmax.xlane.f32.xlu0 %v1021_v1 }
 0x2a3   : > { %v1018_v5 = vsel %vm987_vm3, %v8076_v3, -inf }
 0x2a4   : > { %1019 = vmax.xlane.f32.xlu1 %v1018_v5 }
 0x2ab   : > { %v6562_v6 = vpop.f32.mrf.mxu1 }
 0x2ac   : > { %v8082_v8 = vsel %vm7992_vm2, %v6562_v6, -inf }
 0x2ad   : > { %v944_v9 = vpop.f32.mrf.mxu1  ;;  %v1027_v11 = vsel %vm987_vm3, %v8082_v8, -inf }
 0x2ae   : > { %v8088_v12 = vsel %vm7996_vm4, %v944_v9, -inf  ;;  %1028 = vmax.xlane.f32.xlu0 %v1027_v11 }
 0x2af   : > { %v6565_v14 = vpop.f32.mrf.mxu1  ;;  %v1024_v15 = vsel %vm987_vm3, %v8088_v12, -inf }
 0x2b0   : > { %v8094_v18 = vsel %vm8016_vm6, %v6565_v14, -inf  ;;  %1025 = vmax.xlane.f32.xlu1 %v1024_v15 }
 0x2b1   : > { %v954_v19 = vpop.f32.mrf.mxu1  ;;  %v1033_v22 = vsel %vm987_vm3, %v8094_v18, -inf }
 0x2b2   : > { %v8100_v24 = vsel %vm8012_vm5, %v954_v19, -inf  ;;  %1034 = vmax.xlane.f32.xlu0 %v1033_v22 }
 0x2b3   : > { %v1030_v27 = vsel %vm987_vm3, %v8100_v24, -inf }
 0x2b4   : > { %1031 = vmax.xlane.f32.xlu1 %v1030_v27 }
 0x2c5   : > { %1797 = vrot.lane.b32.xlu1 %v7834_v40, %s7583_s23 }
 0x2c8   : > { %1795 = vrot.lane.b32.xlu0 %v7826_v37, %s7583_s23 }
 0x2c9   : > { %1793 = vrot.lane.b32.xlu1 %v7820_v35, %s7583_s23 }
 0x2cc   : > { %1791 = vrot.lane.b32.xlu0 %v7814_v33, %s7583_s23 }
 0x2cd   : > { %1783 = vrot.lane.b32.xlu1 %v7814_v33, %s7584_s9 }
 0x2d0   : > { %1910 = vrot.lane.b32.xlu0 %v7850_v46, %s7583_s23 }
 0x2d1   : > { %1914 = vrot.lane.b32.xlu1 %v7864_v52, %s7583_s23 }
 0x2d4   : > { %1787 = vrot.lane.b32.xlu0 %v7826_v37, %s7584_s9 }
 0x2d5   : > { %1785 = vrot.lane.b32.xlu1 %v7820_v35, %s7584_s9 }
 0x2d8   : > { %1908 = vrot.lane.b32.xlu0 %v7842_v43, %s7583_s23 }
 0x2d9   : > { %1912 = vrot.lane.b32.xlu1 %v7856_v49, %s7583_s23 }
 0x2dc   : > { %1900 = vrot.lane.b32.xlu0 %v7842_v43, %s7584_s9 }
 0x2dd   : > { %2031 = vrot.lane.b32.xlu1 %v7903_v63, %s7583_s23 }
 0x2e0   : > { %2027 = vrot.lane.b32.xlu0 %v7887_v58, %s7583_s23 }
 0x2e1   : > { %1789 = vrot.lane.b32.xlu1 %v7834_v40, %s7584_s9 }
 0x2e4   : > { %1904 = vrot.lane.b32.xlu0 %v7856_v49, %s7584_s9 }
 0x2e5   : > { %2029 = vrot.lane.b32.xlu1 %v7897_v61, %s7583_s23 }
 0x2e8   : > { %2025 = vrot.lane.b32.xlu0 %v7875_v55, %s7583_s23 }
 0x2e9   : > { %1902 = vrot.lane.b32.xlu1 %v7850_v46, %s7584_s9 }
 0x2ed   : > { %2148 = vrot.lane.b32.xlu1 %v7884_v57, %s7583_s23 }
 0x2f1   : > { %1906 = vrot.lane.b32.xlu1 %v7864_v52, %s7584_s9 }
 0x2f5   : > { %2146 = vrot.lane.b32.xlu1 %v7862_v51, %s7583_s23 }
 0x307   : > { %v993_v28 = vpop.xlane.xlu1 %992 }
 0x308   : > { %v1037_v31 = vsub.f32 %v8002_v25, %v993_v28 }
 0x309   : > { %v990_v1 = vpop.xlane.xlu0 %989 }
 0x30a   : > { %v1054_v5 = vmul.f32 1.442695, %v1037_v31  ;;  %v1036_v6 = vsub.f32 %v8008_v29, %v990_v1 }
 0x30c   : > { %7167 = vpow2.f32 %v1054_v5  ;;  %v1052_v9 = vmul.f32 1.442695, %v1036_v6 }
 0x30d   : > { %v996_v11 = vpop.xlane.xlu0 %995 }
 0x30e   : > { %7169 = vpow2.f32 %v1052_v9  ;;  %v1038_v14 = vsub.f32 %v8022_v2, %v996_v11 }
 0x310   : > { %v1056_v15 = vmul.f32 1.442695, %v1038_v14  ;;  %v8168_v14 = vld [vmem:[#allocation7 + $0x8] sm:$0xff] }
 0x311   : > { %v999_v19 = vpop.xlane.xlu0 %998 }
 0x312   : > { %7171 = vpow2.f32 %v1056_v15  ;;  %v1039_v22 = vsub.f32 %v8028_v4, %v999_v19 }
 0x314   : > { %v1058_v27 = vmul.f32 1.442695, %v1039_v22 }
 0x316   : > { %7173 = vpow2.f32 %v1058_v27 }
 0x317   : > { %v1005_v43 = vpop.xlane.xlu0 %1004 }
 0x318   : > { %v1041_v25 = vsub.f32 %v8034_v7, %v1005_v43 }
 0x319   : > { %v7168_v28 = vpop.eup %7167  ;;  %v1002_v31 = vpop.xlane.xlu1 %1001 }
 0x31a   : > { %v1062_v46 = vmul.f32 1.442695, %v1041_v25  ;;  %v1040_v29 = vsub.f32 %v8040_v10, %v1002_v31  ;;  %v1087_v1 = vsel %vm987_vm3, %v7168_v28, 0.0 }
 0x31b   : > { %v7170_v5 = vpop.eup %7169  ;;  %1088 = vadd.xlane.f32.xlu0 %v1087_v1  ;;  %v1011_v2 = vpop.xlane.xlu0 %1010 }
 0x31c   : > { %7175 = vpow2.f32 %v1062_v46  ;;  %v1060_v6 = vmul.f32 1.442695, %v1040_v29  ;;  %v1043_v9 = vsub.f32 %v8046_v13, %v1011_v2  ;;  %6574 = vmatprep.mubr.msk.f32.mxu1 %vm987_vm3, %v7170_v5  ;;  %v1084_v4 = vsel %vm987_vm3, %v7170_v5, 0.0 }
 0x31d   : > { %v1008_v11 = vpop.xlane.xlu1 %1007  ;;  %6575 = vmatmul.mubr.msk.f32.vlgmr.msra.gmra.mxu1 %vm987_vm3, %v7168_v28  ;;  %1085 = vadd.xlane.f32.xlu1 %v1084_v4 }
 0x31e   : > { %7177 = vpow2.f32 %v1060_v6  ;;  %v1066_v43 = vmul.f32 1.442695, %v1043_v9  ;;  %v1042_v7 = vsub.f32 %v8052_v17, %v1008_v11  ;;  %6595 = vmatpush3.msra.mxu1 %v7988_v16 }
 0x31f   : > { %v7172_v10 = vpop.eup %7171  ;;  %6596 = vmatprep.subr.mxu1 %v7901_v62 }
 0x320   : > { %7179 = vpow2.f32 %v1066_v43  ;;  %v1064_v46 = vmul.f32 1.442695, %v1042_v7  ;;  %6597 = vmatpush3.msra.mxu1 %v7901_v62  ;;  %6577 = vmatprep.mubr.msk.f32.mxu1 %vm987_vm3, %v7172_v10  ;;  %v1090_v13 = vsel %vm987_vm3, %v7172_v10, 0.0 }
 0x321   : > { %6598 = vmatprep.subr.mxu1 %v7893_v60  ;;  %1091 = vadd.xlane.f32.xlu1 %v1090_v13 }
 0x322   : > { %7181 = vpow2.f32 %v1064_v46  ;;  %6599 = vmatpush3.msra.mxu1 %v7893_v60 }
 0x323   : > { %v7174_v17 = vpop.eup %7173  ;;  %6600 = vmatprep.subr.mxu1 %v7881_v56 }
 0x324   : > { %6601 = vmatpush3.msra.mxu1 %v7881_v56  ;;  %v1093_v15 = vsel %vm987_vm3, %v7174_v17, 0.0 }
 0x325   : > { %6578 = vmatmul.mubr.msk.f32.gmra.mxu1 %vm987_vm3, %v7174_v17  ;;  %1094 = vadd.xlane.f32.xlu0 %v1093_v15 }
 0x326   : > { %6622 = vmatprep.subr.mxu1 %v8168_v14 }
 0x327   : > { %v1017_v19 = vpop.xlane.xlu0 %1016 }
 0x328   : > { %v1045_v22 = vsub.f32 %v8058_v20, %v1017_v19 }
 0x329   : > { %v7176_v27 = vpop.eup %7175  ;;  %v1014_v25 = vpop.xlane.xlu1 %1013 }
 0x32a   : > { %v1070_v28 = vmul.f32 1.442695, %v1045_v22  ;;  %v1044_v31 = vsub.f32 %v8064_v26, %v1014_v25  ;;  %v1099_v29 = vsel %vm987_vm3, %v7176_v27, 0.0 }
 0x32b   : > { %v7178_v1 = vpop.eup %7177  ;;  %1100 = vadd.xlane.f32.xlu0 %v1099_v29  ;;  %v1023_v5 = vpop.xlane.xlu0 %1022 }
 0x32c   : > { %7183 = vpow2.f32 %v1070_v28  ;;  %v1068_v2 = vmul.f32 1.442695, %v1044_v31  ;;  %v1047_v6 = vsub.f32 %v8070_v30, %v1023_v5  ;;  %6588 = vmatprep.mubr.msk.f32.mxu0 %vm987_vm3, %v7178_v1  ;;  %v1096_v9 = vsel %vm987_vm3, %v7178_v1, 0.0  ;;  %v501_v1 = vld [vmem:[#allocation7] sm:$0xff] }
 0x32d   : > { %v7180_v4 = vpop.eup %7179  ;;  %v1020_v20 = vpop.xlane.xlu1 %1019  ;;  %1097 = vadd.xlane.f32.xlu1 %v1096_v9  ;;  %6589 = vmatmul.mubr.msk.f32.vlgmr.msra.gmra.mxu0 %vm987_vm3, %v7176_v27 }
 0x32e   : > { %7185 = vpow2.f32 %v1068_v2  ;;  %v1074_v26 = vmul.f32 1.442695, %v1047_v6  ;;  %v1046_v11 = vsub.f32 %v8076_v3, %v1020_v20  ;;  %6609 = vmatpush3.msra.mxu0 %v7890_v59  ;;  %v1105_v43 = vsel %vm987_vm3, %v7180_v4, 0.0 }
 0x32f   : > { %v7182_v7 = vpop.eup %7181  ;;  %6610 = vmatprep.subr.mxu0 %v7872_v54  ;;  %1106 = vadd.xlane.f32.xlu0 %v1105_v43 }
 0x330   : > { %7187 = vpow2.f32 %v1074_v26  ;;  %v1072_v30 = vmul.f32 1.442695, %v1046_v11  ;;  %6611 = vmatpush3.msra.mxu0 %v7872_v54  ;;  %6591 = vmatprep.mubr.msk.f32.mxu0 %vm987_vm3, %v7182_v7  ;;  %v1102_v10 = vsel %vm987_vm3, %v7182_v7, 0.0 }
 0x331   : > { %6612 = vmatprep.subr.mxu0 %v7854_v48  ;;  %1103 = vadd.xlane.f32.xlu1 %v1102_v10 }
 0x332   : > { %7189 = vpow2.f32 %v1072_v30  ;;  %6592 = vmatmul.mubr.msk.f32.gmra.mxu0 %vm987_vm3, %v7180_v4 }
 0x333   : > { %6613 = vmatpush3.msra.mxu0 %v7854_v48 }
 0x334   : > { %6614 = vmatprep.subr.mxu0 %v7840_v42 }
 0x335   : > { %6615 = vmatpush3.msra.mxu0 %v7840_v42 }
 0x337   : > { %v1029_v3 = vpop.xlane.xlu0 %1028 }
 0x338   : > { %v1049_v46 = vsub.f32 %v8082_v8, %v1029_v3 }
 0x339   : > { %v7184_v13 = vpop.eup %7183  ;;  %v1026_v17 = vpop.xlane.xlu1 %1025 }
 0x33a   : > { %v1078_v15 = vmul.f32 1.442695, %v1049_v46  ;;  %v1048_v19 = vsub.f32 %v8088_v12, %v1026_v17  ;;  %v1111_v22 = vsel %vm987_vm3, %v7184_v13, 0.0 }
 0x33b   : > { %v7186_v27 = vpop.eup %7185  ;;  %1112 = vadd.xlane.f32.xlu0 %v1111_v22  ;;  %v1035_v25 = vpop.xlane.xlu0 %1034 }
 0x33c   : > { %7191 = vpow2.f32 %v1078_v15  ;;  %v1076_v28 = vmul.f32 1.442695, %v1048_v19  ;;  %v1051_v31 = vsub.f32 %v8094_v18, %v1035_v25  ;;  %6602 = vmatprep.mubr.msk.f32.mxu1 %vm987_vm3, %v7186_v27  ;;  %v1108_v29 = vsel %vm987_vm3, %v7186_v27, 0.0 }
 0x33d   : > { %v7188_v8 = vpop.eup %7187  ;;  %v1032_v5 = vpop.xlane.xlu1 %1031  ;;  %1109 = vadd.xlane.f32.xlu1 %v1108_v29  ;;  %6603 = vmatmul.mubr.msk.f32.vlgmr.msra.gmra.mxu1 %vm987_vm3, %v7184_v13 }
 0x33e   : > { %7193 = vpow2.f32 %v1076_v28  ;;  %v1050_v12 = vsub.f32 %v8100_v24, %v1032_v5  ;;  %v1117_v2 = vsel %vm987_vm3, %v7188_v8, 0.0  ;;  %6623 = vmatpush3.msra.mxu1 %v8168_v14  ;;  %v1082_v9 = vmul.f32 1.442695, %v1051_v31 }
 0x33f   : > { %v7190_v6 = vpop.eup %7189  ;;  %1118 = vadd.xlane.f32.xlu0 %v1117_v2  ;;  %6624 = vmatprep.subr.mxu1 %v501_v1  ;;  %v1796_v24 = vpop.permute.xlu0 %1795 }
 0x340   : > { %v1080_v18 = vmul.f32 1.442695, %v1050_v12  ;;  %6605 = vmatprep.mubr.msk.f32.mxu1 %vm987_vm3, %v7190_v6  ;;  %v1114_v4 = vsel %vm987_vm3, %v7190_v6, 0.0  ;;  %6625 = vmatpush3.msra.mxu1 %v501_v1 }
 0x341   : > { %v1798_v20 = vpop.permute.xlu1 %1797  ;;  %1115 = vadd.xlane.f32.xlu1 %v1114_v4  ;;  %6606 = vmatmul.mubr.msk.f32.gmra.mxu1 %vm987_vm3, %v7188_v8 }
 0x342   : > { %7195 = vpow2.f32 %v1080_v18  ;;  %6650 = vmatprep.subr.msk.mxu0 %vm522_vm1, %v1798_v20 }
 0x343   : > { %7197 = vpow2.f32 %v1082_v9  ;;  %v1792_v11 = vpop.permute.xlu0 %1791 }
 0x345   : > { %v1794_v14 = vpop.permute.xlu1 %1793 }
 0x347   : > { %v1911_v13 = vpop.permute.xlu0 %1910 }
 0x349   : > { %v7192_v26 = vpop.eup %7191  ;;  %v1784_v43 = vpop.permute.xlu1 %1783 }
 0x34a   : > { %v1123_v7 = vsel %vm987_vm3, %v7192_v26, 0.0 }
 0x34b   : > { %v7194_v30 = vpop.eup %7193  ;;  %1124 = vadd.xlane.f32.xlu0 %v1123_v7  ;;  %v1788_v19 = vpop.permute.xlu0 %1787 }
 0x34c   : > { %6616 = vmatprep.mubr.msk.f32.mxu0 %vm987_vm3, %v7194_v30  ;;  %v1120_v3 = vsel %vm987_vm3, %v7194_v30, 0.0 }
 0x34d   : > { %v1915_v10 = vpop.permute.xlu1 %1914  ;;  %6617 = vmatmul.mubr.msk.f32.vlgmr.msra.gmra.mxu0 %vm987_vm3, %v7192_v26 }
 0x34e   : > { %6651 = vmatpush3.xpose.msk.msra.mxu0 %vm522_vm1, %v1798_v20 }
 0x34f   : > { %v7196_v46 = vpop.eup %7195  ;;  %6652 = vmatprep.subr.msk.mxu0 %vm522_vm1, %v1796_v24  ;;  %1121 = vadd.xlane.f32.xlu0 %v1120_v3  ;;  %v1909_v25 = vpop.permute.xlu0 %1908 }
 0x350   : > { %v7198_v17 = vpop.eup %7197  ;;  %6619 = vmatprep.mubr.msk.f32.mxu0 %vm987_vm3, %v7196_v46  ;;  %v1126_v9 = vsel %vm987_vm3, %v7196_v46, 0.0 }
 0x351   : > { %v1786_v15 = vpop.permute.xlu1 %1785  ;;  %6620 = vmatmul.mubr.msk.f32.gmra.mxu0 %vm987_vm3, %v7198_v17  ;;  %v1129_v18 = vsel %vm987_vm3, %v7198_v17, 0.0 }
 0x352   : > { %6653 = vmatpush3.xpose.msk.msra.mxu0 %vm522_vm1, %v1796_v24  ;;  %2019 = vrot.lane.b32.xlu1 %v7887_v58, %s7584_s9 }
 0x353   : > { %6654 = vmatprep.subr.msk.mxu0 %vm522_vm1, %v1794_v14  ;;  %6658 = vmatprep.mubr.msk.f32.mxu0 %vm522_vm1, %v1784_v43  ;;  %v1901_v31 = vpop.permute.xlu0 %1900 }
 0x355   : > { %v1913_v22 = vpop.permute.xlu1 %1912 }
 0x356   : > { %6655 = vmatpush3.xpose.msk.msra.mxu0 %vm522_vm1, %v1794_v14 }
 0x357   : > { %6656 = vmatprep.subr.msk.mxu0 %vm522_vm1, %v1792_v11  ;;  %v8241_v8 = vpop.permute.xlu0 %2027 }
 0x359   : > { %v8222_v27 = vpop.permute.xlu1 %2031 }
 0x35a   : > { %6657 = vmatpush3.xpose.msk.msra.mxu0 %vm522_vm1, %v1792_v11  ;;  %6678 = vmatprep.subr.msk.mxu1 %vm522_vm1, %v8222_v27 }
 0x35b   : > { %6664 = vmatprep.subr.msk.mxu0 %vm522_vm1, %v1915_v10  ;;  %v1905_v12 = vpop.permute.xlu0 %1904 }
 0x35d   : > { %6659 = vmatmul.mubr.msk.f32.vlgmr.msra.gmra.mxu0 %vm522_vm1, %v1786_v15  ;;  %v1790_v28 = vpop.permute.xlu1 %1789 }
 0x35e   : > { %6661 = vmatprep.mubr.msk.f32.mxu0 %vm522_vm1, %v1788_v19  ;;  %6665 = vmatpush3.xpose.msk.msra.mxu0 %vm522_vm1, %v1915_v10 }
 0x35f   : > { %6666 = vmatprep.subr.msk.mxu0 %vm522_vm1, %v1913_v22  ;;  %v2026_v4 = vpop.permute.xlu0 %2025 }
 0x361   : > { %6662 = vmatmul.mubr.msk.f32.gmra.mxu0 %vm522_vm1, %v1790_v28  ;;  %v8233_v29 = vpop.permute.xlu1 %2029 }
 0x362   : > { %6667 = vmatpush3.xpose.msk.msra.mxu0 %vm522_vm1, %v1913_v22  ;;  %6672 = vmatprep.mubr.msk.f32.mxu0 %vm522_vm1, %v1901_v31 }
 0x363   : > { %6668 = vmatprep.subr.msk.mxu0 %vm522_vm1, %v1911_v13 }
 0x365   : > { %v1903_v1 = vpop.permute.xlu1 %1902  ;;  %2017 = vrot.lane.b32.xlu0 %v7875_v55, %s7584_s9 }
 0x366   : > { %6669 = vmatpush3.xpose.msk.msra.mxu0 %vm522_vm1, %v1911_v13 }
 0x367   : > { %6670 = vmatprep.subr.msk.mxu0 %vm522_vm1, %v1909_v25 }
 0x369   : > { %v2149_v5 = vpop.permute.xlu1 %2148 }
 0x36a   : > { %6671 = vmatpush3.xpose.msk.msra.mxu0 %vm522_vm1, %v1909_v25 }
 0x36b   : > { %6692 = vmatprep.subr.msk.mxu0 %vm522_vm1, %v2149_v5 }
 0x36d   : > { %6673 = vmatmul.mubr.msk.f32.vlgmr.msra.gmra.mxu0 %vm522_vm1, %v1903_v1  ;;  %v1907_v2 = vpop.permute.xlu1 %1906 }
 0x36e   : > { %6675 = vmatprep.mubr.msk.f32.mxu0 %vm522_vm1, %v1905_v12  ;;  %6693 = vmatpush3.xpose.msk.msra.mxu0 %vm522_vm1, %v2149_v5 }
 0x371   : > { %6676 = vmatmul.mubr.msk.f32.gmra.mxu0 %vm522_vm1, %v1907_v2  ;;  %v2147_v6 = vpop.permute.xlu1 %2146 }
 0x372   : > { %6694 = vmatprep.subr.msk.mxu0 %vm522_vm1, %v2147_v6 }
 0x373   : > { %6695 = vmatpush3.xpose.msk.msra.mxu0 %vm522_vm1, %v2147_v6 }
 0x376   : > { %1127 = vadd.xlane.f32.xlu1 %v1126_v9 }
 0x384   : > { %1130 = vadd.xlane.f32.xlu0 %v1129_v18 }
 0x387   : > { %2021 = vrot.lane.b32.xlu1 %v7897_v61, %s7584_s9 }
 0x38b   : > { %2142 = vrot.lane.b32.xlu1 %v7832_v39, %s7583_s23 }
 0x38f   : > { %2136 = vrot.lane.b32.xlu1 %v7848_v45, %s7584_s9 }
 0x393   : > { %2140 = vrot.lane.b32.xlu1 %v7884_v57, %s7584_s9 }
 0x397   : > { %2421 = vrot.lane.b32.xlu1 %v7838_v41, %s7584_s9 }
 0x39a   : > { %2144 = vrot.lane.b32.xlu0 %v7848_v45, %s7583_s23  ;;  %s7504_s23 = scalar_lea.vmem %s9408_s20, 2048 }
 0x39b   : > { %2417 = vrot.lane.b32.xlu1 %v7824_v36, %s7584_s9  ;;  %p7505_p11 = scmp.ne.s32.totalorder %s9408_s20, %s7504_s23 }
 0x39d   : > { %p7506_p1 = pnand %p7505_p11, %p9583_p10 }
 0x39e   : > { %2023 = vrot.lane.b32.xlu0 %v7903_v63, %s7584_s9 }
 0x39f   : > { %2415 = vrot.lane.b32.xlu1 %v7818_v34, %s7584_s9  ;;  %p7507_p2 = pneg %p7506_p1 }
 0x3a2   : > { %2134 = vrot.lane.b32.xlu0 %v7832_v39, %s7584_s9 }
 0x3a3   : > { %2532 = vrot.lane.b32.xlu1 %v7860_v50, %s7584_s9 }
 0x3a4   : > { %v1089_v24 = vpop.xlane.xlu0 %1088 }
 0x3a6   : > { %2138 = vrot.lane.b32.xlu0 %v7862_v51, %s7584_s9  ;;  %v1086_v20 = vpop.xlane.xlu1 %1085 }
 0x3a7   : > { %2530 = vrot.lane.b32.xlu1 %v7852_v47, %s7584_s9  ;;  %7199 = vrcp.f32 %v1086_v20 }
 0x3a8   : > { %7201 = vrcp.f32 %v1089_v24 }
 0x3aa   : > { %2419 = vrot.lane.b32.xlu0 %v7830_v38, %s7584_s9  ;;  %v1092_v14 = vpop.xlane.xlu1 %1091 }
 0x3ab   : > { %2528 = vrot.lane.b32.xlu1 %v7846_v44, %s7584_s9  ;;  %7203 = vrcp.f32 %v1092_v14 }
 0x3ae   : > { %2534 = vrot.lane.b32.xlu0 %v7870_v53, %s7584_s9  ;;  %v1095_v26 = vpop.xlane.xlu0 %1094 }
 0x3af   : > { %2645 = vrot.lane.b32.xlu1 %v7901_v62, %s7584_s9  ;;  %7205 = vrcp.f32 %v1095_v26 }
 0x3b2   : > { %2647 = vrot.lane.b32.xlu0 %v7988_v16, %s7584_s9 }
 0x3b3   : > { %2641 = vrot.lane.b32.xlu1 %v7881_v56, %s7584_s9 }
 0x3b4   : > { %v7200_v7 = vpop.eup %7199  ;;  %v1101_v30 = vpop.xlane.xlu0 %1100 }
 0x3b5   : > { %v7202_v3 = vpop.eup %7201 }
 0x3b6   : > { %2643 = vrot.lane.b32.xlu0 %v7893_v60, %s7584_s9  ;;  %v1098_v43 = vpop.xlane.xlu1 %1097 }
 0x3b7   : > { %2758 = vrot.lane.b32.xlu1 %v7872_v54, %s7584_s9  ;;  %7207 = vrcp.f32 %v1098_v43 }
 0x3b8   : > { %7209 = vrcp.f32 %v1101_v30  ;;  %v1107_v15 = vpop.xlane.xlu0 %1106  ;;  %v7204_v22 = vpop.eup %7203 }
 0x3ba   : > { %2760 = vrot.lane.b32.xlu0 %v7890_v59, %s7584_s9  ;;  %v1104_v17 = vpop.xlane.xlu1 %1103 }
 0x3bb   : > { %7211 = vrcp.f32 %v1104_v17 }
 0x3bc   : > { %v7206_v28 = vpop.eup %7205  ;;  %7213 = vrcp.f32 %v1107_v15 }
 0x3c4   : > { %v1113_v12 = vpop.xlane.xlu0 %1112  ;;  %v7208_v2 = vpop.eup %7207 }
 0x3c5   : > { %v7210_v9 = vpop.eup %7209 }
 0x3c8   : > { %v1119_v14 = vpop.xlane.xlu0 %1118 }
 0x3dd   : > { %v6576_v11 = vpop.f32.mrf.mxu1 }
 0x3de   : > { %v1553_v13 = vmul.f32 %v7202_v3, %v6576_v11 }
 0x3df   : > { %v1210_v10 = vpop.f32.mrf.mxu1 }
 0x3e0   : > { %v1552_v46 = vmul.f32 %v7200_v7, %v1210_v10 }
 0x3e2   : > { %6626 = vmatprep.mubr.msk.f32.mxu1 %vm522_vm1, %v1552_v46 }
 0x3e3   : > { %6627 = vmatmul.mubr.msk.f32.vlgmr.msra.gmra.mxu1 %vm522_vm1, %v1553_v13 }
 0x3e4   : > { %6679 = vmatpush3.xpose.msk.msra.mxu1 %vm522_vm1, %v8222_v27  ;;  %v1110_v27 = vpop.xlane.xlu1 %1109 }
 0x3e5   : > { %v6579_v19 = vpop.f32.mrf.mxu1  ;;  %6680 = vmatprep.subr.msk.mxu1 %vm522_vm1, %v8233_v29  ;;  %7215 = vrcp.f32 %v1110_v27 }
 0x3e6   : > { %v1555_v1 = vmul.f32 %v7206_v28, %v6579_v19  ;;  %7217 = vrcp.f32 %v1113_v12 }
 0x3e7   : > { %v1220_v25 = vpop.f32.mrf.mxu1 }
 0x3e8   : > { %v1554_v31 = vmul.f32 %v7204_v22, %v1220_v25  ;;  %6681 = vmatpush3.xpose.msk.msra.mxu1 %vm522_vm1, %v8233_v29  ;;  %v1116_v24 = vpop.xlane.xlu1 %1115 }
 0x3e9   : > { %6682 = vmatprep.subr.msk.mxu1 %vm522_vm1, %v8241_v8  ;;  %7219 = vrcp.f32 %v1116_v24 }
 0x3ea   : > { %6629 = vmatprep.mubr.msk.f32.mxu1 %vm522_vm1, %v1554_v31  ;;  %7221 = vrcp.f32 %v1119_v14 }
 0x3eb   : > { %6630 = vmatmul.mubr.msk.f32.gmra.mxu1 %vm522_vm1, %v1555_v1 }
 0x3ec   : > { %6683 = vmatpush3.xpose.msk.msra.mxu1 %vm522_vm1, %v8241_v8  ;;  %v7212_v8 = vpop.eup %7211  ;;  %v8318_v30 = vpop.permute.xlu1 %2019 }
 0x3ed   : > { %6684 = vmatprep.subr.msk.mxu1 %vm522_vm1, %v2026_v4  ;;  %v6590_v5 = vpop.f32.mrf.mxu0  ;;  %v7214_v11 = vpop.eup %7213 }
 0x3ee   : > { %v1557_v18 = vmul.f32 %v7210_v9, %v6590_v5 }
 0x3ef   : > { %v1307_v6 = vpop.f32.mrf.mxu0 }
 0x3f0   : > { %v1556_v29 = vmul.f32 %v7208_v2, %v1307_v6  ;;  %6685 = vmatpush3.xpose.msk.msra.mxu1 %vm522_vm1, %v2026_v4  ;;  %v1125_v4 = vpop.xlane.xlu0 %1124 }
 0x3f2   : > { %v6593_v20 = vpop.f32.mrf.mxu0  ;;  %6632 = vmatprep.mubr.msk.f32.mxu1 %vm522_vm1, %v1556_v29  ;;  %v7216_v46 = vpop.eup %7215 }
 0x3f3   : > { %6633 = vmatmul.mubr.msk.f32.gmra.mxu1 %vm522_vm1, %v1557_v18  ;;  %v1559_v7 = vmul.f32 %v7214_v11, %v6593_v20  ;;  %v7218_v15 = vpop.eup %7217 }
 0x3f4   : > { %v1317_v26 = vpop.f32.mrf.mxu0  ;;  %v1122_v3 = vpop.xlane.xlu0 %1121 }
 0x3f5   : > { %v1558_v43 = vmul.f32 %v7212_v8, %v1317_v26  ;;  %7223 = vrcp.f32 %v1122_v3 }
 0x3f6   : > { %v7220_v28 = vpop.eup %7219  ;;  %7225 = vrcp.f32 %v1125_v4 }
 0x3f7   : > { %6635 = vmatprep.mubr.msk.f32.mxu1 %vm522_vm1, %v1558_v43  ;;  %v7222_v27 = vpop.eup %7221 }
 0x3f8   : > { %6636 = vmatmul.mubr.msk.f32.gmra.mxu1 %vm522_vm1, %v1559_v7  ;;  %v2018_v6 = vpop.permute.xlu0 %2017 }
 0x3fd   : > { %v6604_v10 = vpop.f32.mrf.mxu1 }
 0x3fe   : > { %v1561_v22 = vmul.f32 %v7218_v15, %v6604_v10 }
 0x3ff   : > { %v1128_v13 = vpop.xlane.xlu1 %1127  ;;  %v1404_v17 = vpop.f32.mrf.mxu1 }
 0x400   : > { %v1560_v19 = vmul.f32 %v7216_v46, %v1404_v17  ;;  %7227 = vrcp.f32 %v1128_v13 }
 0x401   : > { %v6607_v25 = vpop.f32.mrf.mxu1 }
 0x402   : > { %6638 = vmatprep.mubr.msk.f32.mxu1 %vm522_vm1, %v1560_v19  ;;  %v1563_v12 = vmul.f32 %v7222_v27, %v6607_v25  ;;  %v7224_v20 = vpop.eup %7223 }
 0x403   : > { %v8321_v31 = vpop.permute.xlu1 %2021  ;;  %v1414_v1 = vpop.f32.mrf.mxu1  ;;  %6639 = vmatmul.mubr.msk.f32.gmra.mxu1 %vm522_vm1, %v1561_v22 }
 0x404   : > { %v1562_v5 = vmul.f32 %v7220_v28, %v1414_v1  ;;  %v7226_v14 = vpop.eup %7225 }
 0x406   : > { %6641 = vmatprep.mubr.msk.f32.mxu1 %vm522_vm1, %v1562_v5 }
 0x407   : > { %v2143_v2 = vpop.permute.xlu1 %2142  ;;  %6642 = vmatmul.mubr.msk.f32.gmra.mxu1 %vm522_vm1, %v1563_v12 }
 0x40b   : > { %v2137_v9 = vpop.permute.xlu1 %2136 }
 0x40d   : > { %v1131_v29 = vpop.xlane.xlu0 %1130  ;;  %v6618_v18 = vpop.f32.mrf.mxu0 }
 0x40e   : > { %7229 = vrcp.f32 %v1131_v29  ;;  %v1565_v11 = vmul.f32 %v7226_v14, %v6618_v18  ;;  %v7228_v4 = vpop.eup %7227 }
 0x40f   : > { %v2141_v24 = vpop.permute.xlu1 %2140  ;;  %v1501_v8 = vpop.f32.mrf.mxu0 }
 0x410   : > { %v1564_v26 = vmul.f32 %v7224_v20, %v1501_v8 }
 0x411   : > { %v2145_v43 = vpop.permute.xlu0 %2144  ;;  %v6621_v7 = vpop.f32.mrf.mxu0 }
 0x412   : > { %6644 = vmatprep.mubr.msk.f32.mxu1 %vm522_vm1, %v1564_v26  ;;  %6696 = vmatprep.subr.msk.mxu0 %vm522_vm1, %v2145_v43 }
 0x413   : > { %v2422_v10 = vpop.permute.xlu1 %2421  ;;  %v1511_v3 = vpop.f32.mrf.mxu0  ;;  %6645 = vmatmul.mubr.msk.f32.gmra.mxu1 %vm522_vm1, %v1565_v11  ;;  %6697 = vmatpush3.xpose.msk.msra.mxu0 %vm522_vm1, %v2145_v43 }
 0x414   : > { %v1566_v46 = vmul.f32 %v7228_v4, %v1511_v3  ;;  %6698 = vmatprep.subr.msk.mxu0 %vm522_vm1, %v2143_v2  ;;  %6706 = vmatprep.subr.mxu1 %v2422_v10 }
 0x415   : > { %v2024_v13 = vpop.permute.xlu0 %2023 }
 0x416   : > { %6647 = vmatprep.mubr.msk.f32.mxu1 %vm522_vm1, %v1566_v46 }
 0x417   : > { %v2418_v17 = vpop.permute.xlu1 %2417  ;;  %6699 = vmatpush3.xpose.msk.msra.mxu0 %vm522_vm1, %v2143_v2 }
 0x419   : > { %v2135_v15 = vpop.permute.xlu0 %2134 }
 0x41a   : > { %6700 = vmatprep.mubr.msk.f32.mxu0 %vm522_vm1, %v2135_v15 }
 0x41b   : > { %v7230_v19 = vpop.eup %7229  ;;  %v2416_v22 = vpop.permute.xlu1 %2415  ;;  %6701 = vmatmul.mubr.msk.f32.vlgmr.msra.gmra.mxu0 %vm522_vm1, %v2137_v9 }
 0x41c   : > { %v1567_v25 = vmul.f32 %v7230_v19, %v6621_v7 }
 0x41d   : > { %v6660_v28 = vpop.f32.mrf.mxu0  ;;  %v2139_v1 = vpop.permute.xlu0 %2138 }
 0x41e   : > { %v8337_v27 = vsel %vm7992_vm2, %v6660_v28, -inf  ;;  %6648 = vmatmul.mubr.msk.f32.gmra.mxu1 %vm522_vm1, %v1567_v25  ;;  %6703 = vmatprep.mubr.msk.f32.mxu0 %vm522_vm1, %v2139_v1 }
 0x41f   : > { %v2270_v5 = vsel %vm987_vm3, %v8337_v27, -inf  ;;  %v1881_v12 = vpop.f32.mrf.mxu0  ;;  %v8343_v2 = vpop.permute.xlu1 %2532  ;;  %6704 = vmatmul.mubr.msk.f32.gmra.mxu0 %vm522_vm1, %v2141_v24  ;;  %6686 = vmatprep.mubr.msk.f32.mxu1 %vm522_vm1, %v2018_v6 }
 0x420   : > { %v8349_v9 = vsel %vm7996_vm4, %v1881_v12, -inf  ;;  %2271 = vmax.xlane.f32.xlu1 %v2270_v5 }
 0x421   : > { %v6663_v29 = vpop.f32.mrf.mxu0  ;;  %v2420_v18 = vpop.permute.xlu0 %2419  ;;  %v2267_v20 = vsel %vm987_vm3, %v8349_v9, -inf }
 0x422   : > { %v8355_v8 = vsel %vm8016_vm6, %v6663_v29, -inf  ;;  %2268 = vmax.xlane.f32.xlu0 %v2267_v20  ;;  %6687 = vmatmul.mubr.msk.f32.vlgmr.msra.gmra.mxu1 %vm522_vm1, %v8318_v30 }
 0x423   : > { %v1891_v24 = vpop.f32.mrf.mxu0  ;;  %6707 = vmatpush3.msra.mxu1 %v2422_v10  ;;  %v8359_v6 = vpop.permute.xlu1 %2530  ;;  %6689 = vmatprep.mubr.msk.f32.mxu1 %vm522_vm1, %v8321_v31  ;;  %v2276_v26 = vsel %vm987_vm3, %v8355_v8, -inf }
 0x424   : > { %6708 = vmatprep.subr.mxu1 %v2420_v18  ;;  %v2253_v11 = vsel %vm8012_vm5, %v1891_v24, -inf }
 0x425   : > { %6709 = vmatpush3.msra.mxu1 %v2420_v18  ;;  %v8363_v14 = vpop.permute.xlu0 %2534  ;;  %v2273_v31 = vsel %vm987_vm3, %v2253_v11, -inf }
 0x426   : > { %2277 = vmax.xlane.f32.xlu0 %v2276_v26  ;;  %6710 = vmatprep.subr.mxu1 %v2418_v17 }
 0x427   : > { %6690 = vmatmul.mubr.msk.f32.gmra.mxu1 %vm522_vm1, %v2024_v13  ;;  %v8370_v30 = vpop.permute.xlu1 %2528 }
 0x428   : > { %6711 = vmatpush3.msra.mxu1 %v2418_v17 }
 0x429   : > { %6712 = vmatprep.subr.mxu1 %v2416_v22  ;;  %v2648_v43 = vpop.permute.xlu0 %2647 }
 0x42a   : > { %6713 = vmatpush3.msra.mxu1 %v2416_v22  ;;  %2274 = vmax.xlane.f32.xlu0 %v2273_v31 }
 0x42b   : > { %6720 = vmatprep.subr.mxu1 %v8363_v14  ;;  %6734 = vmatprep.subr.mxu0 %v2648_v43  ;;  %v2646_v7 = vpop.permute.xlu1 %2645 }
 0x42c   : > { %6735 = vmatpush3.msra.mxu0 %v2648_v43 }
 0x42d   : > { %v6674_v4 = vpop.f32.mrf.mxu0  ;;  %6736 = vmatprep.subr.mxu0 %v2646_v7  ;;  %v2644_v10 = vpop.permute.xlu0 %2643 }
 0x42e   : > { %v2256_v3 = vsel %vm7992_vm2, %v6674_v4, -inf  ;;  %6737 = vmatpush3.msra.mxu0 %v2646_v7 }
 0x42f   : > { %v1998_v46 = vpop.f32.mrf.mxu0  ;;  %6738 = vmatprep.subr.mxu0 %v2644_v10  ;;  %v2642_v13 = vpop.permute.xlu1 %2641  ;;  %v2282_v17 = vsel %vm987_vm3, %v2256_v3, -inf }
 0x430   : > { %v2255_v15 = vsel %vm7996_vm4, %v1998_v46, -inf  ;;  %6739 = vmatpush3.msra.mxu0 %v2644_v10  ;;  %2283 = vmax.xlane.f32.xlu0 %v2282_v17 }
 0x431   : > { %v2279_v19 = vsel %vm987_vm3, %v2255_v15, -inf  ;;  %v6677_v22 = vpop.f32.mrf.mxu0  ;;  %6740 = vmatprep.subr.mxu0 %v2642_v13  ;;  %v8388_v18 = vpop.permute.xlu0 %2760 }
 0x432   : > { %v2258_v25 = vsel %vm8016_vm6, %v6677_v22, -inf  ;;  %6741 = vmatpush3.msra.mxu0 %v2642_v13  ;;  %2280 = vmax.xlane.f32.xlu1 %v2279_v19 }
 0x433   : > { %v2288_v28 = vsel %vm987_vm3, %v2258_v25, -inf  ;;  %v2008_v1 = vpop.f32.mrf.mxu0  ;;  %v8386_v29 = vpop.permute.xlu1 %2758 }
 0x434   : > { %v2257_v5 = vsel %vm8012_vm5, %v2008_v1, -inf  ;;  %2289 = vmax.xlane.f32.xlu0 %v2288_v28 }
 0x435   : > { %v2285_v12 = vsel %vm987_vm3, %v2257_v5, -inf }
 0x436   : > { %2286 = vmax.xlane.f32.xlu1 %v2285_v12 }
 0x4a3   : > { %v8390_v20 = vpop.f32.mrf.mxu1 }
 0x4a5   : > { %v8394_v7 = vpop.f32.mrf.mxu1 }
 0x4a9   : > { %v2272_v24 = vpop.xlane.xlu1 %2271 }
 0x4aa   : > { %v2316_v26 = vsub.f32 %v8337_v27, %v2272_v24 }
 0x4ab   : > { %v2269_v43 = vpop.xlane.xlu0 %2268  ;;  %v8396_v46 = vpop.f32.mrf.mxu1 }
 0x4ac   : > { %v2315_v31 = vsub.f32 %v8349_v9, %v2269_v43  ;;  %v2333_v4 = vmul.f32 1.442695, %v2316_v26 }
 0x4ad   : > { %v8399_v19 = vpop.f32.mrf.mxu1 }
 0x4ae   : > { %v2331_v10 = vmul.f32 1.442695, %v2315_v31  ;;  %9525 = vst [vmem:[#allocation30_spill] sm:$0xff] %v8399_v19 }
 0x4af   : > { %v2278_v13 = vpop.xlane.xlu0 %2277 }
 0x4b0   : > { %7231 = vpow2.f32 %v2331_v10  ;;  %v2318_v17 = vsub.f32 %v8355_v8, %v2278_v13 }
 0x4b1   : > { %7233 = vpow2.f32 %v2333_v4 }
 0x4b2   : > { %v2337_v1 = vmul.f32 1.442695, %v2318_v17 }
 0x4b3   : > { %v2275_v22 = vpop.xlane.xlu0 %2274  ;;  %v8401_v27 = vpop.f32.mrf.mxu1 }
 0x4b4   : > { %v2317_v28 = vsub.f32 %v2253_v11, %v2275_v22 }
 0x4b5   : > { %v8403_v9 = vpop.f32.mrf.mxu1 }
 0x4b6   : > { %v2335_v12 = vmul.f32 1.442695, %v2317_v28 }
 0x4b8   : > { %7235 = vpow2.f32 %v2335_v12  ;;  %v8407_v4 = vpop.f32.mrf.mxu1 }
 0x4b9   : > { %7237 = vpow2.f32 %v2337_v1  ;;  %v2284_v24 = vpop.xlane.xlu0 %2283 }
 0x4ba   : > { %v2320_v26 = vsub.f32 %v2256_v3, %v2284_v24 }
 0x4bb   : > { %v2281_v43 = vpop.xlane.xlu1 %2280 }
 0x4bc   : > { %v2319_v31 = vsub.f32 %v2255_v15, %v2281_v43  ;;  %v2341_v8 = vmul.f32 1.442695, %v2320_v26  ;;  %v8416_v15 = vpop.f32.mrf.mxu1 }
 0x4bd   : > { %v8405_v10 = vpop.eup %7231  ;;  %v2290_v13 = vpop.xlane.xlu0 %2289  ;;  %9526 = vst [vmem:[#allocation31_spill] sm:$0xff] %v8416_v15 }
 0x4be   : > { %v8409_v19 = vpop.eup %7233  ;;  %v2339_v11 = vmul.f32 1.442695, %v2319_v31  ;;  %v2322_v17 = vsub.f32 %v2258_v25, %v2290_v13  ;;  %6714 = vmatprep.mubr.msk.f32.mxu1 %vm987_vm3, %v8405_v10  ;;  %v8423_v25 = vld [vmem:[%s9459_s3] ss:$0 sm:$0xff] }
 0x4bf   : > { %v2287_v22 = vpop.xlane.xlu1 %2286  ;;  %6715 = vmatmul.mubr.msk.f32.vlgmr.msra.gmra.mxu1 %vm987_vm3, %v8409_v19 }
 0x4c0   : > { %7239 = vpow2.f32 %v2339_v11  ;;  %v2321_v3 = vsub.f32 %v2257_v5, %v2287_v22  ;;  %6721 = vmatpush3.msra.mxu1 %v8363_v14  ;;  %v2345_v28 = vmul.f32 1.442695, %v2322_v17 }
 0x4c1   : > { %7241 = vpow2.f32 %v2341_v8  ;;  %6722 = vmatprep.subr.mxu1 %v8343_v2 }
 0x4c2   : > { %v2343_v1 = vmul.f32 1.442695, %v2321_v3  ;;  %6723 = vmatpush3.msra.mxu1 %v8343_v2 }
 0x4c3   : > { %6724 = vmatprep.subr.mxu1 %v8359_v6  ;;  %v6640_v12 = vpop.f32.mrf.mxu1 }
 0x4c4   : > { %7243 = vpow2.f32 %v2343_v1  ;;  %6725 = vmatpush3.msra.mxu1 %v8359_v6  ;;  %v8428_v14 = vadd.f32 %v6640_v12, %v8423_v25 }
 0x4c5   : > { %v8430_v5 = vpop.eup %7235  ;;  %7245 = vpow2.f32 %v2345_v28  ;;  %6726 = vmatprep.subr.mxu1 %v8370_v30  ;;  %v1722_v2 = vpop.f32.mrf.mxu1 }
 0x4c6   : > { %9527 = vst [vmem:[#allocation32_spill] sm:$0xff] %v8428_v14  ;;  %v8433_v24 = vpop.eup %7237  ;;  %6727 = vmatpush3.msra.mxu1 %v8370_v30  ;;  %v8437_v26 = vadd.f32 %v8423_v25, %v1722_v2  ;;  %6717 = vmatprep.mubr.msk.f32.mxu1 %vm987_vm3, %v8430_v5 }
 0x4c7   : > { %6748 = vmatprep.subr.mxu1 %v8388_v18  ;;  %6718 = vmatmul.mubr.msk.f32.gmra.mxu1 %vm987_vm3, %v8433_v24  ;;  %v6643_v6 = vpop.f32.mrf.mxu1 }
 0x4c8   : > { %9528 = vst [vmem:[#allocation33_spill] sm:$0xff] %v8437_v26  ;;  %v8445_v43 = vadd.f32 %v6643_v6, %v8423_v25 }
 0x4c9   : > { %v1732_v31 = vpop.f32.mrf.mxu1 }
 0x4ca   : > { %9529 = vst [vmem:[#allocation34_spill] sm:$0xff] %v8445_v43  ;;  %v8448_v8 = vadd.f32 %v8423_v25, %v1732_v31 }
 0x4cc   : > { %9530 = vst [vmem:[#allocation35_spill] sm:$0xff] %v8448_v8 }
 0x4cd   : > { %v7240_v30 = vpop.eup %7239 }
 0x4ce   : > { %v8450_v13 = vpop.eup %7241  ;;  %6728 = vmatprep.mubr.msk.f32.mxu1 %vm987_vm3, %v7240_v30 }
 0x4cf   : > { %6729 = vmatmul.mubr.msk.f32.vlgmr.msra.gmra.mxu1 %vm987_vm3, %v8450_v13 }
 0x4d0   : > { %6749 = vmatpush3.msra.mxu1 %v8388_v18 }
 0x4d1   : > { %v7244_v11 = vpop.eup %7243  ;;  %6750 = vmatprep.subr.mxu1 %v8386_v29 }
 0x4d2   : > { %v7246_v17 = vpop.eup %7245  ;;  %6751 = vmatpush3.msra.mxu1 %v8386_v29  ;;  %6731 = vmatprep.mubr.msk.f32.mxu1 %vm987_vm3, %v7244_v11 }
 0x4d3   : > { %6732 = vmatmul.mubr.msk.f32.gmra.mxu1 %vm987_vm3, %v7246_v17  ;;  %v6646_v22 = vpop.f32.mrf.mxu1 }
 0x4d4   : > { %v8461_v3 = vadd.f32 %v6646_v22, %v8423_v25 }
 0x4d5   : > { %v1742_v28 = vpop.f32.mrf.mxu1 }
 0x4d6   : > { %9531 = vst [vmem:[#allocation36_spill] sm:$0xff] %v8461_v3  ;;  %v8464_v1 = vadd.f32 %v8423_v25, %v1742_v28 }
 0x4d8   : > { %9532 = vst [vmem:[#allocation37_spill] sm:$0xff] %v8464_v1 }
 0x4db   : > { %v6702_v12 = vpop.f32.mrf.mxu0 }
 0x4dc   : > { %v2264_v18 = vsel %vm7992_vm2, %v6702_v12, -inf }
 0x4dd   : > { %v2306_v2 = vsel %vm987_vm3, %v2264_v18, -inf  ;;  %v2232_v6 = vpop.f32.mrf.mxu0 }
 0x4de   : > { %v2263_v29 = vsel %vm7996_vm4, %v2232_v6, -inf  ;;  %2307 = vmax.xlane.f32.xlu0 %v2306_v2  ;;  %v6649_v31 = vpop.f32.mrf.mxu1 }
 0x4df   : > { %v8472_v15 = vadd.f32 %v6649_v31, %v8423_v25  ;;  %v6705_v22 = vpop.f32.mrf.mxu0  ;;  %v2303_v28 = vsel %vm987_vm3, %v2263_v29, -inf }
 0x4e0   : > { %v1752_v3 = vpop.f32.mrf.mxu1  ;;  %v2266_v12 = vsel %vm8016_vm6, %v6705_v22, -inf }
 0x4e1   : > { %9533 = vst [vmem:[#allocation38_spill] sm:$0xff] %v8472_v15  ;;  %v8476_v1 = vadd.f32 %v8423_v25, %v1752_v3  ;;  %v2242_v8 = vpop.f32.mrf.mxu0  ;;  %v2312_v15 = vsel %vm987_vm3, %v2266_v12, -inf }
 0x4e2   : > { %v2265_v43 = vsel %vm8012_vm5, %v2242_v8, -inf  ;;  %2304 = vmax.xlane.f32.xlu0 %v2303_v28  ;;  %v6688_v2 = vpop.f32.mrf.mxu1 }
 0x4e3   : > { %9534 = vst [vmem:[#allocation39_spill] sm:$0xff] %v8476_v1  ;;  %v2309_v6 = vsel %vm987_vm3, %v2265_v43, -inf  ;;  %v2260_v3 = vsel %vm7992_vm2, %v6688_v2, -inf }
 0x4e4   : > { %2310 = vmax.xlane.f32.xlu1 %v2309_v6  ;;  %v2115_v31 = vpop.f32.mrf.mxu1  ;;  %v2294_v8 = vsel %vm987_vm3, %v2260_v3, -inf }
 0x4e5   : > { %v2259_v26 = vsel %vm7996_vm4, %v2115_v31, -inf }
 0x4e6   : > { %v2291_v1 = vsel %vm987_vm3, %v2259_v26, -inf  ;;  %2313 = vmax.xlane.f32.xlu0 %v2312_v15  ;;  %v2366_v15 = vsel %vm987_vm3, %v8409_v19, 0.0  ;;  %v2378_v19 = vsel %vm987_vm3, %v8450_v13, 0.0 }
 0x4e7   : > { %v6691_v22 = vpop.f32.mrf.mxu1 }
 0x4e8   : > { %2292 = vmax.xlane.f32.xlu1 %v2291_v1  ;;  %v2262_v6 = vsel %vm8016_vm6, %v6691_v22, -inf  ;;  %v2363_v1 = vsel %vm987_vm3, %v8405_v10, 0.0  ;;  %v2375_v22 = vsel %vm987_vm3, %v7240_v30, 0.0  ;;  %v2384_v10 = vsel %vm987_vm3, %v7246_v17, 0.0  ;;  %v504_v30 = vld [vmem:[#allocation7 + $0x18] sm:$0xff] }
 0x4e9   : > { %v2125_v28 = vpop.f32.mrf.mxu1  ;;  %v2300_v2 = vsel %vm987_vm3, %v2262_v6, -inf  ;;  %6762 = vmatprep.subr.mxu0 %v504_v30 }
 0x4ea   : > { %v2261_v14 = vsel %vm8012_vm5, %v2125_v28, -inf  ;;  %2295 = vmax.xlane.f32.xlu0 %v2294_v8  ;;  %v2369_v8 = vsel %vm987_vm3, %v8430_v5, 0.0  ;;  %v2381_v28 = vsel %vm987_vm3, %v7244_v11, 0.0 }
 0x4eb   : > { %v2297_v31 = vsel %vm987_vm3, %v2261_v14, -inf }
 0x4ec   : > { %2298 = vmax.xlane.f32.xlu1 %v2297_v31  ;;  %v2372_v31 = vsel %vm987_vm3, %v8433_v24, 0.0 }
 0x4ee   : > { %2301 = vmax.xlane.f32.xlu0 %v2300_v2 }
 0x4fd   : > { %2754 = vrot.lane.b32.xlu1 %v7840_v42, %s7584_s9 }
 0x504   : > { %2756 = vrot.lane.b32.xlu0 %v7854_v48, %s7584_s9  ;;  %s7589_s9 = smov [#allocation8]  }
 0x505   : > { %s7508_s10 = sshll.u32 %s7589_s9, 4  ;;  %s7509_s10 = int_to_ptr.vmem [resolvable:$false] %s7508_s10 }
 0x506   : > { %s7510_s5 = scalar_lea.vmem %s7509_s10, 4096  ;;  %p7511_p6 = scmp.lt.s32.totalorder %s9408_s20, %s7509_s10 }
 0x507   : > { %p7512_p12 = scmp.lt.s32.totalorder %s7510_s5, %s7504_s23 }
 0x509   : > { %p7513_p3 = por %p7512_p12, %p7511_p6 }
 0x50b   : > { %p7514_p9 = pnand %p7513_p3, %p7507_p2 }
 0x521   : > { %2367 = vadd.xlane.f32.xlu1 %v2366_v15 }
 0x523   : > { %2364 = vadd.xlane.f32.xlu0 %v2363_v1 }
 0x525   : > { %2376 = vadd.xlane.f32.xlu1 %v2375_v22 }
 0x527   : > { %2370 = vadd.xlane.f32.xlu0 %v2369_v8 }
 0x529   : > { %2382 = vadd.xlane.f32.xlu1 %v2381_v28 }
 0x52b   : > { %2373 = vadd.xlane.f32.xlu0 %v2372_v31 }
 0x52f   : > { %2379 = vadd.xlane.f32.xlu0 %v2378_v19 }
 0x533   : > { %2385 = vadd.xlane.f32.xlu0 %v2384_v10 }
 0x53a   : > { %3134 = vrot.lane.b32.xlu1 %v7834_v40, %s7585_s7 }
 0x567   : > { %v2308_v5 = vpop.xlane.xlu0 %2307 }
 0x568   : > { %v2328_v11 = vsub.f32 %v2264_v18, %v2308_v5 }
 0x56a   : > { %v2357_v1 = vmul.f32 1.442695, %v2328_v11 }
 0x56b   : > { %v2305_v2 = vpop.xlane.xlu0 %2304 }
 0x56c   : > { %v2327_v15 = vsub.f32 %v2263_v29, %v2305_v2 }
 0x56d   : > { %v2311_v24 = vpop.xlane.xlu1 %2310 }
 0x56e   : > { %v2355_v22 = vmul.f32 1.442695, %v2327_v15  ;;  %v2329_v8 = vsub.f32 %v2265_v43, %v2311_v24 }
 0x56f   : > { %v2314_v28 = vpop.xlane.xlu0 %2313 }
 0x570   : > { %7247 = vpow2.f32 %v2355_v22  ;;  %v2359_v13 = vmul.f32 1.442695, %v2329_v8  ;;  %v2330_v31 = vsub.f32 %v2266_v12, %v2314_v28  ;;  %v503_v8 = vld [vmem:[#allocation7 + $0x10] sm:$0xff] }
 0x571   : > { %7249 = vpow2.f32 %v2357_v1  ;;  %v2293_v17 = vpop.xlane.xlu1 %2292 }
 0x572   : > { %7251 = vpow2.f32 %v2359_v13  ;;  %v2361_v19 = vmul.f32 1.442695, %v2330_v31  ;;  %v2323_v10 = vsub.f32 %v2259_v26, %v2293_v17 }
 0x573   : > { %v2296_v48 = vpop.xlane.xlu0 %2295 }
 0x574   : > { %v2347_v42 = vmul.f32 1.442695, %v2323_v10  ;;  %v2324_v32 = vsub.f32 %v2260_v3, %v2296_v48  ;;  %7253 = vpow2.f32 %v2361_v19 }
 0x575   : > { %v2299_v18 = vpop.xlane.xlu1 %2298 }
 0x576   : > { %7255 = vpow2.f32 %v2347_v42  ;;  %v2349_v29 = vmul.f32 1.442695, %v2324_v32  ;;  %v2325_v5 = vsub.f32 %v2261_v14, %v2299_v18  ;;  %v9535_v18 = vld [vmem:[#allocation18_spill] sm:$0xff] }
 0x577   : > { %v2302_v11 = vpop.xlane.xlu0 %2301 }
 0x578   : > { %7257 = vpow2.f32 %v2349_v29  ;;  %v2351_v43 = vmul.f32 1.442695, %v2325_v5  ;;  %v2326_v2 = vsub.f32 %v2262_v6, %v2302_v11 }
 0x579   : > { %v2755_v24 = vpop.permute.xlu1 %2754 }
 0x57a   : > { %7259 = vpow2.f32 %v2351_v43  ;;  %v2353_v15 = vmul.f32 1.442695, %v2326_v2 }
 0x57b   : > { %v2757_v12 = vpop.permute.xlu0 %2756 }
 0x57c   : > { %7261 = vpow2.f32 %v2353_v15  ;;  %6752 = vmatprep.subr.mxu1 %v2757_v12 }
 0x57d   : > { %v7248_v1 = vpop.eup %7247  ;;  %6753 = vmatpush3.msra.mxu1 %v2757_v12 }
 0x57e   : > { %v7250_v26 = vpop.eup %7249  ;;  %6754 = vmatprep.subr.mxu1 %v2755_v24  ;;  %6756 = vmatprep.mubr.msk.f32.mxu1 %vm987_vm3, %v7248_v1  ;;  %v2399_v42 = vsel %vm987_vm3, %v7248_v1, 0.0 }
 0x57f   : > { %v7252_v48 = vpop.eup %7251  ;;  %2400 = vadd.xlane.f32.xlu0 %v2399_v42  ;;  %6755 = vmatpush3.msra.mxu1 %v2755_v24  ;;  %v2402_v3 = vsel %vm987_vm3, %v7250_v26, 0.0  ;;  %v6716_v19 = vpop.f32.mrf.mxu1 }
 0x580   : > { %6757 = vmatmul.mubr.msk.f32.vlgmr.msra.gmra.mxu1 %vm987_vm3, %v7250_v26  ;;  %v2405_v32 = vsel %vm987_vm3, %v7252_v48, 0.0 }
 0x581   : > { %2406 = vadd.xlane.f32.xlu1 %v2405_v32  ;;  %6759 = vmatprep.mubr.msk.f32.mxu1 %vm987_vm3, %v7252_v48  ;;  %v7254_v14 = vpop.eup %7253  ;;  %v2505_v5 = vpop.f32.mrf.mxu1 }
 0x582   : > { %v2408_v15 = vsel %vm987_vm3, %v7254_v14, 0.0 }
 0x583   : > { %v8521_v6 = vpop.eup %7255  ;;  %2403 = vadd.xlane.f32.xlu0 %v2402_v3 }
 0x584   : > { %6742 = vmatprep.mubr.msk.f32.mxu0 %vm987_vm3, %v8521_v6  ;;  %6760 = vmatmul.mubr.msk.f32.gmra.mxu1 %vm987_vm3, %v7254_v14 }
 0x585   : > { %v8526_v22 = vpop.eup %7257 }
 0x586   : > { %6743 = vmatmul.mubr.msk.f32.vlgmr.msra.gmra.mxu0 %vm987_vm3, %v8526_v22 }
 0x587   : > { %v8530_v28 = vpop.eup %7259  ;;  %6763 = vmatpush3.msra.mxu0 %v504_v30  ;;  %v6719_v43 = vpop.f32.mrf.mxu1 }
 0x588   : > { %6745 = vmatprep.mubr.msk.f32.mxu0 %vm987_vm3, %v8530_v28  ;;  %6764 = vmatprep.subr.mxu0 %v503_v8 }
 0x589   : > { %v8534_v13 = vpop.eup %7261  ;;  %6765 = vmatpush3.msra.mxu0 %v503_v8  ;;  %v2515_v24 = vpop.f32.mrf.mxu1 }
 0x58a   : > { %6746 = vmatmul.mubr.msk.f32.gmra.mxu0 %vm987_vm3, %v8534_v13 }
 0x58f   : > { %v6730_v42 = vpop.f32.mrf.mxu1 }
 0x591   : > { %v2618_v8 = vpop.f32.mrf.mxu1 }
 0x592   : > { %3130 = vrot.lane.b32.xlu1 %v7820_v35, %s7585_s7 }
 0x596   : > { %3120 = vrot.lane.b32.xlu1 %v7814_v33, %s7586_s11 }
 0x599   : > { %3132 = vrot.lane.b32.xlu0 %v7826_v37, %s7585_s7 }
 0x59a   : > { %3251 = vrot.lane.b32.xlu1 %v7864_v52, %s7585_s7 }
 0x59e   : > { %3122 = vrot.lane.b32.xlu1 %v7820_v35, %s7586_s11 }
 0x5a2   : > { %3249 = vrot.lane.b32.xlu1 %v7856_v49, %s7585_s7 }
 0x5a6   : > { %3368 = vrot.lane.b32.xlu1 %v7903_v63, %s7585_s7 }
 0x5aa   : > { %3126 = vrot.lane.b32.xlu1 %v7834_v40, %s7586_s11  ;;  %v2368_v30 = vpop.xlane.xlu1 %2367 }
 0x5ab   : > { %7263 = vrcp.f32 %v2368_v30 }
 0x5ac   : > { %v2365_v31 = vpop.xlane.xlu0 %2364 }
 0x5ad   : > { %7265 = vrcp.f32 %v2365_v31 }
 0x5ae   : > { %3366 = vrot.lane.b32.xlu1 %v7897_v61, %s7585_s7  ;;  %v2377_v17 = vpop.xlane.xlu1 %2376 }
 0x5b0   : > { %v2371_v10 = vpop.xlane.xlu0 %2370 }
 0x5b1   : > { %7267 = vrcp.f32 %v2371_v10  ;;  %v6733_v10 = vpop.f32.mrf.mxu1 }
 0x5b2   : > { %3239 = vrot.lane.b32.xlu1 %v9535_v18, %s7586_s11  ;;  %v2383_v29 = vpop.xlane.xlu1 %2382  ;;  %7269 = vrcp.f32 %v2377_v17 }
 0x5b4   : > { %v2374_v11 = vpop.xlane.xlu0 %2373 }
 0x5b5   : > { %7271 = vrcp.f32 %v2374_v11 }
 0x5b6   : > { %3485 = vrot.lane.b32.xlu1 %v7884_v57, %s7585_s7  ;;  %v3135_v2 = vpop.permute.xlu1 %3134  ;;  %7273 = vrcp.f32 %v2383_v29 }
 0x5b7   : > { %6790 = vmatprep.subr.msk.mxu1 %vm522_vm1, %v3135_v2 }
 0x5b8   : > { %2409 = vadd.xlane.f32.xlu0 %v2408_v15  ;;  %v2380_v12 = vpop.xlane.xlu0 %2379  ;;  %6791 = vmatpush3.xpose.msk.msra.mxu1 %vm522_vm1, %v3135_v2  ;;  %v7264_v1 = vpop.eup %7263 }
 0x5b9   : > { %7275 = vrcp.f32 %v2380_v12  ;;  %v2896_v32 = vmul.f32 %v7264_v1, %v6716_v19 }
 0x5ba   : > { %v7266_v26 = vpop.eup %7265  ;;  %3243 = vrot.lane.b32.xlu1 %v7864_v52, %s7586_s11 }
 0x5bb   : > { %v2895_v48 = vmul.f32 %v7266_v26, %v2505_v5  ;;  %v2628_v5 = vpop.f32.mrf.mxu1  ;;  %v2387_v26 = vsel %vm987_vm3, %v8521_v6, 0.0  ;;  %v2390_v6 = vsel %vm987_vm3, %v8526_v22, 0.0 }
 0x5bc   : > { %v2386_v3 = vpop.xlane.xlu0 %2385 }
 0x5bd   : > { %7277 = vrcp.f32 %v2386_v3  ;;  %6766 = vmatprep.mubr.msk.f32.mxu0 %vm522_vm1, %v2895_v48  ;;  %v2396_v48 = vsel %vm987_vm3, %v8534_v13, 0.0 }
 0x5be   : > { %v7268_v14 = vpop.eup %7267  ;;  %6767 = vmatmul.mubr.msk.f32.vlgmr.msra.gmra.mxu0 %vm522_vm1, %v2896_v32 }
 0x5bf   : > { %v2897_v30 = vmul.f32 %v7268_v14, %v2515_v24  ;;  %v7270_v31 = vpop.eup %7269 }
 0x5c0   : > { %v2899_v11 = vmul.f32 %v7270_v31, %v2618_v8 }
 0x5c1   : > { %6769 = vmatprep.mubr.msk.f32.mxu0 %vm522_vm1, %v2897_v30 }
 0x5c2   : > { %v7272_v17 = vpop.eup %7271 }
 0x5c3   : > { %v2898_v29 = vmul.f32 %v7272_v17, %v6719_v43  ;;  %v7274_v2 = vpop.eup %7273  ;;  %v9536_v43 = vld [vmem:[#allocation16_spill] sm:$0xff] }
 0x5c4   : > { %v2901_v12 = vmul.f32 %v7274_v2, %v2628_v5 }
 0x5c5   : > { %6770 = vmatmul.mubr.msk.f32.gmra.mxu0 %vm522_vm1, %v2898_v29 }
 0x5c6   : > { %v7276_v19 = vpop.eup %7275  ;;  %6772 = vmatprep.mubr.msk.f32.mxu0 %vm522_vm1, %v2899_v11 }
 0x5c7   : > { %v2900_v15 = vmul.f32 %v7276_v19, %v6730_v42  ;;  %v2393_v42 = vsel %vm987_vm3, %v8530_v28, 0.0 }
 0x5c9   : > { %6773 = vmatmul.mubr.msk.f32.gmra.mxu0 %vm522_vm1, %v2900_v15 }
 0x5ca   : > { %v7278_v1 = vpop.eup %7277  ;;  %6775 = vmatprep.mubr.msk.f32.mxu0 %vm522_vm1, %v2901_v12 }
 0x5cb   : > { %v2902_v24 = vmul.f32 %v7278_v1, %v6733_v10 }
 0x5cd   : > { %6776 = vmatmul.mubr.msk.f32.gmra.mxu0 %vm522_vm1, %v2902_v24 }
 0x5ce   : > { %3128 = vrot.lane.b32.xlu0 %v7814_v33, %s7585_s7 }
 0x5d2   : > { %3247 = vrot.lane.b32.xlu0 %v9535_v18, %s7585_s7 }
 0x5d6   : > { %3124 = vrot.lane.b32.xlu0 %v7826_v37, %s7586_s11 }
 0x5da   : > { %3245 = vrot.lane.b32.xlu0 %v9536_v43, %s7585_s7 }
 0x5de   : > { %3237 = vrot.lane.b32.xlu0 %v9536_v43, %s7586_s11  ;;  %2388 = vadd.xlane.f32.xlu1 %v2387_v26 }
 0x5e2   : > { %3364 = vrot.lane.b32.xlu0 %v7887_v58, %s7585_s7  ;;  %2394 = vadd.xlane.f32.xlu1 %v2393_v42 }
 0x5e6   : > { %3241 = vrot.lane.b32.xlu0 %v7856_v49, %s7586_s11 }
 0x5f3   : > { %3483 = vrot.lane.b32.xlu1 %v7862_v51, %s7585_s7 }
 0x5f7   : > { %3356 = vrot.lane.b32.xlu1 %v7887_v58, %s7586_s11 }
 0x5fb   : > { %3358 = vrot.lane.b32.xlu1 %v7897_v61, %s7586_s11 }
 0x5ff   : > { %3479 = vrot.lane.b32.xlu1 %v7832_v39, %s7585_s7 }
 0x603   : > { %3473 = vrot.lane.b32.xlu1 %v7848_v45, %s7586_s11 }
 0x605   : > { %2391 = vadd.xlane.f32.xlu0 %v2390_v6 }
 0x607   : > { %3477 = vrot.lane.b32.xlu1 %v7884_v57, %s7586_s11 }
 0x608   : > { %v8605_v28 = vpop.xlane.xlu0 %2400 }
 0x609   : > { %2397 = vadd.xlane.f32.xlu0 %v2396_v48 }
 0x60a   : > { %v8609_v32 = vpop.xlane.xlu1 %2406 }
 0x60b   : > { %3754 = vrot.lane.b32.xlu1 %v7838_v41, %s7586_s11 }
 0x60c   : > { %v8613_v3 = vpop.xlane.xlu0 %2403 }
 0x60e   : > { %v3131_v14 = vpop.permute.xlu1 %3130 }
 0x60f   : > { %3750 = vrot.lane.b32.xlu1 %v7824_v36, %s7586_s11 }
 0x610   : > { %v3133_v22 = vpop.permute.xlu0 %3132 }
 0x611   : > { %6792 = vmatprep.subr.msk.mxu1 %vm522_vm1, %v3133_v22 }
 0x612   : > { %6793 = vmatpush3.xpose.msk.msra.mxu1 %vm522_vm1, %v3133_v22  ;;  %v3121_v8 = vpop.permute.xlu1 %3120 }
 0x613   : > { %3748 = vrot.lane.b32.xlu1 %v7818_v34, %s7586_s11  ;;  %6794 = vmatprep.subr.msk.mxu1 %vm522_vm1, %v3131_v14  ;;  %v9557_v34 = vld [vmem:[#allocation20_spill] sm:$0xff] }
 0x614   : > { %6798 = vmatprep.mubr.msk.f32.mxu1 %vm522_vm1, %v3121_v8 }
 0x616   : > { %6795 = vmatpush3.xpose.msk.msra.mxu1 %vm522_vm1, %v3131_v14  ;;  %v3252_v13 = vpop.permute.xlu1 %3251 }
 0x617   : > { %3861 = vrot.lane.b32.xlu1 %v7860_v50, %s7586_s11 }
 0x61a   : > { %v3123_v30 = vpop.permute.xlu1 %3122 }
 0x61b   : > { %3859 = vrot.lane.b32.xlu1 %v7852_v47, %s7586_s11 }
 0x61e   : > { %v3250_v31 = vpop.permute.xlu1 %3249 }
 0x61f   : > { %3362 = vrot.lane.b32.xlu0 %v7875_v55, %s7585_s7  ;;  %3857 = vrot.lane.b32.xlu1 %v7846_v44, %s7586_s11  ;;  %v9554_v44 = vld [vmem:[#allocation39_spill] sm:$0xff] }
 0x622   : > { %v3369_v17 = vpop.permute.xlu1 %3368 }
 0x623   : > { %3354 = vrot.lane.b32.xlu0 %v7875_v55, %s7586_s11  ;;  %3970 = vrot.lane.b32.xlu1 %v7901_v62, %s7586_s11 }
 0x624   : > { %6818 = vmatprep.subr.msk.mxu0 %vm522_vm1, %v3369_v17 }
 0x625   : > { %6819 = vmatpush3.xpose.msk.msra.mxu0 %vm522_vm1, %v3369_v17 }
 0x626   : > { %v3127_v10 = vpop.permute.xlu1 %3126 }
 0x627   : > { %3481 = vrot.lane.b32.xlu0 %v7848_v45, %s7585_s7  ;;  %3966 = vrot.lane.b32.xlu1 %v7881_v56, %s7586_s11 }
 0x62a   : > { %v3367_v29 = vpop.permute.xlu1 %3366 }
 0x62b   : > { %3360 = vrot.lane.b32.xlu0 %v7903_v63, %s7586_s11  ;;  %4079 = vrot.lane.b32.xlu1 %v7872_v54, %s7586_s11 }
 0x62c   : > { %6820 = vmatprep.subr.msk.mxu0 %vm522_vm1, %v3367_v29 }
 0x62d   : > { %6821 = vmatpush3.xpose.msk.msra.mxu0 %vm522_vm1, %v3367_v29 }
 0x62e   : > { %v3240_v12 = vpop.permute.xlu1 %3239 }
 0x62f   : > { %3471 = vrot.lane.b32.xlu0 %v7832_v39, %s7586_s11 }
 0x632   : > { %v3486_v24 = vpop.permute.xlu1 %3485 }
 0x633   : > { %3475 = vrot.lane.b32.xlu0 %v7862_v51, %s7586_s11 }
 0x636   : > { %v3244_v6 = vpop.permute.xlu1 %3243 }
 0x637   : > { %3752 = vrot.lane.b32.xlu0 %v7830_v38, %s7586_s11 }
 0x63b   : > { %3863 = vrot.lane.b32.xlu0 %v7870_v53, %s7586_s11 }
 0x63f   : > { %3972 = vrot.lane.b32.xlu0 %v7988_v16, %s7586_s11 }
 0x641   : > { %v8658_v11 = vpop.xlane.xlu0 %2409 }
 0x643   : > { %3968 = vrot.lane.b32.xlu0 %v7893_v60, %s7586_s11 }
 0x645   : > { %v3129_v2 = vpop.permute.xlu0 %3128 }
 0x646   : > { %6796 = vmatprep.subr.msk.mxu1 %vm522_vm1, %v3129_v2  ;;  %v6744_v8 = vpop.f32.mrf.mxu0 }
 0x647   : > { %4081 = vrot.lane.b32.xlu0 %v7890_v59, %s7586_s11  ;;  %6797 = vmatpush3.xpose.msk.msra.mxu1 %vm522_vm1, %v3129_v2 }
 0x648   : > { %6804 = vmatprep.subr.msk.mxu1 %vm522_vm1, %v3252_v13 }
 0x649   : > { %v3248_v19 = vpop.permute.xlu0 %3247 }
 0x64a   : > { %6799 = vmatmul.mubr.msk.f32.vlgmr.msra.gmra.mxu1 %vm522_vm1, %v3123_v30 }
 0x64b   : > { %6805 = vmatpush3.xpose.msk.msra.mxu1 %vm522_vm1, %v3252_v13  ;;  %v2731_v13 = vpop.f32.mrf.mxu0 }
 0x64c   : > { %6806 = vmatprep.subr.msk.mxu1 %vm522_vm1, %v3250_v31 }
 0x64d   : > { %v3125_v5 = vpop.permute.xlu0 %3124 }
 0x64e   : > { %6801 = vmatprep.mubr.msk.f32.mxu1 %vm522_vm1, %v3125_v5 }
 0x64f   : > { %6802 = vmatmul.mubr.msk.f32.gmra.mxu1 %vm522_vm1, %v3127_v10  ;;  %v6747_v10 = vpop.f32.mrf.mxu0 }
 0x650   : > { %6807 = vmatpush3.xpose.msk.msra.mxu1 %vm522_vm1, %v3250_v31 }
 0x651   : > { %6808 = vmatprep.subr.msk.mxu1 %vm522_vm1, %v3248_v19  ;;  %v3246_v15 = vpop.permute.xlu0 %3245  ;;  %v2741_v2 = vpop.f32.mrf.mxu0 }
 0x654   : > { %6809 = vmatpush3.xpose.msk.msra.mxu1 %vm522_vm1, %v3248_v19  ;;  %v1768_v19 = vadd.f32 %v8390_v20, %v8423_v25 }
 0x655   : > { %6810 = vmatprep.subr.msk.mxu1 %vm522_vm1, %v3246_v15  ;;  %v3238_v1 = vpop.permute.xlu0 %3237 }
 0x656   : > { %6812 = vmatprep.mubr.msk.f32.mxu1 %vm522_vm1, %v3238_v1 }
 0x658   : > { %6811 = vmatpush3.xpose.msk.msra.mxu1 %vm522_vm1, %v3246_v15  ;;  %v1767_v15 = vadd.f32 %v8423_v25, %v8394_v7  ;;  %v1772_v7 = vadd.f32 %v8401_v27, %v8423_v25 }
 0x659   : > { %6832 = vmatprep.subr.msk.mxu1 %vm522_vm1, %v3486_v24  ;;  %v3365_v26 = vpop.permute.xlu0 %3364 }
 0x65a   : > { %6822 = vmatprep.subr.msk.mxu0 %vm522_vm1, %v3365_v26 }
 0x65b   : > { %6813 = vmatmul.mubr.msk.f32.vlgmr.msra.gmra.mxu1 %vm522_vm1, %v3240_v12  ;;  %6823 = vmatpush3.xpose.msk.msra.mxu0 %vm522_vm1, %v3365_v26 }
 0x65c   : > { %6833 = vmatpush3.xpose.msk.msra.mxu1 %vm522_vm1, %v3486_v24 }
 0x65d   : > { %v3242_v42 = vpop.permute.xlu0 %3241 }
 0x65e   : > { %6815 = vmatprep.mubr.msk.f32.mxu1 %vm522_vm1, %v3242_v42  ;;  %v1770_v42 = vadd.f32 %v8396_v46, %v8423_v25 }
 0x65f   : > { %6816 = vmatmul.mubr.msk.f32.gmra.mxu1 %vm522_vm1, %v3244_v6 }
 0x667   : > { %v2389_v48 = vpop.xlane.xlu1 %2388 }
 0x668   : > { %7279 = vrcp.f32 %v2389_v48  ;;  %v9537_v48 = vld [vmem:[#allocation30_spill] sm:$0xff] }
 0x66b   : > { %v2395_v14 = vpop.xlane.xlu1 %2394 }
 0x66c   : > { %7281 = vrcp.f32 %v2395_v14 }
 0x66f   : > { %v3484_v22 = vpop.permute.xlu1 %3483 }
 0x670   : > { %6834 = vmatprep.subr.msk.mxu1 %vm522_vm1, %v3484_v22 }
 0x671   : > { %6835 = vmatpush3.xpose.msk.msra.mxu1 %vm522_vm1, %v3484_v22  ;;  %v1769_v22 = vadd.f32 %v8423_v25, %v9537_v48 }
 0x673   : > { %v8687_v30 = vpop.permute.xlu1 %3356 }
 0x675   : > { %v7280_v31 = vpop.eup %7279 }
 0x676   : > { %v2903_v17 = vmul.f32 %v7280_v31, %v2731_v13 }
 0x677   : > { %v8690_v29 = vpop.permute.xlu1 %3358 }
 0x678   : > { %6778 = vmatprep.mubr.msk.f32.mxu0 %vm522_vm1, %v2903_v17 }
 0x679   : > { %v7282_v14 = vpop.eup %7281 }
 0x67b   : > { %v3480_v1 = vpop.permute.xlu1 %3479 }
 0x67e   : > { %v6768_v5 = vpop.f32.mrf.mxu0 }
 0x67f   : > { %v8696_v12 = vadd.f32 %v6768_v5, %v1768_v19  ;;  %v8704_v13 = vpop.permute.xlu1 %3473  ;;  %v1771_v5 = vadd.f32 %v8423_v25, %v8403_v9 }
 0x680   : > { %v3025_v24 = vpop.f32.mrf.mxu0 }
 0x681   : > { %v8698_v26 = vadd.f32 %v3025_v24, %v1767_v15  ;;  %v1774_v24 = vadd.f32 %v8407_v4, %v8423_v25 }
 0x683   : > { %v3478_v48 = vpop.permute.xlu1 %3477 }
 0x685   : > { %v6771_v6 = vpop.f32.mrf.mxu0 }
 0x686   : > { %v8706_v20 = vadd.f32 %v6771_v6, %v1770_v42 }
 0x687   : > { %v3035_v31 = vpop.f32.mrf.mxu0 }
 0x688   : > { %v8710_v17 = vadd.f32 %v3035_v31, %v1769_v22  ;;  %v3755_v22 = vpop.permute.xlu1 %3754 }
 0x689   : > { %v6774_v19 = vpop.f32.mrf.mxu0 }
 0x68a   : > { %v8714_v15 = vadd.f32 %v6774_v19, %v1772_v7  ;;  %v6758_v7 = vpop.f32.mrf.mxu1 }
 0x68b   : > { %v3045_v46 = vpop.f32.mrf.mxu0 }
 0x68c   : > { %v8718_v59 = vadd.f32 %v3045_v46, %v1771_v5  ;;  %v3751_v4 = vpop.permute.xlu1 %3750  ;;  %v2844_v19 = vpop.f32.mrf.mxu1 }
 0x68d   : > { %v6777_v42 = vpop.f32.mrf.mxu0 }
 0x68e   : > { %v8720_v6 = vadd.f32 %v6777_v42, %v1774_v24  ;;  %v2392_v27 = vpop.xlane.xlu0 %2391  ;;  %v2905_v42 = vmul.f32 %v7282_v14, %v2741_v2 }
 0x68f   : > { %7283 = vrcp.f32 %v2392_v27 }
 0x692   : > { %v2398_v31 = vpop.xlane.xlu0 %2397 }
 0x693   : > { %7285 = vrcp.f32 %v2398_v31 }
 0x694   : > { %7287 = vrcp.f32 %v8605_v28  ;;  %v3749_v28 = vpop.permute.xlu1 %3748 }
 0x695   : > { %7289 = vrcp.f32 %v8613_v3  ;;  %v6761_v3 = vpop.f32.mrf.mxu1 }
 0x696   : > { %v3363_v9 = vpop.permute.xlu0 %3362  ;;  %7291 = vrcp.f32 %v8609_v32 }
 0x697   : > { %6824 = vmatprep.subr.msk.mxu0 %vm522_vm1, %v3363_v9  ;;  %7293 = vrcp.f32 %v8658_v11 }
 0x698   : > { %6825 = vmatpush3.xpose.msk.msra.mxu0 %vm522_vm1, %v3363_v9  ;;  %v8734_v14 = vpop.permute.xlu1 %3861 }
 0x699   : > { %6846 = vmatprep.subr.mxu0 %v3755_v22 }
 0x69a   : > { %v3355_v25 = vpop.permute.xlu0 %3354 }
 0x69c   : > { %v7284_v5 = vpop.eup %7283 }
 0x69d   : > { %v2904_v46 = vmul.f32 %v7284_v5, %v6744_v8  ;;  %v2854_v8 = vpop.f32.mrf.mxu1 }
 0x69e   : > { %v3482_v24 = vpop.permute.xlu0 %3481 }
 0x69f   : > { %6779 = vmatmul.mubr.msk.f32.gmra.mxu0 %vm522_vm1, %v2904_v46  ;;  %6836 = vmatprep.subr.msk.mxu1 %vm522_vm1, %v3482_v24 }
 0x6a0   : > { %v7286_v32 = vpop.eup %7285  ;;  %6781 = vmatprep.mubr.msk.f32.mxu0 %vm522_vm1, %v2905_v42  ;;  %6837 = vmatpush3.xpose.msk.msra.mxu1 %vm522_vm1, %v3482_v24 }
 0x6a1   : > { %v7288_v11 = vpop.eup %7287  ;;  %6838 = vmatprep.subr.msk.mxu1 %vm522_vm1, %v3480_v1  ;;  %v2906_v27 = vmul.f32 %v7286_v32, %v6747_v10 }
 0x6a2   : > { %v2907_v31 = vmul.f32 %v7288_v11, %v2844_v19  ;;  %v3361_v9 = vpop.permute.xlu0 %3360  ;;  %v7290_v2 = vpop.eup %7289 }
 0x6a3   : > { %6782 = vmatmul.mubr.msk.f32.gmra.mxu0 %vm522_vm1, %v2906_v27  ;;  %v7292_v5 = vpop.eup %7291  ;;  %v2908_v46 = vmul.f32 %v7290_v2, %v6758_v7  ;;  %v8743_v19 = vpop.permute.xlu1 %3859 }
 0x6a4   : > { %6784 = vmatprep.mubr.msk.f32.mxu0 %vm522_vm1, %v2907_v31  ;;  %6839 = vmatpush3.xpose.msk.msra.mxu1 %vm522_vm1, %v3480_v1  ;;  %v7294_v42 = vpop.eup %7293  ;;  %v2909_v24 = vmul.f32 %v7292_v5, %v2854_v8 }
 0x6a5   : > { %v2910_v10 = vmul.f32 %v7294_v42, %v6761_v3 }
 0x6a6   : > { %v3472_v60 = vpop.permute.xlu0 %3471 }
 0x6a7   : > { %6785 = vmatmul.mubr.msk.f32.gmra.mxu0 %vm522_vm1, %v2908_v46  ;;  %6840 = vmatprep.mubr.msk.f32.mxu1 %vm522_vm1, %v3472_v60  ;;  %v8751_v60 = vpop.permute.xlu1 %3857 }
 0x6a8   : > { %6787 = vmatprep.mubr.msk.f32.mxu0 %vm522_vm1, %v2909_v24  ;;  %6841 = vmatmul.mubr.msk.f32.vlgmr.msra.gmra.mxu1 %vm522_vm1, %v8704_v13 }
 0x6aa   : > { %v3476_v32 = vpop.permute.xlu0 %3475 }
 0x6ab   : > { %6788 = vmatmul.mubr.msk.f32.gmra.mxu0 %vm522_vm1, %v2910_v10  ;;  %6843 = vmatprep.mubr.msk.f32.mxu1 %vm522_vm1, %v3476_v32 }
 0x6ac   : > { %6826 = vmatprep.mubr.msk.f32.mxu0 %vm522_vm1, %v3355_v25  ;;  %6844 = vmatmul.mubr.msk.f32.gmra.mxu1 %vm522_vm1, %v3478_v48  ;;  %v3971_v48 = vpop.permute.xlu1 %3970 }
 0x6ae   : > { %v3753_v1 = vpop.permute.xlu0 %3752 }
 0x6af   : > { %6827 = vmatmul.mubr.msk.f32.vlgmr.msra.gmra.mxu0 %vm522_vm1, %v8687_v30 }
 0x6b0   : > { %6847 = vmatpush3.msra.mxu0 %v3755_v22  ;;  %6829 = vmatprep.mubr.msk.f32.mxu0 %vm522_vm1, %v8690_v29  ;;  %v3967_v29 = vpop.permute.xlu1 %3966 }
 0x6b1   : > { %6848 = vmatprep.subr.mxu0 %v3753_v1 }
 0x6b2   : > { %6849 = vmatpush3.msra.mxu0 %v3753_v1  ;;  %v8755_v13 = vpop.permute.xlu0 %3863 }
 0x6b3   : > { %6850 = vmatprep.subr.mxu0 %v3751_v4  ;;  %6830 = vmatmul.mubr.msk.f32.gmra.mxu0 %vm522_vm1, %v3361_v9 }
 0x6b4   : > { %6851 = vmatpush3.msra.mxu0 %v3751_v4 }
 0x6b5   : > { %6852 = vmatprep.subr.mxu0 %v3749_v28 }
 0x6b6   : > { %6853 = vmatpush3.msra.mxu0 %v3749_v28  ;;  %v3973_v7 = vpop.permute.xlu0 %3972 }
 0x6b7   : > { %6860 = vmatprep.subr.mxu0 %v8755_v13  ;;  %6874 = vmatprep.subr.mxu1 %v3973_v7 }
 0x6b8   : > { %6875 = vmatpush3.msra.mxu1 %v3973_v7 }
 0x6b9   : > { %6876 = vmatprep.subr.mxu1 %v3971_v48 }
 0x6ba   : > { %v3969_v30 = vpop.permute.xlu0 %3968  ;;  %6877 = vmatpush3.msra.mxu1 %v3971_v48 }
 0x6bb   : > { %6878 = vmatprep.subr.mxu1 %v3969_v30 }
 0x6bc   : > { %6879 = vmatpush3.msra.mxu1 %v3969_v30 }
 0x6bd   : > { %6880 = vmatprep.subr.mxu1 %v3967_v29 }
 0x6be   : > { %6881 = vmatpush3.msra.mxu1 %v3967_v29 }
 0x70a   : > { %v6800_v22 = vpop.f32.mrf.mxu1 }
 0x70b   : > { %v8761_v4 = vsel %vm7992_vm2, %v6800_v22, -inf }
 0x70c   : > { %v3607_v25 = vsel %vm987_vm3, %v8761_v4, -inf  ;;  %v3218_v28 = vpop.f32.mrf.mxu1 }
 0x70d   : > { %v8767_v3 = vsel %vm7996_vm4, %v3218_v28, -inf  ;;  %3608 = vmax.xlane.f32.xlu1 %v3607_v25 }
 0x70e   : > { %v3604_v11 = vsel %vm987_vm3, %v8767_v3, -inf }
 0x70f   : > { %3605 = vmax.xlane.f32.xlu0 %v3604_v11  ;;  %v6803_v27 = vpop.f32.mrf.mxu1  ;;  %v8807_v11 = vpop.f32.mrf.mxu0 }
 0x710   : > { %v8773_v31 = vsel %vm8016_vm6, %v6803_v27, -inf  ;;  %9539 = vst [vmem:[#allocation18_spill] sm:$0xff] %v8807_v11 }
 0x711   : > { %v3613_v9 = vsel %vm987_vm3, %v8773_v31, -inf  ;;  %v3228_v8 = vpop.f32.mrf.mxu1 }
 0x712   : > { %v8779_v5 = vsel %vm8012_vm5, %v3228_v8, -inf }
 0x713   : > { %3614 = vmax.xlane.f32.xlu0 %v3613_v9  ;;  %v3610_v46 = vsel %vm987_vm3, %v8779_v5, -inf  ;;  %v9540_v9 = vld [vmem:[#allocation32_spill] sm:$0xff] }
 0x717   : > { %3611 = vmax.xlane.f32.xlu0 %v3610_v46 }
 0x71b   : > { %v6814_v42 = vpop.f32.mrf.mxu1 }
 0x71c   : > { %v8785_v24 = vsel %vm7992_vm2, %v6814_v42, -inf  ;;  %v9542_v42 = vld [vmem:[#allocation33_spill] sm:$0xff] }
 0x71d   : > { %v3619_v10 = vsel %vm987_vm3, %v8785_v24, -inf  ;;  %v3335_v32 = vpop.f32.mrf.mxu1 }
 0x71e   : > { %v8791_v1 = vsel %vm7996_vm4, %v3335_v32, -inf  ;;  %3620 = vmax.xlane.f32.xlu0 %v3619_v10 }
 0x71f   : > { %v3616_v48 = vsel %vm987_vm3, %v8791_v1, -inf  ;;  %v6817_v7 = vpop.f32.mrf.mxu1 }
 0x720   : > { %3617 = vmax.xlane.f32.xlu1 %v3616_v48  ;;  %v8797_v30 = vsel %vm8016_vm6, %v6817_v7, -inf  ;;  %v9544_v48 = vld [vmem:[#allocation34_spill] sm:$0xff] }
 0x721   : > { %v3625_v29 = vsel %vm987_vm3, %v8797_v30, -inf  ;;  %v3345_v22 = vpop.f32.mrf.mxu1 }
 0x722   : > { %v8803_v25 = vsel %vm8012_vm5, %v3345_v22, -inf  ;;  %3626 = vmax.xlane.f32.xlu0 %v3625_v29  ;;  %v9546_v29 = vld [vmem:[#allocation35_spill] sm:$0xff] }
 0x723   : > { %v3622_v28 = vsel %vm987_vm3, %v8803_v25, -inf }
 0x724   : > { %3623 = vmax.xlane.f32.xlu1 %v3622_v28  ;;  %v9548_v28 = vld [vmem:[#allocation36_spill] sm:$0xff] }
 0x75f   : > { %v6780_v27 = vpop.f32.mrf.mxu0 }
 0x760   : > { %v8810_v8 = vadd.f32 %v6780_v27, %v9540_v9 }
 0x761   : > { %v3065_v46 = vpop.f32.mrf.mxu0 }
 0x762   : > { %9541 = vst [vmem:[#allocation16_spill] sm:$0xff] %v8810_v8  ;;  %v8813_v10 = vadd.f32 %v3065_v46, %v9542_v42  ;;  %v9550_v42 = vld [vmem:[#allocation37_spill] sm:$0xff] }
 0x763   : > { %v6783_v32 = vpop.f32.mrf.mxu0 }
 0x764   : > { %9543 = vst [vmem:[#allocation30_spill] sm:$0xff] %v8813_v10  ;;  %v8816_v7 = vadd.f32 %v6783_v32, %v9544_v48 }
 0x765   : > { %v3075_v22 = vpop.f32.mrf.mxu0 }
 0x766   : > { %9545 = vst [vmem:[#allocation29_spill] sm:$0xff] %v8816_v7  ;;  %v8819_v16 = vadd.f32 %v3075_v22, %v9546_v29 }
 0x767   : > { %v6786_v53 = vpop.f32.mrf.mxu0 }
 0x768   : > { %9547 = vst [vmem:[#allocation32_spill] sm:$0xff] %v8819_v16  ;;  %v8822_v54 = vadd.f32 %v6786_v53, %v9548_v28  ;;  %v6842_v11 = vpop.f32.mrf.mxu1  ;;  %v9552_v53 = vld [vmem:[#allocation38_spill] sm:$0xff] }
 0x769   : > { %v8826_v27 = vsel %vm7992_vm2, %v6842_v11, -inf  ;;  %v3085_v9 = vpop.f32.mrf.mxu0 }
 0x76a   : > { %9549 = vst [vmem:[#allocation33_spill] sm:$0xff] %v8822_v54  ;;  %v3643_v46 = vsel %vm987_vm3, %v8826_v27, -inf  ;;  %v8831_v32 = vadd.f32 %v3085_v9, %v9550_v42  ;;  %v3569_v48 = vpop.f32.mrf.mxu1 }
 0x76b   : > { %v8835_v22 = vsel %vm7996_vm4, %v3569_v48, -inf  ;;  %v6789_v29 = vpop.f32.mrf.mxu0  ;;  %3644 = vmax.xlane.f32.xlu0 %v3643_v46 }
 0x76c   : > { %9551 = vst [vmem:[#allocation34_spill] sm:$0xff] %v8831_v32  ;;  %v8838_v28 = vadd.f32 %v6789_v29, %v9552_v53  ;;  %v6845_v56 = vpop.f32.mrf.mxu1  ;;  %v3640_v62 = vsel %vm987_vm3, %v8835_v22, -inf }
 0x76d   : > { %v3095_v11 = vpop.f32.mrf.mxu0  ;;  %v8847_v42 = vsel %vm8016_vm6, %v6845_v56, -inf }
 0x76e   : > { %9553 = vst [vmem:[#allocation35_spill] sm:$0xff] %v8838_v28  ;;  %v8843_v47 = vadd.f32 %v3095_v11, %v9554_v44  ;;  %v3579_v9 = vpop.f32.mrf.mxu1  ;;  %v3649_v44 = vsel %vm987_vm3, %v8847_v42, -inf }
 0x76f   : > { %v8851_v48 = vsel %vm8012_vm5, %v3579_v9, -inf  ;;  %v6828_v46 = vpop.f32.mrf.mxu0  ;;  %3641 = vmax.xlane.f32.xlu0 %v3640_v62 }
 0x770   : > { %9555 = vst [vmem:[#allocation36_spill] sm:$0xff] %v8843_v47  ;;  %v3646_v29 = vsel %vm987_vm3, %v8851_v48, -inf  ;;  %v8863_v56 = vsel %vm7992_vm2, %v6828_v46, -inf  ;;  %v8887_v47 = vpop.permute.xlu0 %4081 }
 0x771   : > { %v3452_v53 = vpop.f32.mrf.mxu0  ;;  %3647 = vmax.xlane.f32.xlu1 %v3646_v29  ;;  %v3631_v29 = vsel %vm987_vm3, %v8863_v56, -inf }
 0x772   : > { %v8859_v11 = vsel %vm7996_vm4, %v3452_v53, -inf }
 0x773   : > { %v3628_v9 = vsel %vm987_vm3, %v8859_v11, -inf  ;;  %v6831_v62 = vpop.f32.mrf.mxu0  ;;  %3650 = vmax.xlane.f32.xlu0 %v3649_v44 }
 0x774   : > { %v8875_v53 = vsel %vm8016_vm6, %v6831_v62, -inf }
 0x775   : > { %v3462_v38 = vpop.f32.mrf.mxu0  ;;  %3629 = vmax.xlane.f32.xlu1 %v3628_v9  ;;  %v3637_v44 = vsel %vm987_vm3, %v8875_v53, -inf  ;;  %v9556_v9 = vld [vmem:[#allocation15_spill] sm:$0xff] }
 0x776   : > { %v8871_v50 = vsel %vm8012_vm5, %v3462_v38, -inf  ;;  %v8885_v38 = vpop.permute.xlu1 %4079 }
 0x777   : > { %v3634_v46 = vsel %vm987_vm3, %v8871_v50, -inf  ;;  %3632 = vmax.xlane.f32.xlu0 %v3631_v29 }
 0x779   : > { %3635 = vmax.xlane.f32.xlu1 %v3634_v46 }
 0x77b   : > { %3638 = vmax.xlane.f32.xlu0 %v3637_v44 }
 0x78a   : > { %4075 = vrot.lane.b32.xlu1 %v9556_v9, %s7586_s11 }
 0x791   : > { %4077 = vrot.lane.b32.xlu0 %v9557_v34, %s7586_s11 }
 0x796   : > { %v3609_v62 = vpop.xlane.xlu1 %3608 }
 0x797   : > { %v3653_v28 = vsub.f32 %v8761_v4, %v3609_v62 }
 0x798   : > { %v3606_v32 = vpop.xlane.xlu0 %3605 }
 0x799   : > { %v3670_v29 = vmul.f32 1.442695, %v3653_v28  ;;  %v3652_v46 = vsub.f32 %v8767_v3, %v3606_v32 }
 0x79b   : > { %v3668_v54 = vmul.f32 1.442695, %v3652_v46  ;;  %7295 = vpow2.f32 %v3670_v29 }
 0x79c   : > { %v3615_v44 = vpop.xlane.xlu0 %3614 }
 0x79d   : > { %7297 = vpow2.f32 %v3668_v54  ;;  %v3655_v9 = vsub.f32 %v8773_v31, %v3615_v44 }
 0x79f   : > { %v3674_v7 = vmul.f32 1.442695, %v3655_v9 }
 0x7a0   : > { %v3612_v16 = vpop.xlane.xlu0 %3611 }
 0x7a1   : > { %v3654_v34 = vsub.f32 %v8779_v5, %v3612_v16 }
 0x7a3   : > { %v3672_v10 = vmul.f32 1.442695, %v3654_v34 }
 0x7a5   : > { %7299 = vpow2.f32 %v3672_v10 }
 0x7a6   : > { %7301 = vpow2.f32 %v3674_v7 }
 0x7a7   : > { %v3621_v8 = vpop.xlane.xlu0 %3620 }
 0x7a8   : > { %v3657_v4 = vsub.f32 %v8785_v24, %v3621_v8  ;;  %v7296_v62 = vpop.eup %7295 }
 0x7a9   : > { %v3618_v28 = vpop.xlane.xlu1 %3617  ;;  %v3703_v31 = vsel %vm987_vm3, %v7296_v62, 0.0 }
 0x7aa   : > { %v7298_v36 = vpop.eup %7297  ;;  %v3678_v3 = vmul.f32 1.442695, %v3657_v4  ;;  %v3656_v32 = vsub.f32 %v8791_v1, %v3618_v28 }
 0x7ab   : > { %v3627_v29 = vpop.xlane.xlu0 %3626  ;;  %6854 = vmatprep.mubr.msk.f32.mxu0 %vm987_vm3, %v7298_v36  ;;  %v3700_v1 = vsel %vm987_vm3, %v7298_v36, 0.0 }
 0x7ac   : > { %7303 = vpow2.f32 %v3678_v3  ;;  %v3676_v54 = vmul.f32 1.442695, %v3656_v32  ;;  %v3659_v16 = vsub.f32 %v8797_v30, %v3627_v29  ;;  %6855 = vmatmul.mubr.msk.f32.vlgmr.msra.gmra.mxu0 %vm987_vm3, %v7296_v62 }
 0x7ad   : > { %6861 = vmatpush3.msra.mxu0 %v8755_v13  ;;  %v3624_v34 = vpop.xlane.xlu1 %3623 }
 0x7ae   : > { %7305 = vpow2.f32 %v3676_v54  ;;  %v3682_v5 = vmul.f32 1.442695, %v3659_v16  ;;  %6862 = vmatprep.subr.mxu0 %v8734_v14  ;;  %v3658_v24 = vsub.f32 %v8803_v25, %v3624_v34  ;;  %3704 = vadd.xlane.f32.xlu1 %v3703_v31 }
 0x7af   : > { %6863 = vmatpush3.msra.mxu0 %v8734_v14 }
 0x7b0   : > { %7307 = vpow2.f32 %v3682_v5  ;;  %v3680_v30 = vmul.f32 1.442695, %v3658_v24  ;;  %6864 = vmatprep.subr.mxu0 %v8743_v19  ;;  %3701 = vadd.xlane.f32.xlu0 %v3700_v1 }
 0x7b1   : > { %6865 = vmatpush3.msra.mxu0 %v8743_v19 }
 0x7b2   : > { %v7300_v13 = vpop.eup %7299  ;;  %7309 = vpow2.f32 %v3680_v30  ;;  %6866 = vmatprep.subr.mxu0 %v8751_v60 }
 0x7b3   : > { %6867 = vmatpush3.msra.mxu0 %v8751_v60  ;;  %6857 = vmatprep.mubr.msk.f32.mxu0 %vm987_vm3, %v7300_v13  ;;  %v3706_v25 = vsel %vm987_vm3, %v7300_v13, 0.0  ;;  %v7302_v14 = vpop.eup %7301 }
 0x7b4   : > { %6888 = vmatprep.subr.mxu0 %v8887_v47  ;;  %3707 = vadd.xlane.f32.xlu0 %v3706_v25  ;;  %v3709_v36 = vsel %vm987_vm3, %v7302_v14, 0.0 }
 0x7b5   : > { %6858 = vmatmul.mubr.msk.f32.gmra.mxu0 %vm987_vm3, %v7302_v14 }
 0x7b8   : > { %3710 = vadd.xlane.f32.xlu0 %v3709_v36 }
 0x7b9   : > { %v7304_v19 = vpop.eup %7303 }
 0x7ba   : > { %v3715_v10 = vsel %vm987_vm3, %v7304_v19, 0.0 }
 0x7bb   : > { %v7306_v8 = vpop.eup %7305 }
 0x7bc   : > { %6868 = vmatprep.mubr.msk.f32.mxu0 %vm987_vm3, %v7306_v8  ;;  %3716 = vadd.xlane.f32.xlu0 %v3715_v10  ;;  %v3712_v60 = vsel %vm987_vm3, %v7306_v8, 0.0 }
 0x7bd   : > { %v7308_v7 = vpop.eup %7307  ;;  %6869 = vmatmul.mubr.msk.f32.vlgmr.msra.gmra.mxu0 %vm987_vm3, %v7304_v19  ;;  %3713 = vadd.xlane.f32.xlu1 %v3712_v60 }
 0x7be   : > { %6889 = vmatpush3.msra.mxu0 %v8887_v47  ;;  %v3721_v9 = vsel %vm987_vm3, %v7308_v7, 0.0  ;;  %v506_v47 = vld [vmem:[#allocation7 + $0x28] sm:$0xff] }
 0x7bf   : > { %v7310_v46 = vpop.eup %7309  ;;  %6890 = vmatprep.subr.mxu0 %v8885_v38  ;;  %6902 = vmatprep.subr.mxu1 %v506_v47 }
 0x7c0   : > { %6891 = vmatpush3.msra.mxu0 %v8885_v38  ;;  %3722 = vadd.xlane.f32.xlu0 %v3721_v9  ;;  %v3718_v44 = vsel %vm987_vm3, %v7310_v46, 0.0 }
 0x7c1   : > { %6871 = vmatprep.mubr.msk.f32.mxu0 %vm987_vm3, %v7310_v46  ;;  %3719 = vadd.xlane.f32.xlu1 %v3718_v44 }
 0x7c2   : > { %6872 = vmatmul.mubr.msk.f32.gmra.mxu0 %vm987_vm3, %v7308_v7 }
 0x7d2   : > { %4455 = vrot.lane.b32.xlu1 %v7834_v40, %s7587_s28 }
 0x7f4   : > { %v3645_v4 = vpop.xlane.xlu0 %3644 }
 0x7f5   : > { %v3665_v62 = vsub.f32 %v8826_v27, %v3645_v4  ;;  %v505_v4 = vld [vmem:[#allocation7 + $0x20] sm:$0xff] }
 0x7f7   : > { %v3694_v3 = vmul.f32 1.442695, %v3665_v62 }
 0x7f8   : > { %v3642_v28 = vpop.xlane.xlu0 %3641 }
 0x7f9   : > { %v3664_v38 = vsub.f32 %v8835_v22, %v3642_v28 }
 0x7fa   : > { %v3648_v32 = vpop.xlane.xlu1 %3647 }
 0x7fb   : > { %v3692_v29 = vmul.f32 1.442695, %v3664_v38  ;;  %v3666_v54 = vsub.f32 %v8851_v48, %v3648_v32 }
 0x7fc   : > { %v3651_v16 = vpop.xlane.xlu0 %3650 }
 0x7fd   : > { %7311 = vpow2.f32 %v3692_v29  ;;  %v3696_v34 = vmul.f32 1.442695, %v3666_v54  ;;  %v3667_v31 = vsub.f32 %v8847_v42, %v3651_v16 }
 0x7fe   : > { %7313 = vpow2.f32 %v3694_v3  ;;  %v3630_v5 = vpop.xlane.xlu1 %3629 }
 0x7ff   : > { %7315 = vpow2.f32 %v3696_v34  ;;  %v3698_v24 = vmul.f32 1.442695, %v3667_v31  ;;  %v3660_v1 = vsub.f32 %v8859_v11, %v3630_v5 }
 0x800   : > { %v3633_v27 = vpop.xlane.xlu0 %3632 }
 0x801   : > { %v3684_v30 = vmul.f32 1.442695, %v3660_v1  ;;  %v3661_v22 = vsub.f32 %v8863_v56, %v3633_v27  ;;  %7317 = vpow2.f32 %v3698_v24 }
 0x802   : > { %v3636_v13 = vpop.xlane.xlu1 %3635 }
 0x803   : > { %7319 = vpow2.f32 %v3684_v30  ;;  %v3686_v25 = vmul.f32 1.442695, %v3661_v22  ;;  %v3662_v48 = vsub.f32 %v8871_v50, %v3636_v13 }
 0x804   : > { %v3639_v14 = vpop.xlane.xlu0 %3638 }
 0x805   : > { %7321 = vpow2.f32 %v3686_v25  ;;  %v3688_v36 = vmul.f32 1.442695, %v3662_v48  ;;  %v3663_v42 = vsub.f32 %v8875_v53, %v3639_v14 }
 0x806   : > { %v4076_v10 = vpop.permute.xlu1 %4075 }
 0x807   : > { %7323 = vpow2.f32 %v3688_v36  ;;  %v3690_v19 = vmul.f32 1.442695, %v3663_v42 }
 0x808   : > { %v4078_v8 = vpop.permute.xlu0 %4077 }
 0x809   : > { %7325 = vpow2.f32 %v3690_v19  ;;  %6892 = vmatprep.subr.mxu0 %v4078_v8 }
 0x80a   : > { %v7312_v11 = vpop.eup %7311  ;;  %6893 = vmatpush3.msra.mxu0 %v4078_v8 }
 0x80b   : > { %v7314_v56 = vpop.eup %7313  ;;  %6894 = vmatprep.subr.mxu0 %v4076_v10  ;;  %6896 = vmatprep.mubr.msk.f32.mxu0 %vm987_vm3, %v7312_v11  ;;  %v3736_v60 = vsel %vm987_vm3, %v7312_v11, 0.0 }
 0x80c   : > { %v7316_v50 = vpop.eup %7315  ;;  %3737 = vadd.xlane.f32.xlu0 %v3736_v60  ;;  %6895 = vmatpush3.msra.mxu0 %v4076_v10  ;;  %v3739_v9 = vsel %vm987_vm3, %v7314_v56, 0.0 }
 0x80d   : > { %6897 = vmatmul.mubr.msk.f32.vlgmr.msra.gmra.mxu0 %vm987_vm3, %v7314_v56  ;;  %v3742_v53 = vsel %vm987_vm3, %v7316_v50, 0.0 }
 0x80e   : > { %3743 = vadd.xlane.f32.xlu1 %v3742_v53  ;;  %6899 = vmatprep.mubr.msk.f32.mxu0 %vm987_vm3, %v7316_v50  ;;  %v7318_v7 = vpop.eup %7317 }
 0x810   : > { %v7320_v46 = vpop.eup %7319  ;;  %3740 = vadd.xlane.f32.xlu0 %v3739_v9 }
 0x811   : > { %6882 = vmatprep.mubr.msk.f32.mxu1 %vm987_vm3, %v7320_v46  ;;  %6900 = vmatmul.mubr.msk.f32.gmra.mxu0 %vm987_vm3, %v7318_v7  ;;  %v3724_v54 = vsel %vm987_vm3, %v7320_v46, 0.0 }
 0x812   : > { %v8942_v44 = vpop.eup %7321 }
 0x813   : > { %6883 = vmatmul.mubr.msk.f32.vlgmr.msra.gmra.mxu1 %vm987_vm3, %v8942_v44  ;;  %v3727_v53 = vsel %vm987_vm3, %v8942_v44, 0.0 }
 0x814   : > { %v7324_v62 = vpop.eup %7323  ;;  %6903 = vmatpush3.msra.mxu1 %v506_v47 }
 0x815   : > { %6885 = vmatprep.mubr.msk.f32.mxu1 %vm987_vm3, %v7324_v62  ;;  %6904 = vmatprep.subr.mxu1 %v505_v4  ;;  %v3730_v34 = vsel %vm987_vm3, %v7324_v62, 0.0 }
 0x816   : > { %v8947_v28 = vpop.eup %7325  ;;  %6905 = vmatpush3.msra.mxu1 %v505_v4 }
 0x817   : > { %6886 = vmatmul.mubr.msk.f32.gmra.mxu1 %vm987_vm3, %v8947_v28 }
 0x81f   : > { %4451 = vrot.lane.b32.xlu1 %v7820_v35, %s7587_s28 }
 0x823   : > { %4441 = vrot.lane.b32.xlu1 %v7814_v33, %s7588_s29 }
 0x826   : > { %4453 = vrot.lane.b32.xlu0 %v7826_v37, %s7587_s28 }
 0x827   : > { %4572 = vrot.lane.b32.xlu1 %v7864_v52, %s7587_s28 }
 0x82b   : > { %4443 = vrot.lane.b32.xlu1 %v7820_v35, %s7588_s29  ;;  %v3745_v35 = vsel %vm987_vm3, %v7318_v7, 0.0  ;;  %v3733_v7 = vsel %vm987_vm3, %v8947_v28, 0.0 }
 0x82f   : > { %4570 = vrot.lane.b32.xlu1 %v7856_v49, %s7587_s28 }
 0x833   : > { %4689 = vrot.lane.b32.xlu1 %v7903_v63, %s7587_s28 }
 0x837   : > { %4447 = vrot.lane.b32.xlu1 %v7834_v40, %s7588_s29  ;;  %v3705_v47 = vpop.xlane.xlu1 %3704 }
 0x839   : > { %v3702_v40 = vpop.xlane.xlu0 %3701 }
 0x83a   : > { %7327 = vrcp.f32 %v3702_v40 }
 0x83b   : > { %4687 = vrot.lane.b32.xlu1 %v7897_v61, %s7587_s28  ;;  %7329 = vrcp.f32 %v3705_v47 }
 0x83d   : > { %v3708_v29 = vpop.xlane.xlu0 %3707 }
 0x83e   : > { %7331 = vrcp.f32 %v3708_v29 }
 0x83f   : > { %4560 = vrot.lane.b32.xlu1 %v9535_v18, %s7588_s29 }
 0x843   : > { %4806 = vrot.lane.b32.xlu1 %v7884_v57, %s7587_s28 }
 0x845   : > { %3746 = vadd.xlane.f32.xlu0 %v3745_v35 }
 0x846   : > { %v3714_v38 = vpop.xlane.xlu1 %3713 }
 0x847   : > { %4564 = vrot.lane.b32.xlu1 %v7864_v52, %s7588_s29  ;;  %v3711_v52 = vpop.xlane.xlu0 %3710 }
 0x848   : > { %7333 = vrcp.f32 %v3711_v52 }
 0x849   : > { %7335 = vrcp.f32 %v3714_v38 }
 0x84a   : > { %v3720_v3 = vpop.xlane.xlu1 %3719 }
 0x84b   : > { %v3717_v5 = vpop.xlane.xlu0 %3716 }
 0x84c   : > { %7337 = vrcp.f32 %v3717_v5 }
 0x84d   : > { %7339 = vrcp.f32 %v3720_v3 }
 0x84e   : > { %v4456_v32 = vpop.permute.xlu1 %4455 }
 0x84f   : > { %6930 = vmatprep.subr.msk.mxu0 %vm522_vm1, %v4456_v32 }
 0x850   : > { %6931 = vmatpush3.xpose.msk.msra.mxu0 %vm522_vm1, %v4456_v32 }
 0x85b   : > { %4449 = vrot.lane.b32.xlu0 %v7814_v33, %s7587_s28 }
 0x85f   : > { %4568 = vrot.lane.b32.xlu0 %v9535_v18, %s7587_s28  ;;  %v7328_v18 = vpop.eup %7327 }
 0x860   : > { %v7330_v31 = vpop.eup %7329 }
 0x861   : > { %v7332_v27 = vpop.eup %7331 }
 0x862   : > { %v7334_v22 = vpop.eup %7333 }
 0x863   : > { %4445 = vrot.lane.b32.xlu0 %v7826_v37, %s7588_s29  ;;  %v7336_v14 = vpop.eup %7335 }
 0x864   : > { %v7338_v42 = vpop.eup %7337 }
 0x865   : > { %v7340_v11 = vpop.eup %7339 }
 0x867   : > { %4566 = vrot.lane.b32.xlu0 %v9536_v43, %s7587_s28 }
 0x86b   : > { %4558 = vrot.lane.b32.xlu0 %v9536_v43, %s7588_s29  ;;  %3725 = vadd.xlane.f32.xlu1 %v3724_v54  ;;  %v3723_v43 = vpop.xlane.xlu0 %3722 }
 0x86c   : > { %v6856_v33 = vpop.f32.mrf.mxu0  ;;  %7341 = vrcp.f32 %v3723_v43 }
 0x86d   : > { %v4217_v24 = vmul.f32 %v7330_v31, %v6856_v33 }
 0x86e   : > { %v3838_v16 = vpop.f32.mrf.mxu0 }
 0x86f   : > { %v4216_v37 = vmul.f32 %v7328_v18, %v3838_v16  ;;  %4685 = vrot.lane.b32.xlu0 %v7887_v58, %s7587_s28  ;;  %3731 = vadd.xlane.f32.xlu1 %v3730_v34 }
 0x871   : > { %6906 = vmatprep.mubr.msk.f32.mxu1 %vm522_vm1, %v4216_v37 }
 0x872   : > { %6907 = vmatmul.mubr.msk.f32.vlgmr.msra.gmra.mxu1 %vm522_vm1, %v4217_v24 }
 0x873   : > { %4562 = vrot.lane.b32.xlu0 %v7856_v49, %s7588_s29 }
 0x875   : > { %v6859_v1 = vpop.f32.mrf.mxu0 }
 0x876   : > { %v4219_v25 = vmul.f32 %v7334_v22, %v6859_v1 }
 0x877   : > { %v3848_v30 = vpop.f32.mrf.mxu0 }
 0x878   : > { %v4218_v13 = vmul.f32 %v7332_v27, %v3848_v30 }
 0x879   : > { %v7342_v56 = vpop.eup %7341 }
 0x87a   : > { %6909 = vmatprep.mubr.msk.f32.mxu1 %vm522_vm1, %v4218_v13 }
 0x87b   : > { %6910 = vmatmul.mubr.msk.f32.gmra.mxu1 %vm522_vm1, %v4219_v25 }
 0x87d   : > { %v6870_v48 = vpop.f32.mrf.mxu0 }
 0x87e   : > { %v4221_v49 = vmul.f32 %v7338_v42, %v6870_v48 }
 0x87f   : > { %v3947_v36 = vpop.f32.mrf.mxu0 }
 0x880   : > { %v4220_v19 = vmul.f32 %v7336_v14, %v3947_v36  ;;  %4804 = vrot.lane.b32.xlu1 %v7862_v51, %s7587_s28 }
 0x882   : > { %v6873_v8 = vpop.f32.mrf.mxu0  ;;  %6912 = vmatprep.mubr.msk.f32.mxu1 %vm522_vm1, %v4220_v19 }
 0x883   : > { %6913 = vmatmul.mubr.msk.f32.gmra.mxu1 %vm522_vm1, %v4221_v49  ;;  %v4223_v50 = vmul.f32 %v7342_v56, %v6873_v8 }
 0x884   : > { %v3957_v10 = vpop.f32.mrf.mxu0  ;;  %4677 = vrot.lane.b32.xlu1 %v7887_v58, %s7588_s29 }
 0x885   : > { %v4222_v60 = vmul.f32 %v7340_v11, %v3957_v10 }
 0x887   : > { %6915 = vmatprep.mubr.msk.f32.mxu1 %vm522_vm1, %v4222_v60 }
 0x888   : > { %6916 = vmatmul.mubr.msk.f32.gmra.mxu1 %vm522_vm1, %v4223_v50  ;;  %4679 = vrot.lane.b32.xlu1 %v7897_v61, %s7588_s29 }
 0x88c   : > { %4800 = vrot.lane.b32.xlu1 %v7832_v39, %s7587_s28 }
 0x890   : > { %4794 = vrot.lane.b32.xlu1 %v7848_v45, %s7588_s29 }
 0x892   : > { %3728 = vadd.xlane.f32.xlu0 %v3727_v53 }
 0x894   : > { %4798 = vrot.lane.b32.xlu1 %v7884_v57, %s7588_s29 }
 0x895   : > { %v9016_v58 = vpop.xlane.xlu0 %3737 }
 0x896   : > { %3734 = vadd.xlane.f32.xlu0 %v3733_v7 }
 0x897   : > { %v9020_v61 = vpop.xlane.xlu1 %3743 }
 0x899   : > { %v9022_v9 = vpop.xlane.xlu0 %3740 }
 0x89b   : > { %v4452_v46 = vpop.permute.xlu1 %4451 }
 0x89d   : > { %v4454_v4 = vpop.permute.xlu0 %4453 }
 0x89e   : > { %6932 = vmatprep.subr.msk.mxu0 %vm522_vm1, %v4454_v4 }
 0x89f   : > { %6933 = vmatpush3.xpose.msk.msra.mxu0 %vm522_vm1, %v4454_v4  ;;  %v4442_v44 = vpop.permute.xlu1 %4441 }
 0x8a0   : > { %6934 = vmatprep.subr.msk.mxu0 %vm522_vm1, %v4452_v46  ;;  %6938 = vmatprep.mubr.msk.f32.mxu0 %vm522_vm1, %v4442_v44 }
 0x8a3   : > { %6935 = vmatpush3.xpose.msk.msra.mxu0 %vm522_vm1, %v4452_v46  ;;  %v4573_v57 = vpop.permute.xlu1 %4572 }
 0x8a7   : > { %v4444_v62 = vpop.permute.xlu1 %4443 }
 0x8ab   : > { %v4571_v28 = vpop.permute.xlu1 %4570 }
 0x8ac   : > { %4683 = vrot.lane.b32.xlu0 %v7875_v55, %s7587_s28 }
 0x8af   : > { %v4690_v47 = vpop.permute.xlu1 %4689 }
 0x8b0   : > { %4675 = vrot.lane.b32.xlu0 %v7875_v55, %s7588_s29  ;;  %6958 = vmatprep.subr.msk.mxu1 %vm522_vm1, %v4690_v47 }
 0x8b1   : > { %6959 = vmatpush3.xpose.msk.msra.mxu1 %vm522_vm1, %v4690_v47 }
 0x8b3   : > { %v4448_v35 = vpop.permute.xlu1 %4447 }
 0x8b4   : > { %4802 = vrot.lane.b32.xlu0 %v7848_v45, %s7587_s28 }
 0x8b7   : > { %v4688_v38 = vpop.permute.xlu1 %4687 }
 0x8b8   : > { %4681 = vrot.lane.b32.xlu0 %v7903_v63, %s7588_s29  ;;  %6960 = vmatprep.subr.msk.mxu1 %vm522_vm1, %v4688_v38 }
 0x8b9   : > { %6961 = vmatpush3.xpose.msk.msra.mxu1 %vm522_vm1, %v4688_v38 }
 0x8bc   : > { %4792 = vrot.lane.b32.xlu0 %v7832_v39, %s7588_s29 }
 0x8c0   : > { %4796 = vrot.lane.b32.xlu0 %v7862_v51, %s7588_s29  ;;  %v4561_v51 = vpop.permute.xlu1 %4560 }
 0x8c4   : > { %v4807_v40 = vpop.permute.xlu1 %4806 }
 0x8c8   : > { %v4565_v54 = vpop.permute.xlu1 %4564 }
 0x8cd   : > { %v6898_v30 = vpop.f32.mrf.mxu0 }
 0x8ce   : > { %v3747_v55 = vpop.xlane.xlu0 %3746 }
 0x8cf   : > { %v4165_v14 = vpop.f32.mrf.mxu0 }
 0x8d1   : > { %v6901_v11 = vpop.f32.mrf.mxu0 }
 0x8d2   : > { %v4450_v3 = vpop.permute.xlu0 %4449 }
 0x8d3   : > { %6936 = vmatprep.subr.msk.mxu0 %vm522_vm1, %v4450_v3  ;;  %v6884_v34 = vpop.f32.mrf.mxu1  ;;  %v4175_v7 = vpop.f32.mrf.mxu0 }
 0x8d4   : > { %6937 = vmatpush3.xpose.msk.msra.mxu0 %vm522_vm1, %v4450_v3 }
 0x8d5   : > { %6944 = vmatprep.subr.msk.mxu0 %vm522_vm1, %v4573_v57  ;;  %v4056_v5 = vpop.f32.mrf.mxu1 }
 0x8d6   : > { %v4569_v45 = vpop.permute.xlu0 %4568 }
 0x8d7   : > { %6939 = vmatmul.mubr.msk.f32.vlgmr.msra.gmra.mxu0 %vm522_vm1, %v4444_v62  ;;  %v6887_v22 = vpop.f32.mrf.mxu1 }
 0x8d8   : > { %6945 = vmatpush3.xpose.msk.msra.mxu0 %vm522_vm1, %v4573_v57 }
 0x8d9   : > { %6946 = vmatprep.subr.msk.mxu0 %vm522_vm1, %v4571_v28  ;;  %v4066_v42 = vpop.f32.mrf.mxu1 }
 0x8da   : > { %v4446_v63 = vpop.permute.xlu0 %4445 }
 0x8db   : > { %6941 = vmatprep.mubr.msk.f32.mxu0 %vm522_vm1, %v4446_v63 }
 0x8dc   : > { %6942 = vmatmul.mubr.msk.f32.gmra.mxu0 %vm522_vm1, %v4448_v35 }
 0x8dd   : > { %6947 = vmatpush3.xpose.msk.msra.mxu0 %vm522_vm1, %v4571_v28 }
 0x8de   : > { %6948 = vmatprep.subr.msk.mxu0 %vm522_vm1, %v4569_v45  ;;  %v4567_v39 = vpop.permute.xlu0 %4566 }
 0x8e1   : > { %6949 = vmatpush3.xpose.msk.msra.mxu0 %vm522_vm1, %v4569_v45 }
 0x8e2   : > { %6950 = vmatprep.subr.msk.mxu0 %vm522_vm1, %v4567_v39  ;;  %v4559_v32 = vpop.permute.xlu0 %4558 }
 0x8e3   : > { %6952 = vmatprep.mubr.msk.f32.mxu0 %vm522_vm1, %v4559_v32 }
 0x8e5   : > { %6951 = vmatpush3.xpose.msk.msra.mxu0 %vm522_vm1, %v4567_v39 }
 0x8e6   : > { %6972 = vmatprep.subr.msk.mxu0 %vm522_vm1, %v4807_v40  ;;  %v4686_v29 = vpop.permute.xlu0 %4685 }
 0x8e7   : > { %6962 = vmatprep.subr.msk.mxu1 %vm522_vm1, %v4686_v29 }
 0x8e8   : > { %6953 = vmatmul.mubr.msk.f32.vlgmr.msra.gmra.mxu0 %vm522_vm1, %v4561_v51  ;;  %6963 = vmatpush3.xpose.msk.msra.mxu1 %vm522_vm1, %v4686_v29 }
 0x8e9   : > { %6973 = vmatpush3.xpose.msk.msra.mxu0 %vm522_vm1, %v4807_v40 }
 0x8ea   : > { %v4563_v52 = vpop.permute.xlu0 %4562 }
 0x8eb   : > { %6955 = vmatprep.mubr.msk.f32.mxu0 %vm522_vm1, %v4563_v52 }
 0x8ec   : > { %6956 = vmatmul.mubr.msk.f32.gmra.mxu0 %vm522_vm1, %v4565_v54 }
 0x8f4   : > { %v3726_v33 = vpop.xlane.xlu1 %3725 }
 0x8f5   : > { %7343 = vrcp.f32 %v3726_v33 }
 0x8f8   : > { %v3732_v18 = vpop.xlane.xlu1 %3731 }
 0x8f9   : > { %7345 = vrcp.f32 %v3732_v18 }
 0x8fc   : > { %v4805_v16 = vpop.permute.xlu1 %4804 }
 0x8fd   : > { %6974 = vmatprep.subr.msk.mxu0 %vm522_vm1, %v4805_v16 }
 0x8fe   : > { %6975 = vmatpush3.xpose.msk.msra.mxu0 %vm522_vm1, %v4805_v16 }
 0x900   : > { %v4678_v1 = vpop.permute.xlu1 %4677 }
 0x902   : > { %v7344_v31 = vpop.eup %7343 }
 0x903   : > { %v4224_v37 = vmul.f32 %v7344_v31, %v4056_v5 }
 0x904   : > { %v4680_v13 = vpop.permute.xlu1 %4679 }
 0x905   : > { %6918 = vmatprep.mubr.msk.f32.mxu1 %vm522_vm1, %v4224_v37 }
 0x906   : > { %v7346_v48 = vpop.eup %7345 }
 0x907   : > { %v4226_v8 = vmul.f32 %v7346_v48, %v4066_v42 }
 0x908   : > { %v4801_v10 = vpop.permute.xlu1 %4800 }
 0x90c   : > { %v4795_v4 = vpop.permute.xlu1 %4794 }
 0x910   : > { %v4799_v45 = vpop.permute.xlu1 %4798 }
 0x91b   : > { %v3729_v24 = vpop.xlane.xlu0 %3728 }
 0x91c   : > { %7347 = vrcp.f32 %v3729_v24 }
 0x91f   : > { %v3735_v43 = vpop.xlane.xlu0 %3734 }
 0x920   : > { %7349 = vrcp.f32 %v3735_v43 }
 0x921   : > { %7351 = vrcp.f32 %v9016_v58 }
 0x922   : > { %7353 = vrcp.f32 %v9022_v9 }
 0x923   : > { %v4684_v27 = vpop.permute.xlu0 %4683  ;;  %7355 = vrcp.f32 %v9020_v61 }
 0x924   : > { %6964 = vmatprep.subr.msk.mxu1 %vm522_vm1, %v4684_v27  ;;  %7357 = vrcp.f32 %v3747_v55 }
 0x925   : > { %6965 = vmatpush3.xpose.msk.msra.mxu1 %vm522_vm1, %v4684_v27 }
 0x927   : > { %v4676_v25 = vpop.permute.xlu0 %4675 }
 0x929   : > { %v7348_v36 = vpop.eup %7347 }
 0x92a   : > { %v4225_v19 = vmul.f32 %v7348_v36, %v6884_v34 }
 0x92b   : > { %v4803_v49 = vpop.permute.xlu0 %4802 }
 0x92c   : > { %6919 = vmatmul.mubr.msk.f32.gmra.mxu1 %vm522_vm1, %v4225_v19  ;;  %6976 = vmatprep.subr.msk.mxu0 %vm522_vm1, %v4803_v49  ;;  %v9558_v19 = vld [vmem:[#allocation13_spill] sm:$0xff] }
 0x92d   : > { %v7350_v56 = vpop.eup %7349  ;;  %6921 = vmatprep.mubr.msk.f32.mxu1 %vm522_vm1, %v4226_v8  ;;  %6977 = vmatpush3.xpose.msk.msra.mxu0 %vm522_vm1, %v4803_v49 }
 0x92e   : > { %v7352_v60 = vpop.eup %7351  ;;  %6978 = vmatprep.subr.msk.mxu0 %vm522_vm1, %v4801_v10  ;;  %v4227_v50 = vmul.f32 %v7350_v56, %v6887_v22 }
 0x92f   : > { %v4228_v53 = vmul.f32 %v7352_v60, %v4165_v14  ;;  %v4682_v58 = vpop.permute.xlu0 %4681  ;;  %v7354_v61 = vpop.eup %7353  ;;  %v9560_v60 = vld [vmem:[#allocation30_spill] sm:$0xff] }
 0x930   : > { %6922 = vmatmul.mubr.msk.f32.gmra.mxu1 %vm522_vm1, %v4227_v50  ;;  %v7356_v9 = vpop.eup %7355  ;;  %v4229_v46 = vmul.f32 %v7354_v61, %v6898_v30 }
 0x931   : > { %6924 = vmatprep.mubr.msk.f32.mxu1 %vm522_vm1, %v4228_v53  ;;  %6979 = vmatpush3.xpose.msk.msra.mxu0 %vm522_vm1, %v4801_v10  ;;  %v7358_v57 = vpop.eup %7357  ;;  %v4230_v62 = vmul.f32 %v7356_v9, %v4175_v7  ;;  %v9562_v9 = vld [vmem:[#allocation32_spill] sm:$0xff] }
 0x932   : > { %v6908_v44 = vpop.f32.mrf.mxu1  ;;  %v4231_v55 = vmul.f32 %v7358_v57, %v6901_v11  ;;  %v9559_v11 = vld [vmem:[#allocation16_spill] sm:$0xff] }
 0x933   : > { %v9083_v28 = vadd.f32 %v6908_v44, %v8696_v12  ;;  %v4793_v47 = vpop.permute.xlu0 %4792 }
 0x934   : > { %v4346_v35 = vpop.f32.mrf.mxu1  ;;  %6925 = vmatmul.mubr.msk.f32.gmra.mxu1 %vm522_vm1, %v4229_v46  ;;  %6980 = vmatprep.mubr.msk.f32.mxu0 %vm522_vm1, %v4793_v47  ;;  %v9564_v47 = vld [vmem:[#allocation34_spill] sm:$0xff] }
 0x935   : > { %v9088_v38 = vadd.f32 %v4346_v35, %v8698_v26  ;;  %6927 = vmatprep.mubr.msk.f32.mxu1 %vm522_vm1, %v4230_v62  ;;  %6981 = vmatmul.mubr.msk.f32.vlgmr.msra.gmra.mxu0 %vm522_vm1, %v4795_v4  ;;  %v9563_v4 = vld [vmem:[#allocation33_spill] sm:$0xff] }
 0x937   : > { %v4797_v3 = vpop.permute.xlu0 %4796 }
 0x938   : > { %6928 = vmatmul.mubr.msk.f32.gmra.mxu1 %vm522_vm1, %v4231_v55  ;;  %6983 = vmatprep.mubr.msk.f32.mxu0 %vm522_vm1, %v4797_v3 }
 0x939   : > { %6966 = vmatprep.mubr.msk.f32.mxu1 %vm522_vm1, %v4676_v25  ;;  %6984 = vmatmul.mubr.msk.f32.gmra.mxu0 %vm522_vm1, %v4799_v45 }
 0x93b   : > { %v6911_v12 = vpop.f32.mrf.mxu1 }
 0x93c   : > { %v9097_v63 = vadd.f32 %v6911_v12, %v8706_v20  ;;  %6967 = vmatmul.mubr.msk.f32.vlgmr.msra.gmra.mxu1 %vm522_vm1, %v4678_v1 }
 0x93d   : > { %v4356_v26 = vpop.f32.mrf.mxu1  ;;  %6969 = vmatprep.mubr.msk.f32.mxu1 %vm522_vm1, %v4680_v13 }
 0x93e   : > { %v9102_v39 = vadd.f32 %v4356_v26, %v8710_v17  ;;  %v9565_v26 = vld [vmem:[#allocation35_spill] sm:$0xff] }
 0x940   : > { %6970 = vmatmul.mubr.msk.f32.gmra.mxu1 %vm522_vm1, %v4682_v58  ;;  %v9561_v58 = vld [vmem:[#allocation29_spill] sm:$0xff] }
 0x943   : > { %v6914_v51 = vpop.f32.mrf.mxu1 }
 0x944   : > { %v9106_v32 = vadd.f32 %v6914_v51, %v8714_v15 }
 0x945   : > { %v4366_v40 = vpop.f32.mrf.mxu1 }
 0x946   : > { %v9109_v29 = vadd.f32 %v4366_v40, %v8718_v59 }
 0x948   : > { %v6917_v20 = vpop.f32.mrf.mxu1 }
 0x949   : > { %v9112_v52 = vadd.f32 %v6917_v20, %v8720_v6 }
 0x94a   : > { %v9166_v49 = vpop.f32.mrf.mxu1 }
 0x997   : > { %v6940_v54 = vpop.f32.mrf.mxu0 }
 0x998   : > { %v9116_v33 = vsel %vm7992_vm2, %v6940_v54, -inf }
 0x999   : > { %v4928_v17 = vsel %vm987_vm3, %v9116_v33, -inf  ;;  %v4539_v18 = vpop.f32.mrf.mxu0 }
 0x99a   : > { %v9122_v15 = vsel %vm7996_vm4, %v4539_v18, -inf  ;;  %4929 = vmax.xlane.f32.xlu1 %v4928_v17  ;;  %v9566_v17 = vld [vmem:[#allocation36_spill] sm:$0xff] }
 0x99b   : > { %v4925_v59 = vsel %vm987_vm3, %v9122_v15, -inf }
 0x99c   : > { %4926 = vmax.xlane.f32.xlu0 %v4925_v59  ;;  %v6943_v6 = vpop.f32.mrf.mxu0 }
 0x99d   : > { %v9134_v5 = vsel %vm8016_vm6, %v6943_v6, -inf }
 0x99e   : > { %v4549_v16 = vpop.f32.mrf.mxu0  ;;  %v4934_v37 = vsel %vm987_vm3, %v9134_v5, -inf }
 0x99f   : > { %v9128_v34 = vsel %vm8012_vm5, %v4549_v16, -inf }
 0x9a0   : > { %v4931_v31 = vsel %vm987_vm3, %v9128_v34, -inf }
 0x9a1   : > { %4932 = vmax.xlane.f32.xlu0 %v4931_v31 }
 0x9a5   : > { %4935 = vmax.xlane.f32.xlu0 %v4934_v37  ;;  %v9567_v37 = vld [vmem:[#allocation12_spill] sm:$0xff] }
 0x9a8   : > { %v6954_v24 = vpop.f32.mrf.mxu0 }
 0x9a9   : > { %v9140_v43 = vsel %vm7992_vm2, %v6954_v24, -inf  ;;  %v9568_v24 = vld [vmem:[#allocation21_spill] sm:$0xff] }
 0x9aa   : > { %v4940_v1 = vsel %vm987_vm3, %v9140_v43, -inf  ;;  %v4656_v27 = vpop.f32.mrf.mxu0 }
 0x9ab   : > { %v9146_v30 = vsel %vm7996_vm4, %v4656_v27, -inf  ;;  %4941 = vmax.xlane.f32.xlu0 %v4940_v1  ;;  %v9569_v1 = vld [vmem:[#allocation14_spill] sm:$0xff]  ;;  %v9570_v27 = vld [vmem:[#allocation19_spill] sm:$0xff] }
 0x9ac   : > { %v4937_v22 = vsel %vm987_vm3, %v9146_v30, -inf  ;;  %v6957_v13 = vpop.f32.mrf.mxu0 }
 0x9ad   : > { %4938 = vmax.xlane.f32.xlu1 %v4937_v22  ;;  %v9152_v25 = vsel %vm8016_vm6, %v6957_v13, -inf  ;;  %v9571_v22 = vld [vmem:[#allocation17_spill] sm:$0xff]  ;;  %v9572_v13 = vld [vmem:[#allocation27_spill] sm:$0xff] }
 0x9ae   : > { %v4946_v48 = vsel %vm987_vm3, %v9152_v25, -inf  ;;  %v4666_v14 = vpop.f32.mrf.mxu0 }
 0x9af   : > { %v9158_v36 = vsel %vm8012_vm5, %v4666_v14, -inf  ;;  %4947 = vmax.xlane.f32.xlu0 %v4946_v48  ;;  %v9573_v48 = vld [vmem:[#allocation24_spill] sm:$0xff] }
 0x9b0   : > { %v4943_v42 = vsel %vm987_vm3, %v9158_v36, -inf }
 0x9b1   : > { %4944 = vmax.xlane.f32.xlu1 %v4943_v42 }
 0x9c2   : > { %5075 = vrot.lane.b32.xlu1 %v7838_v41, %s7588_s29 }
 0x9c6   : > { %5071 = vrot.lane.b32.xlu1 %v9558_v19, %s7588_s29  ;;  %v9574_v19 = vld [vmem:[#allocation23_spill] sm:$0xff] }
 0x9ec   : > { %v6920_v8 = vpop.f32.mrf.mxu1 }
 0x9ed   : > { %v9169_v10 = vadd.f32 %v6920_v8, %v9559_v11 }
 0x9ee   : > { %v4386_v56 = vpop.f32.mrf.mxu1 }
 0x9ef   : > { %v9172_v50 = vadd.f32 %v4386_v56, %v9560_v60 }
 0x9f0   : > { %v6923_v53 = vpop.f32.mrf.mxu1 }
 0x9f1   : > { %v9175_v7 = vadd.f32 %v6923_v53, %v9561_v58 }
 0x9f2   : > { %v4396_v61 = vpop.f32.mrf.mxu1 }
 0x9f3   : > { %v9178_v41 = vadd.f32 %v4396_v61, %v9562_v9 }
 0x9f4   : > { %v6926_v46 = vpop.f32.mrf.mxu1 }
 0x9f5   : > { %v9181_v44 = vadd.f32 %v6926_v46, %v9563_v4  ;;  %v6982_v57 = vpop.f32.mrf.mxu0 }
 0x9f6   : > { %v4406_v62 = vpop.f32.mrf.mxu1  ;;  %v9197_v20 = vsel %vm7992_vm2, %v6982_v57, -inf }
 0x9f7   : > { %v9184_v35 = vadd.f32 %v4406_v62, %v9564_v47  ;;  %v4890_v55 = vpop.f32.mrf.mxu0  ;;  %v4964_v16 = vsel %vm987_vm3, %v9197_v20, -inf  ;;  %v9575_v47 = vld [vmem:[#allocation22_spill] sm:$0xff] }
 0x9f8   : > { %v9188_v3 = vsel %vm7996_vm4, %v4890_v55, -inf  ;;  %v6929_v45 = vpop.f32.mrf.mxu1 }
 0x9f9   : > { %v4961_v12 = vsel %vm987_vm3, %v9188_v3, -inf  ;;  %v9193_v51 = vadd.f32 %v6929_v45, %v9565_v26  ;;  %v6985_v40 = vpop.f32.mrf.mxu0  ;;  %v9577_v26 = vld [vmem:[#allocation26_spill] sm:$0xff] }
 0x9fa   : > { %v4416_v54 = vpop.f32.mrf.mxu1  ;;  %4962 = vmax.xlane.f32.xlu0 %v4961_v12  ;;  %v9229_v11 = vsel %vm8016_vm6, %v6985_v40, -inf  ;;  %v9576_v12 = vld [vmem:[#allocation28_spill] sm:$0xff]  ;;  %v9578_v40 = vld [vmem:[#allocation25_spill] sm:$0xff] }
 0x9fb   : > { %v9200_v18 = vadd.f32 %v4416_v54, %v9566_v17  ;;  %v4900_v59 = vpop.f32.mrf.mxu0  ;;  %v4970_v56 = vsel %vm987_vm3, %v9229_v11, -inf  ;;  %v9579_v54 = vld [vmem:[#allocation15_spill] sm:$0xff] }
 0x9fc   : > { %v9204_v6 = vsel %vm8012_vm5, %v4900_v59, -inf  ;;  %v6968_v61 = vpop.f32.mrf.mxu1 }
 0x9fd   : > { %v4967_v31 = vsel %vm987_vm3, %v9204_v6, -inf }
 0x9fe   : > { %4965 = vmax.xlane.f32.xlu0 %v4964_v16  ;;  %4968 = vmax.xlane.f32.xlu1 %v4967_v31  ;;  %v4773_v46 = vpop.f32.mrf.mxu1  ;;  %v9263_v31 = vsel %vm7992_vm2, %v6968_v61, -inf }
 0x9ff   : > { %v9239_v57 = vsel %vm7996_vm4, %v4773_v46, -inf  ;;  %v9580_v46 = vld [vmem:[#allocation20_spill] sm:$0xff] }
 0xa00   : > { %v6971_v4 = vpop.f32.mrf.mxu1  ;;  %v4949_v55 = vsel %vm987_vm3, %v9239_v57, -inf }
 0xa02   : > { %v4783_v62 = vpop.f32.mrf.mxu1 }
 0xa03   : > { %v9247_v45 = vsel %vm8012_vm5, %v4783_v62, -inf }
 0xa04   : > { %v4955_v23 = vsel %vm987_vm3, %v9247_v45, -inf }
 0xa0f   : > { %5069 = vrot.lane.b32.xlu1 %v9567_v37, %s7588_s29  ;;  %v4952_v37 = vsel %vm987_vm3, %v9263_v31, -inf }
 0xa13   : > { %5182 = vrot.lane.b32.xlu1 %v9568_v24, %s7588_s29 }
 0xa14   : > { %5073 = vrot.lane.b32.xlu0 %v9569_v1, %s7588_s29 }
 0xa17   : > { %5180 = vrot.lane.b32.xlu1 %v9570_v27, %s7588_s29 }
 0xa1b   : > { %5178 = vrot.lane.b32.xlu1 %v9571_v22, %s7588_s29  ;;  %v9270_v22 = vsel %vm8016_vm6, %v6971_v4, -inf }
 0xa1f   : > { %5291 = vrot.lane.b32.xlu1 %v9572_v13, %s7588_s29 }
 0xa23   : > { %5287 = vrot.lane.b32.xlu1 %v9573_v48, %s7588_s29  ;;  %v4930_v60 = vpop.xlane.xlu1 %4929 }
 0xa24   : > { %v4974_v2 = vsub.f32 %v9116_v33, %v4930_v60  ;;  %v4958_v33 = vsel %vm987_vm3, %v9270_v22, -inf }
 0xa25   : > { %v4927_v14 = vpop.xlane.xlu0 %4926 }
 0xa26   : > { %v4973_v42 = vsub.f32 %v9122_v15, %v4927_v14  ;;  %v4991_v59 = vmul.f32 1.442695, %v4974_v2 }
 0xa27   : > { %5400 = vrot.lane.b32.xlu1 %v9574_v19, %s7588_s29 }
 0xa28   : > { %v4989_v8 = vmul.f32 1.442695, %v4973_v42 }
 0xa2a   : > { %7359 = vpow2.f32 %v4989_v8  ;;  %v4933_v17 = vpop.xlane.xlu0 %4932 }
 0xa2b   : > { %7361 = vpow2.f32 %v4991_v59  ;;  %v4975_v13 = vsub.f32 %v9128_v34, %v4933_v17 }
 0xa2e   : > { %v4936_v24 = vpop.xlane.xlu0 %4935 }
 0xa2f   : > { %v4976_v42 = vsub.f32 %v9134_v5, %v4936_v24 }
 0xa33   : > { %4971 = vmax.xlane.f32.xlu0 %v4970_v56  ;;  %v4995_v56 = vmul.f32 1.442695, %v4976_v42 }
 0xa36   : > { %v4939_v53 = vpop.xlane.xlu1 %4938 }
 0xa37   : > { %v9233_v58 = vpop.eup %7359  ;;  %v4977_v16 = vsub.f32 %v9146_v30, %v4939_v53  ;;  %v4942_v30 = vpop.xlane.xlu0 %4941 }
 0xa38   : > { %6994 = vmatprep.mubr.msk.f32.mxu1 %vm987_vm3, %v9233_v58  ;;  %v7362_v14 = vpop.eup %7361 }
 0xa39   : > { %v4997_v1 = vmul.f32 1.442695, %v4977_v16  ;;  %v5024_v0 = vsel %vm987_vm3, %v7362_v14, 0.0 }
 0xa3a   : > { %v4945_v15 = vpop.xlane.xlu1 %4944 }
 0xa3b   : > { %v4979_v27 = vsub.f32 %v9158_v36, %v4945_v15  ;;  %7363 = vpow2.f32 %v4997_v1  ;;  %v4948_v48 = vpop.xlane.xlu0 %4947  ;;  %v4993_v36 = vmul.f32 1.442695, %v4975_v13 }
 0xa3d   : > { %v5001_v21 = vmul.f32 1.442695, %v4979_v27 }
 0xa3e   : > { %v5076_v9 = vpop.permute.xlu1 %5075 }
 0xa3f   : > { %6986 = vmatprep.subr.mxu1 %v5076_v9  ;;  %7365 = vpow2.f32 %v5001_v21 }
 0xa40   : > { %6987 = vmatpush3.msra.mxu1 %v5076_v9  ;;  %7367 = vpow2.f32 %v4993_v36 }
 0xa41   : > { %7369 = vpow2.f32 %v4995_v56 }
 0xa42   : > { %v5072_v60 = vpop.permute.xlu1 %5071 }
 0xa48   : > { %v7364_v8 = vpop.eup %7363 }
 0xa49   : > { %5184 = vrot.lane.b32.xlu0 %v9575_v47, %s7588_s29  ;;  %v5033_v15 = vsel %vm987_vm3, %v7364_v8, 0.0 }
 0xa4b   : > { %4950 = vmax.xlane.f32.xlu1 %v4949_v55  ;;  %v4978_v55 = vsub.f32 %v9140_v43, %v4942_v30 }
 0xa4c   : > { %v9280_v61 = vpop.eup %7365 }
 0xa4d   : > { %5293 = vrot.lane.b32.xlu0 %v9576_v12, %s7588_s29  ;;  %v5039_v9 = vsel %vm987_vm3, %v9280_v61, 0.0  ;;  %v7368_v62 = vpop.eup %7367  ;;  %v4999_v12 = vmul.f32 1.442695, %v4978_v55 }
 0xa4e   : > { %v7370_v47 = vpop.eup %7369  ;;  %v5027_v2 = vsel %vm987_vm3, %v7368_v62, 0.0 }
 0xa4f   : > { %4956 = vmax.xlane.f32.xlu1 %v4955_v23  ;;  %v4980_v23 = vsub.f32 %v9152_v25, %v4948_v48  ;;  %7371 = vpow2.f32 %v4999_v12  ;;  %v5030_v17 = vsel %vm987_vm3, %v7370_v47, 0.0 }
 0xa51   : > { %5289 = vrot.lane.b32.xlu0 %v9577_v26, %s7588_s29  ;;  %v5003_v26 = vmul.f32 1.442695, %v4980_v23 }
 0xa53   : > { %7373 = vpow2.f32 %v5003_v26 }
 0xa55   : > { %5402 = vrot.lane.b32.xlu0 %v9578_v40, %s7588_s29  ;;  %v5021_v40 = vsel %vm987_vm3, %v9233_v58, 0.0 }
 0xa5c   : > { %v7372_v59 = vpop.eup %7371 }
 0xa5d   : > { %v5036_v25 = vsel %vm987_vm3, %v7372_v59, 0.0 }
 0xa60   : > { %5396 = vrot.lane.b32.xlu1 %v9579_v54, %s7588_s29 }
 0xa74   : > { %4953 = vmax.xlane.f32.xlu0 %v4952_v37  ;;  %v7374_v37 = vpop.eup %7373 }
 0xa75   : > { %v5042_v58 = vsel %vm987_vm3, %v7374_v37, 0.0 }
 0xa78   : > { %4959 = vmax.xlane.f32.xlu0 %v4958_v33 }
 0xa83   : > { %v4963_v19 = vpop.xlane.xlu0 %4962 }
 0xa84   : > { %5025 = vadd.xlane.f32.xlu1 %v5024_v0  ;;  %v4985_v43 = vsub.f32 %v9188_v3, %v4963_v19  ;;  %v508_v0 = vld [vmem:[#allocation7 + $0x38] sm:$0xff] }
 0xa86   : > { %v5013_v24 = vmul.f32 1.442695, %v4985_v43 }
 0xa87   : > { %v9277_v53 = vpop.xlane.xlu0 %4965  ;;  %v9282_v34 = vpop.xlane.xlu1 %4968 }
 0xa88   : > { %5034 = vadd.xlane.f32.xlu1 %v5033_v15  ;;  %7375 = vpow2.f32 %v5013_v24  ;;  %v4987_v15 = vsub.f32 %v9204_v6, %v9282_v34  ;;  %v4986_v34 = vsub.f32 %v9197_v20, %v9277_v53 }
 0xa8b   : > { %v5074_v5 = vpop.permute.xlu0 %5073  ;;  %v5070_v4 = vpop.permute.xlu1 %5069 }
 0xa8c   : > { %5040 = vadd.xlane.f32.xlu1 %v5039_v9  ;;  %6988 = vmatprep.subr.mxu1 %v5074_v5 }
 0xa8d   : > { %6989 = vmatpush3.msra.mxu1 %v5074_v5  ;;  %v5017_v5 = vmul.f32 1.442695, %v4987_v15 }
 0xa8e   : > { %5398 = vrot.lane.b32.xlu0 %v9580_v46, %s7588_s29  ;;  %6990 = vmatprep.subr.mxu1 %v5072_v60 }
 0xa8f   : > { %6991 = vmatpush3.msra.mxu1 %v5072_v60  ;;  %v5183_v54 = vpop.permute.xlu1 %5182 }
 0xa90   : > { %6992 = vmatprep.subr.mxu1 %v5070_v4 }
 0xa91   : > { %6993 = vmatpush3.msra.mxu1 %v5070_v4 }
 0xa92   : > { %6995 = vmatmul.mubr.msk.f32.vlgmr.msra.gmra.mxu1 %vm987_vm3, %v7362_v14 }
 0xa93   : > { %6997 = vmatprep.mubr.msk.f32.mxu1 %vm987_vm3, %v7368_v62  ;;  %v5181_v16 = vpop.permute.xlu1 %5180 }
 0xa95   : > { %v7376_v14 = vpop.eup %7375 }
 0xa96   : > { %6998 = vmatmul.mubr.msk.f32.gmra.mxu1 %vm987_vm3, %v7370_v47  ;;  %v5057_v62 = vsel %vm987_vm3, %v7376_v14, 0.0  ;;  %v5015_v47 = vmul.f32 1.442695, %v4986_v34 }
 0xa97   : > { %7008 = vmatprep.mubr.msk.f32.mxu1 %vm987_vm3, %v7364_v8  ;;  %v5179_v1 = vpop.permute.xlu1 %5178 }
 0xa9b   : > { %v5292_v21 = vpop.permute.xlu1 %5291 }
 0xa9f   : > { %v5288_v3 = vpop.permute.xlu1 %5287 }
 0xaa3   : > { %v5401_v42 = vpop.permute.xlu1 %5400 }
 0xaad   : > { %5022 = vadd.xlane.f32.xlu0 %v5021_v40 }
 0xab1   : > { %5028 = vadd.xlane.f32.xlu0 %v5027_v2 }
 0xab5   : > { %5031 = vadd.xlane.f32.xlu0 %v5030_v17 }
 0xab9   : > { %5037 = vadd.xlane.f32.xlu0 %v5036_v25 }
 0xabc   : > { %v9300_v27 = vpop.xlane.xlu0 %4971 }
 0xabd   : > { %5043 = vadd.xlane.f32.xlu0 %v5042_v58  ;;  %v4988_v55 = vsub.f32 %v9229_v11, %v9300_v27 }
 0xabf   : > { %v5019_v12 = vmul.f32 1.442695, %v4988_v55 }
 0xac0   : > { %v5185_v33 = vpop.permute.xlu0 %5184 }
 0xac1   : > { %7000 = vmatprep.subr.mxu1 %v5185_v33 }
 0xac2   : > { %7001 = vmatpush3.msra.mxu1 %v5185_v33 }
 0xac3   : > { %7002 = vmatprep.subr.mxu1 %v5183_v54 }
 0xac4   : > { %v5294_v30 = vpop.permute.xlu0 %5293  ;;  %7003 = vmatpush3.msra.mxu1 %v5183_v54 }
 0xac5   : > { %7004 = vmatprep.subr.mxu1 %v5181_v16  ;;  %7014 = vmatprep.subr.mxu0 %v5294_v30 }
 0xac6   : > { %7005 = vmatpush3.msra.mxu1 %v5181_v16  ;;  %7015 = vmatpush3.msra.mxu0 %v5294_v30  ;;  %v507_v16 = vld [vmem:[#allocation7 + $0x30] sm:$0xff] }
 0xac7   : > { %7006 = vmatprep.subr.mxu1 %v5179_v1  ;;  %7016 = vmatprep.subr.mxu0 %v5292_v21 }
 0xac8   : > { %v5290_v13 = vpop.permute.xlu0 %5289  ;;  %7007 = vmatpush3.msra.mxu1 %v5179_v1  ;;  %7017 = vmatpush3.msra.mxu0 %v5292_v21 }
 0xac9   : > { %7009 = vmatmul.mubr.msk.f32.vlgmr.msra.gmra.mxu1 %vm987_vm3, %v7372_v59  ;;  %7018 = vmatprep.subr.mxu0 %v5290_v13 }
 0xaca   : > { %7011 = vmatprep.mubr.msk.f32.mxu1 %vm987_vm3, %v9280_v61  ;;  %7019 = vmatpush3.msra.mxu0 %v5290_v13 }
 0xacb   : > { %7020 = vmatprep.subr.mxu0 %v5288_v3 }
 0xacc   : > { %v5403_v48 = vpop.permute.xlu0 %5402  ;;  %7021 = vmatpush3.msra.mxu0 %v5288_v3 }
 0xacd   : > { %7012 = vmatmul.mubr.msk.f32.gmra.mxu1 %vm987_vm3, %v7374_v37  ;;  %7028 = vmatprep.subr.mxu1 %v5403_v48 }
 0xace   : > { %7029 = vmatpush3.msra.mxu1 %v5403_v48  ;;  %7036 = vmatprep.mubr.msk.f32.mxu1 %vm987_vm3, %v7376_v14 }
 0xacf   : > { %7030 = vmatprep.subr.mxu1 %v5401_v42  ;;  %7042 = vmatprep.subr.mxu0 %v508_v0 }
 0xad0   : > { %7031 = vmatpush3.msra.mxu1 %v5401_v42 }
 0xad4   : > { %v4951_v36 = vpop.xlane.xlu1 %4950 }
 0xad5   : > { %v4981_v19 = vsub.f32 %v9239_v57, %v4951_v36 }
 0xad7   : > { %v5005_v8 = vmul.f32 1.442695, %v4981_v19 }
 0xad8   : > { %v4957_v56 = vpop.xlane.xlu1 %4956 }
 0xad9   : > { %7377 = vpow2.f32 %v5005_v8  ;;  %v4983_v60 = vsub.f32 %v9247_v45, %v4957_v56 }
 0xadb   : > { %v5009_v61 = vmul.f32 1.442695, %v4983_v60 }
 0xadc   : > { %v5397_v20 = vpop.permute.xlu1 %5396 }
 0xadd   : > { %7379 = vpow2.f32 %v5009_v61 }
 0xade   : > { %7381 = vpow2.f32 %v5017_v5 }
 0xadf   : > { %7383 = vpow2.f32 %v5015_v47 }
 0xae0   : > { %7385 = vpow2.f32 %v5019_v12 }
 0xae6   : > { %v7378_v9 = vpop.eup %7377 }
 0xae7   : > { %7022 = vmatprep.mubr.msk.f32.mxu0 %vm987_vm3, %v7378_v9  ;;  %v5045_v46 = vsel %vm987_vm3, %v7378_v9, 0.0 }
 0xae8   : > { %5046 = vadd.xlane.f32.xlu1 %v5045_v46 }
 0xaea   : > { %v7380_v57 = vpop.eup %7379 }
 0xaeb   : > { %v5051_v4 = vsel %vm987_vm3, %v7380_v57, 0.0  ;;  %v7382_v45 = vpop.eup %7381 }
 0xaec   : > { %5052 = vadd.xlane.f32.xlu1 %v5051_v4  ;;  %v5063_v6 = vsel %vm987_vm3, %v7382_v45, 0.0  ;;  %v7384_v53 = vpop.eup %7383 }
 0xaed   : > { %v7386_v11 = vpop.eup %7385  ;;  %v5060_v37 = vsel %vm987_vm3, %v7384_v53, 0.0 }
 0xaee   : > { %v5066_v24 = vsel %vm987_vm3, %v7386_v11, 0.0 }
 0xaf0   : > { %5058 = vadd.xlane.f32.xlu1 %v5057_v62 }
 0xaf4   : > { %5064 = vadd.xlane.f32.xlu1 %v5063_v6 }
 0xafd   : > { %v4954_v23 = vpop.xlane.xlu0 %4953 }
 0xafe   : > { %v4982_v26 = vsub.f32 %v9263_v31, %v4954_v23 }
 0xb00   : > { %v5007_v40 = vmul.f32 1.442695, %v4982_v26 }
 0xb01   : > { %v4960_v54 = vpop.xlane.xlu0 %4959 }
 0xb02   : > { %7387 = vpow2.f32 %v5007_v40  ;;  %v4984_v2 = vsub.f32 %v9270_v22, %v4960_v54 }
 0xb04   : > { %v5011_v17 = vmul.f32 1.442695, %v4984_v2 }
 0xb05   : > { %v5399_v59 = vpop.permute.xlu0 %5398 }
 0xb06   : > { %7389 = vpow2.f32 %v5011_v17  ;;  %7032 = vmatprep.subr.mxu1 %v5399_v59 }
 0xb07   : > { %7033 = vmatpush3.msra.mxu1 %v5399_v59 }
 0xb08   : > { %7034 = vmatprep.subr.mxu1 %v5397_v20 }
 0xb09   : > { %7035 = vmatpush3.msra.mxu1 %v5397_v20 }
 0xb0a   : > { %7037 = vmatmul.mubr.msk.f32.vlgmr.msra.gmra.mxu1 %vm987_vm3, %v7384_v53 }
 0xb0b   : > { %7039 = vmatprep.mubr.msk.f32.mxu1 %vm987_vm3, %v7382_v45 }
 0xb0d   : > { %v5026_v58 = vpop.xlane.xlu1 %5025 }
 0xb0e   : > { %7040 = vmatmul.mubr.msk.f32.gmra.mxu1 %vm987_vm3, %v7386_v11 }
 0xb0f   : > { %v7388_v31 = vpop.eup %7387 }
 0xb10   : > { %7023 = vmatmul.mubr.msk.f32.vlgmr.msra.gmra.mxu0 %vm987_vm3, %v7388_v31  ;;  %v5048_v22 = vsel %vm987_vm3, %v7388_v31, 0.0 }
 0xb11   : > { %5049 = vadd.xlane.f32.xlu0 %v5048_v22  ;;  %7025 = vmatprep.mubr.msk.f32.mxu0 %vm987_vm3, %v7380_v57  ;;  %v5035_v60 = vpop.xlane.xlu1 %5034 }
 0xb12   : > { %7043 = vmatpush3.msra.mxu0 %v508_v0 }
 0xb13   : > { %v7390_v43 = vpop.eup %7389  ;;  %7044 = vmatprep.subr.mxu0 %v507_v16 }
 0xb14   : > { %7026 = vmatmul.mubr.msk.f32.gmra.mxu0 %vm987_vm3, %v7390_v43  ;;  %v5054_v25 = vsel %vm987_vm3, %v7390_v43, 0.0 }
 0xb15   : > { %5055 = vadd.xlane.f32.xlu0 %v5054_v25  ;;  %7045 = vmatpush3.msra.mxu0 %v507_v16  ;;  %v5041_v61 = vpop.xlane.xlu1 %5040 }
 0xb19   : > { %5061 = vadd.xlane.f32.xlu0 %v5060_v37 }
 0xb1d   : > { %5067 = vadd.xlane.f32.xlu0 %v5066_v24 }
 0xb36   : > { %v5023_v1 = vpop.xlane.xlu0 %5022 }
 0xb37   : > { %7391 = vrcp.f32 %v5023_v1 }
 0xb38   : > { %7393 = vrcp.f32 %v5026_v58 }
 0xb3a   : > { %v5029_v27 = vpop.xlane.xlu0 %5028 }
 0xb3b   : > { %7395 = vrcp.f32 %v5029_v27 }
 0xb3e   : > { %v5032_v33 = vpop.xlane.xlu0 %5031 }
 0xb3f   : > { %7397 = vrcp.f32 %v5032_v33 }
 0xb40   : > { %7399 = vrcp.f32 %v5035_v60 }
 0xb42   : > { %v5038_v15 = vpop.xlane.xlu0 %5037 }
 0xb43   : > { %7401 = vrcp.f32 %v5038_v15 }
 0xb44   : > { %v7392_v30 = vpop.eup %7391  ;;  %7403 = vrcp.f32 %v5041_v61 }
 0xb45   : > { %v7394_v13 = vpop.eup %7393 }
 0xb46   : > { %v5044_v5 = vpop.xlane.xlu0 %5043 }
 0xb47   : > { %7405 = vrcp.f32 %v5044_v5 }
 0xb48   : > { %v7396_v36 = vpop.eup %7395 }
 0xb4c   : > { %v7398_v0 = vpop.eup %7397 }
 0xb4d   : > { %v7400_v46 = vpop.eup %7399 }
 0xb50   : > { %v7402_v4 = vpop.eup %7401 }
 0xb51   : > { %v7404_v34 = vpop.eup %7403 }
 0xb52   : > { %v6996_v21 = vpop.f32.mrf.mxu1 }
 0xb53   : > { %v5538_v14 = vmul.f32 %v7394_v13, %v6996_v21 }
 0xb54   : > { %v5159_v3 = vpop.f32.mrf.mxu1  ;;  %v7406_v55 = vpop.eup %7405 }
 0xb55   : > { %v5537_v48 = vmul.f32 %v7392_v30, %v5159_v3 }
 0xb56   : > { %v6999_v42 = vpop.f32.mrf.mxu1 }
 0xb57   : > { %7046 = vmatprep.mubr.msk.f32.mxu0 %vm522_vm1, %v5537_v48  ;;  %v5540_v56 = vmul.f32 %v7398_v0, %v6999_v42 }
 0xb58   : > { %v5169_v19 = vpop.f32.mrf.mxu1  ;;  %7047 = vmatmul.mubr.msk.f32.vlgmr.msra.gmra.mxu0 %vm522_vm1, %v5538_v14 }
 0xb59   : > { %v5539_v8 = vmul.f32 %v7396_v36, %v5169_v19 }
 0xb5b   : > { %7049 = vmatprep.mubr.msk.f32.mxu0 %vm522_vm1, %v5539_v8 }
 0xb5c   : > { %7050 = vmatmul.mubr.msk.f32.gmra.mxu0 %vm522_vm1, %v5540_v56 }
 0xb71   : > { %v5047_v26 = vpop.xlane.xlu1 %5046 }
 0xb72   : > { %7407 = vrcp.f32 %v5047_v26 }
 0xb75   : > { %v5053_v54 = vpop.xlane.xlu1 %5052 }
 0xb79   : > { %v5059_v17 = vpop.xlane.xlu1 %5058 }
 0xb7d   : > { %v5065_v20 = vpop.xlane.xlu1 %5064 }
 0xb7f   : > { %v7408_v22 = vpop.eup %7407 }
 0xb89   : > { %v7010_v9 = vpop.f32.mrf.mxu1 }
 0xb8a   : > { %v5542_v45 = vmul.f32 %v7402_v4, %v7010_v9 }
 0xb8b   : > { %v5268_v57 = vpop.f32.mrf.mxu1 }
 0xb8c   : > { %v5541_v62 = vmul.f32 %v7400_v46, %v5268_v57 }
 0xb8d   : > { %v7013_v6 = vpop.f32.mrf.mxu1 }
 0xb8e   : > { %7052 = vmatprep.mubr.msk.f32.mxu0 %vm522_vm1, %v5541_v62  ;;  %v5544_v23 = vmul.f32 %v7406_v55, %v7013_v6  ;;  %v9581_v62 = vld [vmem:[#allocation31_spill] sm:$0xff] }
 0xb8f   : > { %v5278_v47 = vpop.f32.mrf.mxu1  ;;  %7053 = vmatmul.mubr.msk.f32.gmra.mxu0 %vm522_vm1, %v5542_v45 }
 0xb90   : > { %v5543_v12 = vmul.f32 %v7404_v34, %v5278_v47  ;;  %v9582_v34 = vld [vmem:[#allocation18_spill] sm:$0xff] }
 0xb92   : > { %7055 = vmatprep.mubr.msk.f32.mxu0 %vm522_vm1, %v5543_v12 }
 0xb93   : > { %7056 = vmatmul.mubr.msk.f32.gmra.mxu0 %vm522_vm1, %v5544_v23 }
 0xb9a   : > { %v5050_v40 = vpop.xlane.xlu0 %5049 }
 0xb9b   : > { %7409 = vrcp.f32 %v5050_v40 }
 0xb9c   : > { %7411 = vrcp.f32 %v5053_v54 }
 0xb9e   : > { %v5056_v2 = vpop.xlane.xlu0 %5055 }
 0xb9f   : > { %7413 = vrcp.f32 %v5056_v2 }
 0xba0   : > { %7415 = vrcp.f32 %v5059_v17 }
 0xba2   : > { %v5062_v59 = vpop.xlane.xlu0 %5061 }
 0xba3   : > { %7417 = vrcp.f32 %v5062_v59 }
 0xba4   : > { %7419 = vrcp.f32 %v5065_v20 }
 0xba6   : > { %v5068_v11 = vpop.xlane.xlu0 %5067 }
 0xba7   : > { %7421 = vrcp.f32 %v5068_v11 }
 0xba8   : > { %v7410_v25 = vpop.eup %7409 }
 0xba9   : > { %v7412_v27 = vpop.eup %7411 }
 0xbac   : > { %v7414_v21 = vpop.eup %7413 }
 0xbad   : > { %v7416_v3 = vpop.eup %7415 }
 0xbb0   : > { %v7418_v42 = vpop.eup %7417 }
 0xbb1   : > { %v7420_v36 = vpop.eup %7419 }
 0xbb4   : > { %v7422_v8 = vpop.eup %7421 }
 0xbca   : > { %v7038_v53 = vpop.f32.mrf.mxu1 }
 0xbcb   : > { %v5550_v19 = vmul.f32 %v7418_v42, %v7038_v53 }
 0xbcc   : > { %v5486_v16 = vpop.f32.mrf.mxu1 }
 0xbcd   : > { %v5549_v48 = vmul.f32 %v7416_v3, %v5486_v16 }
 0xbce   : > { %v7041_v58 = vpop.f32.mrf.mxu1 }
 0xbcf   : > { %v5552_v56 = vmul.f32 %v7422_v8, %v7041_v58 }
 0xbd0   : > { %v7024_v31 = vpop.f32.mrf.mxu0  ;;  %v5496_v14 = vpop.f32.mrf.mxu1 }
 0xbd1   : > { %v5546_v24 = vmul.f32 %v7410_v25, %v7024_v31  ;;  %v5551_v0 = vmul.f32 %v7420_v36, %v5496_v14 }
 0xbd2   : > { %v5377_v43 = vpop.f32.mrf.mxu0 }
 0xbd3   : > { %v5545_v37 = vmul.f32 %v7408_v22, %v5377_v43 }
 0xbd4   : > { %v7027_v1 = vpop.f32.mrf.mxu0 }
 0xbd5   : > { %7058 = vmatprep.mubr.msk.f32.mxu0 %vm522_vm1, %v5545_v37  ;;  %v5548_v13 = vmul.f32 %v7414_v21, %v7027_v1 }
 0xbd6   : > { %v5387_v33 = vpop.f32.mrf.mxu0  ;;  %7059 = vmatmul.mubr.msk.f32.gmra.mxu0 %vm522_vm1, %v5546_v24 }
 0xbd7   : > { %v5547_v30 = vmul.f32 %v7412_v27, %v5387_v33 }
 0xbd9   : > { %7061 = vmatprep.mubr.msk.f32.mxu0 %vm522_vm1, %v5547_v30 }
 0xbda   : > { %7062 = vmatmul.mubr.msk.f32.gmra.mxu0 %vm522_vm1, %v5548_v13 }
 0xbdb   : > { %7064 = vmatprep.mubr.msk.f32.mxu0 %vm522_vm1, %v5549_v48 }
 0xbde   : > { %7065 = vmatmul.mubr.msk.f32.gmra.mxu0 %vm522_vm1, %v5550_v19 }
 0xbdf   : > { %7067 = vmatprep.mubr.msk.f32.mxu0 %vm522_vm1, %v5551_v0 }
 0xbe2   : > { %7068 = vmatmul.mubr.msk.f32.gmra.mxu0 %vm522_vm1, %v5552_v56 }
 0xc18   : > { %v7048_v60 = vpop.f32.mrf.mxu0 }
 0xc19   : > { %v5747_v15 = vadd.f32 %v7048_v60, %v9083_v28 }
 0xc1a   : > { %v5667_v61 = vpop.f32.mrf.mxu0 }
 0xc1b   : > { %5763 = vst.msk [vmem:[%s9352_s26 + $0x8] sm:$0xff] %vm280_vm0, %v5747_v15  ;;  %v5746_v5 = vadd.f32 %v5667_v61, %v9088_v38  ;;  %v7423_v38 = vld [vmem:[%s9459_s3] ss:$0 sm:$0xff] }
 0xc1c   : > { %v7051_v9 = vpop.f32.mrf.mxu0  ;;  %v1773_v45 = vadd.f32 %v7423_v38, %v9581_v62 }
 0xc1d   : > { %5762 = vst.msk [vmem:[%s9352_s26] sm:$0xff] %vm280_vm0, %v5746_v5  ;;  %v5749_v46 = vadd.f32 %v7051_v9, %v9097_v63 }
 0xc1e   : > { %v5677_v28 = vpop.f32.mrf.mxu0  ;;  %v3110_v47 = vadd.f32 %v9582_v34, %v1773_v45 }
 0xc1f   : > { %5765 = vst.msk [vmem:[%s9352_s26 + $0x18] sm:$0xff] %vm280_vm0, %v5749_v46  ;;  %v5748_v57 = vadd.f32 %v5677_v28, %v9102_v39 }
 0xc20   : > { %v4431_v12 = vadd.f32 %v9166_v49, %v3110_v47 }
 0xc21   : > { %5764 = vst.msk [vmem:[%s9352_s26 + $0x10] sm:$0xff] %vm280_vm0, %v5748_v57 }
 0xc4f   : > { %v7054_v4 = vpop.f32.mrf.mxu0 }
 0xc50   : > { %v5751_v6 = vadd.f32 %v7054_v4, %v9106_v32 }
 0xc51   : > { %v5687_v63 = vpop.f32.mrf.mxu0 }
 0xc52   : > { %5767 = vst.msk [vmem:[%s9352_s26 + $0x28] sm:$0xff] %vm280_vm0, %v5751_v6  ;;  %v5750_v39 = vadd.f32 %v5687_v63, %v9109_v29 }
 0xc53   : > { %v7057_v55 = vpop.f32.mrf.mxu0 }
 0xc54   : > { %5766 = vst.msk [vmem:[%s9352_s26 + $0x20] sm:$0xff] %vm280_vm0, %v5750_v39  ;;  %v5753_v23 = vadd.f32 %v7057_v55, %v9112_v52 }
 0xc55   : > { %v5697_v26 = vpop.f32.mrf.mxu0 }
 0xc56   : > { %5769 = vst.msk [vmem:[%s9352_s26 + $0x38] sm:$0xff] %vm280_vm0, %v5753_v23  ;;  %v5752_v32 = vadd.f32 %v5697_v26, %v4431_v12 }
 0xc58   : > { %5768 = vst.msk [vmem:[%s9352_s26 + $0x30] sm:$0xff] %vm280_vm0, %v5752_v32 }
 0xc96   : > { %v7060_v40 = vpop.f32.mrf.mxu0 }
 0xc97   : > { %v5755_v54 = vadd.f32 %v7060_v40, %v9169_v10 }
 0xc98   : > { %v5707_v29 = vpop.f32.mrf.mxu0 }
 0xc99   : > { %5771 = vst.msk [vmem:[%s9352_s26 + $0x48] sm:$0xff] %vm280_vm0, %v5755_v54  ;;  %v5754_v49 = vadd.f32 %v5707_v29, %v9172_v50 }
 0xc9a   : > { %v7063_v52 = vpop.f32.mrf.mxu0 }
 0xc9b   : > { %5770 = vst.msk [vmem:[%s9352_s26 + $0x40] sm:$0xff] %vm280_vm0, %v5754_v49  ;;  %v5757_v2 = vadd.f32 %v7063_v52, %v9175_v7 }
 0xc9c   : > { %v5717_v17 = vpop.f32.mrf.mxu0 }
 0xc9d   : > { %5773 = vst.msk [vmem:[%s9352_s26 + $0x58] sm:$0xff] %vm280_vm0, %v5757_v2  ;;  %v5756_v59 = vadd.f32 %v5717_v17, %v9178_v41 }
 0xc9e   : > { %v7066_v10 = vpop.f32.mrf.mxu0 }
 0xc9f   : > { %5772 = vst.msk [vmem:[%s9352_s26 + $0x50] sm:$0xff] %vm280_vm0, %v5756_v59  ;;  %v5759_v20 = vadd.f32 %v7066_v10, %v9181_v44 }
 0xca0   : > { %v5727_v50 = vpop.f32.mrf.mxu0 }
 0xca1   : > { %5775 = vst.msk [vmem:[%s9352_s26 + $0x68] sm:$0xff] %vm280_vm0, %v5759_v20  ;;  %v5758_v53 = vadd.f32 %v5727_v50, %v9184_v35 }
 0xca2   : > { %v7069_v7 = vpop.f32.mrf.mxu0 }
 0xca3   : > { %5774 = vst.msk [vmem:[%s9352_s26 + $0x60] sm:$0xff] %vm280_vm0, %v5758_v53  ;;  %v5761_v41 = vadd.f32 %v7069_v7, %v9193_v51 }
 0xca4   : > { %v5737_v11 = vpop.f32.mrf.mxu0 }
 0xca5   : > { %5777 = vst.msk [vmem:[%s9352_s26 + $0x78] sm:$0xff] %vm280_vm0, %v5761_v41  ;;  %v5760_v44 = vadd.f32 %v5737_v11, %v9200_v18 }
 0xca7   : > { %5776 = vst.msk [vmem:[%s9352_s26 + $0x70] sm:$0xff] %vm280_vm0, %v5760_v44 }
 0xca8   : > { %7517 = shalt.err (!%p7514_p9)
}
 0xca9   : > { %s7518_s7 = scalar_lea.hbm %s9406_s21, 2048  ;;  %s7522_s29 = scalar_lea.hbm %s9460_s4, 4096 }
 0xcaa   : > { %p7519_p13 = scmp.ne.s32.totalorder %s9406_s21, %s7518_s7  ;;  %p7523_p4 = scmp.lt.s32.totalorder %s9406_s21, %s9460_s4 }
 0xcab   : > { %p7524_p8 = scmp.lt.s32.totalorder %s7522_s29, %s7518_s7 }
 0xcac   : > { %p7520_p5 = pnand %p7519_p13, %p9583_p10 }
 0xcad   : > { %p7525_p7 = por %p7524_p8, %p7523_p4 }
 0xcae   : > { %p7521_p0 = pneg %p7520_p5 }
 0xcb0   : > { %p7526_p11 = pnand %p7525_p7, %p7521_p0 }
 0xcb2   : > { %7529 = shalt.err (!%p7526_p11)
}
 0xcb3   : > { %s7590_s6 = smov 128   ;;  %s7591_s14 = smov 8  }
 0xcb4   : > { %7096 = dma.vmem_to_hbm [thread:$0]  (%p9583_p10), %s9408_s20, 2048, %s9406_s21, %s5779_s19, %s7590_s6, %s7590_s6, %s7591_s14  }
 0xcb5 PF: > { %s5808_s27 = sand.u32 1, %s7560_s15   ;;  %p9584_p1 = scmp.ne.s32.totalorder %s9489_s22, 0 }
 0xcb6   : > { %p9585_p2 = scmp.ge.s32.totalorder %s7572_s18, 2  ;;  %s5809_s8 = scalar_lea.sflag [#allocation4], %s5808_s27 }
 0xcb8   : > { %p7110_p6 = pnand %p9585_p2, %p9584_p1 }
 0xcba   : > { %p7111_p12 = pneg %p7110_p6 }
 0xcbc   : > { %7555 = dma.done.wait (%p7111_p12), %s5809_s8, 2048  }
 0xcbd   : > { %7557 = vsyncadd (%p7111_p12), %s5809_s8, 4294965248  ;;  %p18_p3 = scmp.ge.s32.totalorder %s7692_s13, 4   ;;  %s9586_s15 = smov %s7564_s16 }
 0xcbe   : > { %s9587_s16 = smov %s7568_s17  ;;  %s9588_s17 = smov %s7701_s24 }
 0xcbf   : > { %s9589_s18 = smov %s7692_s13  ;;  %20 = sbr.rel (!%p18_p3) target bundleno = 6 (0x6), region = 89 }
 0xcc4   :  { %5814 = vsyncpa [#allocation3], 1 }
 0xcc5   :  { %5816 = vsyncpa [#allocation3 + $0x1], 1 }
 0xcc6   :  { %5817 = vsyncpa [#allocation6], 1 }
 0xcc7   :  { %5818 = vsyncpa [#allocation4], 1 }
 0xcc8   :  { %5820 = vsyncpa [#allocation4 + $0x1], 1 }

</bundles_post_ra>
